<compile_context>
chip_gen: v6e
topology: v6e:2x2x1
jax: 0.10.0
libtpu: 0.0.40
codegen_flags: <defaults>
</compile_context>

<pallas_src>
import jax
import jax.numpy as jnp
from jax.experimental import pallas as pl
from jax.experimental.pallas import tpu as pltpu

D_LATENT = 64          # cfg.d_latent
ENC_H1 = 64
ENC_H2 = 256
DEC_HIDDEN = 256       # PrimitiveMLP hidden width
N_VERTS = 256          # small stand-in for ico_sphere(4)'s 2562 verts


# ----------------------------- fused Pallas kernel ----------------------------- #

def _part_vae_kernel(x_ref, eps_ref, uvs_ref, noise_ref,
                     e1w_ref, e1b_ref, e2w_ref, e2b_ref,
                     e3wmu_ref, e3bmu_ref, e3wlv_ref, e3blv_ref,
                     d1wu_ref, d1wz_ref, d1b_ref,
                     d2w_ref, d2b_ref, d3wt_ref, d3bt_ref,
                     recon_ref, mu_ref, logvar_ref):
    """enc1->relu->enc2->relu->enc3(mu/logvar) -> reparameterize -> PrimitiveMLP."""
    B = x_ref.shape[0]
    N = uvs_ref.shape[0]
    H = d2w_ref.shape[0]

    # ---------------- encoder (all matmuls done once with M = B) ----------------
    x = x_ref[...]                                                     # (B, 8)
    h1 = jnp.maximum(
        jnp.dot(x, e1w_ref[...], preferred_element_type=jnp.float32) + e1b_ref[...], 0.0)
    h2 = jnp.maximum(
        jnp.dot(h1, e2w_ref[...], preferred_element_type=jnp.float32) + e2b_ref[...], 0.0)
    mu = jnp.dot(h2, e3wmu_ref[...], preferred_element_type=jnp.float32) + e3bmu_ref[...]
    lv = jnp.dot(h2, e3wlv_ref[...], preferred_element_type=jnp.float32) + e3blv_ref[...]
    mu_ref[...] = mu
    logvar_ref[...] = lv

    # z = mu + eps * exp(0.5 * log_var)
    z = mu + eps_ref[...] * jnp.exp(0.5 * lv)                          # (B, D_LATENT)

    # Hoisted decoder term: z @ W1_z + b1 once for the whole batch (M = B).
    zb = jnp.dot(z, d1wz_ref[...], preferred_element_type=jnp.float32) + d1b_ref[...]  # (B, H)

    # ------------------------------- decoder ------------------------------------
    # Jittered uvs built in-kernel from a single (N, 3) mesh copy.
    uvj = uvs_ref[...][None, :, :] + noise_ref[...]                    # (B, N, 3)

    # K=3 contraction on the VPU: three broadcast multiply-adds instead of an MXU
    # matmul with a contraction depth of 3.
    w1u = d1wu_ref[...]                                                # (3, H)
    h1_uv = (uvj[:, :, 0:1] * w1u[0:1, :]
             + uvj[:, :, 1:2] * w1u[1:2, :]
             + uvj[:, :, 2:3] * w1u[2:3, :])                           # (B, N, H)
    h1d = jnp.maximum(h1_uv + zb[:, None, :], 0.0)                     # (B, N, H)

    # Flatten batch into rows: one (B*N, H) @ (H, H) matmul (better MXU occupancy).
    h1f = h1d.reshape(B * N, H)
    h2f = jnp.maximum(
        jnp.dot(h1f, d2w_ref[...], preferred_element_type=jnp.float32) + d2b_ref[...], 0.0)

    # Lane-dense output: (3, B*N) with vertices on lanes (full-width stores).
    out_t = jnp.dot(d3wt_ref[...], h2f.T, preferred_element_type=jnp.float32)  # (3, B*N)
    recon_ref[...] = out_t + d3bt_ref[...]


# ---------------------------------- wrapper ------------------------------------ #

def _fused_forward(params, x, eps, noise):
    B = int(x.shape[0])
    N = int(params["uvs"].shape[0])
    H = DEC_HIDDEN

    args = (
        x, eps, params["uvs"], noise,
        params["enc1_w"], params["enc1_b"],
        params["enc2_w"], params["enc2_b"],
        params["enc3_w_mu"], params["enc3_b_mu"],
        params["enc3_w_lv"], params["enc3_b_lv"],
        params["dec1_w_uv"], params["dec1_w_z"], params["dec1_b"],
        params["dec2_w"], params["dec2_b"],
        params["dec3_w"].T, params["dec3_b"].T,     # pre-transposed for lane-dense out
    )

    n_param = sum(int(v.size) for v in params.values())
    flops = int(2 * B * (8 * ENC_H1 + ENC_H1 * ENC_H2 + ENC_H2 * 2 * D_LATENT
                         + D_LATENT * H)
                + 2 * B * N * (3 * H + H * H + H * 3))
    bytes_accessed = int(4 * (x.size + eps.size + noise.size + n_param
                              + 3 * B * N + 2 * B * D_LATENT))

    vmem = pl.BlockSpec(memory_space=pltpu.MemorySpace.VMEM)
    return pl.pallas_call(
        _part_vae_kernel,
        out_shape=(
            jax.ShapeDtypeStruct((3, B * N), jnp.float32),        # recon (lane-dense)
            jax.ShapeDtypeStruct((B, D_LATENT), jnp.float32),     # mu
            jax.ShapeDtypeStruct((B, D_LATENT), jnp.float32),     # log_var
        ),
        in_specs=[vmem] * len(args),
        out_specs=(vmem, vmem, vmem),
        cost_estimate=pl.CostEstimate(flops=flops,
                                      transcendentals=B * D_LATENT,
                                      bytes_accessed=bytes_accessed),
    )(*args)


def part_vae_forward(params, x, key, gitter=True):
    """Equivalent of PartVAE.forward(x, gitter). Returns (recon, mu, log_var, eps, noise)."""
    B = x.shape[0]
    k_eps, k_git = jax.random.split(key)
    eps = jax.random.normal(k_eps, (B, D_LATENT), jnp.float32)
    if gitter:
        noise = 0.01 * jax.random.normal(k_git, (B, N_VERTS, 3), jnp.float32)
    else:
        noise = jnp.zeros((B, N_VERTS, 3), jnp.float32)

    recon_t, mu, log_var = _fused_forward(params, x, eps, noise)
    # Layout plumbing only: (3, B*N) -> (B, N, 3).
    recon = recon_t.reshape(3, B, N_VERTS).transpose(1, 2, 0)
    return recon, mu, log_var, eps, noise   # eps/noise returned only for the ref-check


# ----------------------------- parameter creation ------------------------------- #

def _linear(key, fan_in, fan_out):
    """PyTorch nn.Linear default init: U(-1/sqrt(fan_in), 1/sqrt(fan_in))."""
    kw, kb = jax.random.split(key)
    bound = fan_in ** -0.5
    w = jax.random.uniform(kw, (fan_in, fan_out), jnp.float32, -bound, bound)
    b = jax.random.uniform(kb, (1, fan_out), jnp.float32, -bound, bound)
    return w, b


def make_params(key):
    ks = jax.random.split(key, 8)
    p = {}
    p["enc1_w"], p["enc1_b"] = _linear(ks[0], 8, ENC_H1)
    p["enc2_w"], p["enc2_b"] = _linear(ks[1], ENC_H1, ENC_H2)
    # enc3: 256 -> 2*D_LATENT, pre-split into mu / logvar halves (== .view(-1, 2, dim))
    w3, b3 = _linear(ks[2], ENC_H2, 2 * D_LATENT)
    p["enc3_w_mu"], p["enc3_w_lv"] = w3[:, :D_LATENT], w3[:, D_LATENT:]
    p["enc3_b_mu"], p["enc3_b_lv"] = b3[:, :D_LATENT], b3[:, D_LATENT:]
    # PrimitiveMLP: (3 + D_LATENT) -> H -> H -> 3, W1 pre-split into uv/z parts
    w1, p["dec1_b"] = _linear(ks[3], 3 + D_LATENT, DEC_HIDDEN)
    p["dec1_w_uv"], p["dec1_w_z"] = w1[:3, :], w1[3:, :]
    p["dec2_w"], p["dec2_b"] = _linear(ks[4], DEC_HIDDEN, DEC_HIDDEN)
    p["dec3_w"], p["dec3_b"] = _linear(ks[5], DEC_HIDDEN, 3)
    # deterministic unit-sphere "uvs" (stand-in for ico_sphere(4) verts)
    pts = jax.random.normal(ks[6], (N_VERTS, 3), jnp.float32)
    p["uvs"] = pts / jnp.linalg.norm(pts, axis=-1, keepdims=True)
    return p


# --------------------------------- reference ------------------------------------ #

def _ref_forward(params, x, eps, noise):
    h1 = jax.nn.relu(x @ params["enc1_w"] + params["enc1_b"])
    h2 = jax.nn.relu(h1 @ params["enc2_w"] + params["enc2_b"])
    mu = h2 @ params["enc3_w_mu"] + params["enc3_b_mu"]
    lv = h2 @ params["enc3_w_lv"] + params["enc3_b_lv"]
    z = mu + eps * jnp.exp(0.5 * lv)
    uvj = params["uvs"][None] + noise
    d1 = jax.nn.relu(uvj @ params["dec1_w_uv"]
                     + (z @ params["dec1_w_z"])[:, None, :] + params["dec1_b"])
    d2 = jax.nn.relu(d1 @ params["dec2_w"] + params["dec2_b"])
    recon = d2 @ params["dec3_w"] + params["dec3_b"]
    return recon, mu, lv


# ----------------------------------- main ---------------------------------------- #

if __name__ == "__main__":
    key = jax.random.PRNGKey(0)
    k_param, k_x, k_fwd = jax.random.split(key, 3)

    params = make_params(k_param)
    B = 2
    # sample_primitives feeds the VAE with codes in [0, 1); mimic that.
    x = jax.random.uniform(k_x, (B, 8), jnp.float32)

    fwd = jax.jit(part_vae_forward, static_argnames=("gitter",))
    recon, mu, log_var, eps, noise = fwd(params, x, k_fwd, gitter=True)
    jax.block_until_ready((recon, mu, log_var))

    # correctness check vs pure-JAX reference (same eps / gitter noise)
    r_recon, r_mu, r_lv = _ref_forward(params, x, eps, noise)
    assert recon.shape == (B, N_VERTS, 3) and mu.shape == (B, D_LATENT)
    assert jnp.allclose(recon, r_recon, atol=5e-4, rtol=5e-4)
    assert jnp.allclose(mu, r_mu, atol=1e-5, rtol=1e-5)
    assert jnp.allclose(log_var, r_lv, atol=1e-5, rtol=1e-5)

    print("KERNEL_OK")
</pallas_src>

<mosaic_0001>
module attributes {stable_mosaic.version = 11 : i64} {
  func.func @_part_vae_kernel(%arg0: memref<2x8xf32, #tpu.memory_space<vmem>>, %arg1: memref<2x64xf32, #tpu.memory_space<vmem>>, %arg2: memref<256x3xf32, #tpu.memory_space<vmem>>, %arg3: memref<2x256x3xf32, #tpu.memory_space<vmem>>, %arg4: memref<8x64xf32, #tpu.memory_space<vmem>>, %arg5: memref<1x64xf32, #tpu.memory_space<vmem>>, %arg6: memref<64x256xf32, #tpu.memory_space<vmem>>, %arg7: memref<1x256xf32, #tpu.memory_space<vmem>>, %arg8: memref<256x64xf32, #tpu.memory_space<vmem>>, %arg9: memref<1x64xf32, #tpu.memory_space<vmem>>, %arg10: memref<256x64xf32, #tpu.memory_space<vmem>>, %arg11: memref<1x64xf32, #tpu.memory_space<vmem>>, %arg12: memref<3x256xf32, #tpu.memory_space<vmem>>, %arg13: memref<64x256xf32, #tpu.memory_space<vmem>>, %arg14: memref<1x256xf32, #tpu.memory_space<vmem>>, %arg15: memref<256x256xf32, #tpu.memory_space<vmem>>, %arg16: memref<1x256xf32, #tpu.memory_space<vmem>>, %arg17: memref<3x256xf32, #tpu.memory_space<vmem>>, %arg18: memref<3x1xf32, #tpu.memory_space<vmem>>, %arg19: memref<3x512xf32, #tpu.memory_space<vmem>>, %arg20: memref<2x64xf32, #tpu.memory_space<vmem>>, %arg21: memref<2x64xf32, #tpu.memory_space<vmem>>) attributes {dimension_semantics = [], scalar_prefetch = 0 : i64, scratch_operands = 0 : i64, tpu.core_type = #tpu.core_type<tc>} {
    %c0 = arith.constant 0 : index
    %c0_0 = arith.constant 0 : index
    %0 = vector.load %arg0[%c0, %c0_0] : memref<2x8xf32, #tpu.memory_space<vmem>>, vector<2x8xf32>
    %c0_1 = arith.constant 0 : index
    %c0_2 = arith.constant 0 : index
    %1 = vector.load %arg4[%c0_1, %c0_2] : memref<8x64xf32, #tpu.memory_space<vmem>>, vector<8x64xf32>
    %cst = arith.constant dense<0.000000e+00> : vector<2x64xf32>
    %2 = tpu.matmul %0, %1, %cst {dimension_numbers = #tpu.dot_dimension_numbers<[1], [0], [0], [1], [0, 0, 1, 1], [], []>} : vector<2x8xf32>, vector<8x64xf32>, vector<2x64xf32> -> vector<2x64xf32>
    %c0_3 = arith.constant 0 : index
    %c0_4 = arith.constant 0 : index
    %3 = vector.load %arg5[%c0_3, %c0_4] : memref<1x64xf32, #tpu.memory_space<vmem>>, vector<1x64xf32>
    %4 = vector.broadcast %3 : vector<1x64xf32> to vector<2x64xf32>
    %5 = arith.addf %2, %4 : vector<2x64xf32>
    %cst_5 = arith.constant 0.000000e+00 : f32
    %6 = vector.broadcast %cst_5 : f32 to vector<2x64xf32>
    %7 = arith.maximumf %5, %6 : vector<2x64xf32>
    %c0_6 = arith.constant 0 : index
    %c0_7 = arith.constant 0 : index
    %8 = vector.load %arg6[%c0_6, %c0_7] : memref<64x256xf32, #tpu.memory_space<vmem>>, vector<64x256xf32>
    %cst_8 = arith.constant dense<0.000000e+00> : vector<2x256xf32>
    %9 = tpu.matmul %7, %8, %cst_8 {dimension_numbers = #tpu.dot_dimension_numbers<[1], [0], [0], [1], [0, 0, 1, 1], [], []>} : vector<2x64xf32>, vector<64x256xf32>, vector<2x256xf32> -> vector<2x256xf32>
    %c0_9 = arith.constant 0 : index
    %c0_10 = arith.constant 0 : index
    %10 = vector.load %arg7[%c0_9, %c0_10] : memref<1x256xf32, #tpu.memory_space<vmem>>, vector<1x256xf32>
    %11 = vector.broadcast %10 : vector<1x256xf32> to vector<2x256xf32>
    %12 = arith.addf %9, %11 : vector<2x256xf32>
    %cst_11 = arith.constant 0.000000e+00 : f32
    %13 = vector.broadcast %cst_11 : f32 to vector<2x256xf32>
    %14 = arith.maximumf %12, %13 : vector<2x256xf32>
    %c0_12 = arith.constant 0 : index
    %c0_13 = arith.constant 0 : index
    %15 = vector.load %arg8[%c0_12, %c0_13] : memref<256x64xf32, #tpu.memory_space<vmem>>, vector<256x64xf32>
    %cst_14 = arith.constant dense<0.000000e+00> : vector<2x64xf32>
    %16 = tpu.matmul %14, %15, %cst_14 {dimension_numbers = #tpu.dot_dimension_numbers<[1], [0], [0], [1], [0, 0, 1, 1], [], []>} : vector<2x256xf32>, vector<256x64xf32>, vector<2x64xf32> -> vector<2x64xf32>
    %c0_15 = arith.constant 0 : index
    %c0_16 = arith.constant 0 : index
    %17 = vector.load %arg9[%c0_15, %c0_16] : memref<1x64xf32, #tpu.memory_space<vmem>>, vector<1x64xf32>
    %18 = vector.broadcast %17 : vector<1x64xf32> to vector<2x64xf32>
    %19 = arith.addf %16, %18 : vector<2x64xf32>
    %c0_17 = arith.constant 0 : index
    %c0_18 = arith.constant 0 : index
    %20 = vector.load %arg10[%c0_17, %c0_18] : memref<256x64xf32, #tpu.memory_space<vmem>>, vector<256x64xf32>
    %cst_19 = arith.constant dense<0.000000e+00> : vector<2x64xf32>
    %21 = tpu.matmul %14, %20, %cst_19 {dimension_numbers = #tpu.dot_dimension_numbers<[1], [0], [0], [1], [0, 0, 1, 1], [], []>} : vector<2x256xf32>, vector<256x64xf32>, vector<2x64xf32> -> vector<2x64xf32>
    %c0_20 = arith.constant 0 : index
    %c0_21 = arith.constant 0 : index
    %22 = vector.load %arg11[%c0_20, %c0_21] : memref<1x64xf32, #tpu.memory_space<vmem>>, vector<1x64xf32>
    %23 = vector.broadcast %22 : vector<1x64xf32> to vector<2x64xf32>
    %24 = arith.addf %21, %23 : vector<2x64xf32>
    %c0_22 = arith.constant 0 : index
    %c0_23 = arith.constant 0 : index
    %25 = vector.load %arg20[%c0_22, %c0_23] : memref<2x64xf32, #tpu.memory_space<vmem>>, vector<2x64xf32>
    tpu.vector_store %arg20[%c0_22, %c0_23], %19 {strides = array<i32>} : memref<2x64xf32, #tpu.memory_space<vmem>>, vector<2x64xf32>,
    %c0_24 = arith.constant 0 : index
    %c0_25 = arith.constant 0 : index
    %26 = vector.load %arg21[%c0_24, %c0_25] : memref<2x64xf32, #tpu.memory_space<vmem>>, vector<2x64xf32>
    tpu.vector_store %arg21[%c0_24, %c0_25], %24 {strides = array<i32>} : memref<2x64xf32, #tpu.memory_space<vmem>>, vector<2x64xf32>,
    %c0_26 = arith.constant 0 : index
    %c0_27 = arith.constant 0 : index
    %27 = vector.load %arg1[%c0_26, %c0_27] : memref<2x64xf32, #tpu.memory_space<vmem>>, vector<2x64xf32>
    %cst_28 = arith.constant 5.000000e-01 : f32
    %28 = vector.broadcast %cst_28 : f32 to vector<2x64xf32>
    %29 = arith.mulf %28, %24 : vector<2x64xf32>
    %30 = math.exp %29 : vector<2x64xf32>
    %31 = arith.mulf %27, %30 : vector<2x64xf32>
    %32 = arith.addf %19, %31 : vector<2x64xf32>
    %c0_29 = arith.constant 0 : index
    %c0_30 = arith.constant 0 : index
    %33 = vector.load %arg13[%c0_29, %c0_30] : memref<64x256xf32, #tpu.memory_space<vmem>>, vector<64x256xf32>
    %cst_31 = arith.constant dense<0.000000e+00> : vector<2x256xf32>
    %34 = tpu.matmul %32, %33, %cst_31 {dimension_numbers = #tpu.dot_dimension_numbers<[1], [0], [0], [1], [0, 0, 1, 1], [], []>} : vector<2x64xf32>, vector<64x256xf32>, vector<2x256xf32> -> vector<2x256xf32>
    %c0_32 = arith.constant 0 : index
    %c0_33 = arith.constant 0 : index
    %35 = vector.load %arg14[%c0_32, %c0_33] : memref<1x256xf32, #tpu.memory_space<vmem>>, vector<1x256xf32>
    %36 = vector.broadcast %35 : vector<1x256xf32> to vector<2x256xf32>
    %37 = arith.addf %34, %36 : vector<2x256xf32>
    %c0_34 = arith.constant 0 : index
    %c0_35 = arith.constant 0 : index
    %38 = vector.load %arg2[%c0_34, %c0_35] : memref<256x3xf32, #tpu.memory_space<vmem>>, vector<256x3xf32>
    %39 = vector.shape_cast %38 : vector<256x3xf32> to vector<1x256x3xf32>
    %c0_36 = arith.constant 0 : index
    %c0_37 = arith.constant 0 : index
    %c0_38 = arith.constant 0 : index
    %40 = vector.load %arg3[%c0_36, %c0_37, %c0_38] : memref<2x256x3xf32, #tpu.memory_space<vmem>>, vector<2x256x3xf32>
    %41 = vector.broadcast %39 : vector<1x256x3xf32> to vector<2x256x3xf32>
    %42 = arith.addf %41, %40 : vector<2x256x3xf32>
    %c0_39 = arith.constant 0 : index
    %c0_40 = arith.constant 0 : index
    %43 = vector.load %arg12[%c0_39, %c0_40] : memref<3x256xf32, #tpu.memory_space<vmem>>, vector<3x256xf32>
    %44 = vector.extract_strided_slice %42 {offsets = [0, 0, 0], sizes = [2, 256, 1], strides = [1, 1, 1]} : vector<2x256x3xf32> to vector<2x256x1xf32>
    %45 = vector.extract_strided_slice %43 {offsets = [0, 0], sizes = [1, 256], strides = [1, 1]} : vector<3x256xf32> to vector<1x256xf32>
    %46 = vector.shape_cast %45 : vector<1x256xf32> to vector<1x1x256xf32>
    %47 = vector.broadcast %44 : vector<2x256x1xf32> to vector<2x256x256xf32>
    %48 = vector.broadcast %46 : vector<1x1x256xf32> to vector<2x256x256xf32>
    %49 = arith.mulf %47, %48 : vector<2x256x256xf32>
    %50 = vector.extract_strided_slice %42 {offsets = [0, 0, 1], sizes = [2, 256, 1], strides = [1, 1, 1]} : vector<2x256x3xf32> to vector<2x256x1xf32>
    %51 = vector.extract_strided_slice %43 {offsets = [1, 0], sizes = [1, 256], strides = [1, 1]} : vector<3x256xf32> to vector<1x256xf32>
    %52 = vector.shape_cast %51 : vector<1x256xf32> to vector<1x1x256xf32>
    %53 = vector.broadcast %50 : vector<2x256x1xf32> to vector<2x256x256xf32>
    %54 = vector.broadcast %52 : vector<1x1x256xf32> to vector<2x256x256xf32>
    %55 = arith.mulf %53, %54 : vector<2x256x256xf32>
    %56 = arith.addf %49, %55 : vector<2x256x256xf32>
    %57 = vector.extract_strided_slice %42 {offsets = [0, 0, 2], sizes = [2, 256, 1], strides = [1, 1, 1]} : vector<2x256x3xf32> to vector<2x256x1xf32>
    %58 = vector.extract_strided_slice %43 {offsets = [2, 0], sizes = [1, 256], strides = [1, 1]} : vector<3x256xf32> to vector<1x256xf32>
    %59 = vector.shape_cast %58 : vector<1x256xf32> to vector<1x1x256xf32>
    %60 = vector.broadcast %57 : vector<2x256x1xf32> to vector<2x256x256xf32>
    %61 = vector.broadcast %59 : vector<1x1x256xf32> to vector<2x256x256xf32>
    %62 = arith.mulf %60, %61 : vector<2x256x256xf32>
    %63 = arith.addf %56, %62 : vector<2x256x256xf32>
    %64 = vector.shape_cast %37 : vector<2x256xf32> to vector<2x1x256xf32>
    %65 = vector.broadcast %64 : vector<2x1x256xf32> to vector<2x256x256xf32>
    %66 = arith.addf %63, %65 : vector<2x256x256xf32>
    %cst_41 = arith.constant 0.000000e+00 : f32
    %67 = vector.broadcast %cst_41 : f32 to vector<2x256x256xf32>
    %68 = arith.maximumf %66, %67 : vector<2x256x256xf32>
    %69 = vector.shape_cast %68 : vector<2x256x256xf32> to vector<512x256xf32>
    %c0_42 = arith.constant 0 : index
    %c0_43 = arith.constant 0 : index
    %70 = vector.load %arg15[%c0_42, %c0_43] : memref<256x256xf32, #tpu.memory_space<vmem>>, vector<256x256xf32>
    %cst_44 = arith.constant dense<0.000000e+00> : vector<512x256xf32>
    %71 = tpu.matmul %69, %70, %cst_44 {dimension_numbers = #tpu.dot_dimension_numbers<[1], [0], [0], [1], [0, 0, 1, 1], [], []>} : vector<512x256xf32>, vector<256x256xf32>, vector<512x256xf32> -> vector<512x256xf32>
    %c0_45 = arith.constant 0 : index
    %c0_46 = arith.constant 0 : index
    %72 = vector.load %arg16[%c0_45, %c0_46] : memref<1x256xf32, #tpu.memory_space<vmem>>, vector<1x256xf32>
    %73 = vector.broadcast %72 : vector<1x256xf32> to vector<512x256xf32>
    %74 = arith.addf %71, %73 : vector<512x256xf32>
    %cst_47 = arith.constant 0.000000e+00 : f32
    %75 = vector.broadcast %cst_47 : f32 to vector<512x256xf32>
    %76 = arith.maximumf %74, %75 : vector<512x256xf32>
    %c0_48 = arith.constant 0 : index
    %c0_49 = arith.constant 0 : index
    %77 = vector.load %arg17[%c0_48, %c0_49] : memref<3x256xf32, #tpu.memory_space<vmem>>, vector<3x256xf32>
    %78 = tpu.transpose %76, [1, 0] : vector<512x256xf32> -> vector<256x512xf32>
    %cst_50 = arith.constant dense<0.000000e+00> : vector<3x512xf32>
    %79 = tpu.matmul %77, %78, %cst_50 {dimension_numbers = #tpu.dot_dimension_numbers<[1], [0], [0], [1], [0, 0, 1, 1], [], []>} : vector<3x256xf32>, vector<256x512xf32>, vector<3x512xf32> -> vector<3x512xf32>
    %c0_51 = arith.constant 0 : index
    %c0_52 = arith.constant 0 : index
    %80 = vector.load %arg18[%c0_51, %c0_52] : memref<3x1xf32, #tpu.memory_space<vmem>>, vector<3x1xf32>
    %81 = vector.broadcast %80 : vector<3x1xf32> to vector<3x512xf32>
    %82 = arith.addf %79, %81 : vector<3x512xf32>
    %c0_53 = arith.constant 0 : index
    %c0_54 = arith.constant 0 : index
    %83 = vector.load %arg19[%c0_53, %c0_54] : memref<3x512xf32, #tpu.memory_space<vmem>>, vector<3x512xf32>
    tpu.vector_store %arg19[%c0_53, %c0_54], %82 {strides = array<i32>} : memref<3x512xf32, #tpu.memory_space<vmem>>, vector<3x512xf32>,
    return
  }
}

</mosaic_0001>

<bundles_post_ra>
// kernel: part_vae_forward.3
= control target key start
LH: loop header
LB: loop body
LE: loop exit
PB: predicated region body
PF: predicated region fallthrough
CT: control target
= control target key end

     0   :  { %s7059_s0 = inlined_call_operand.vmem [shape: f32[2,8], index: 0, kind: input, shape index: {}]   ;;  %s7060_s1 = inlined_call_operand.vmem [shape: f32[2,64], index: 1, kind: input, shape index: {}]   ;;  %s7061_s2 = inlined_call_operand.vmem [shape: f32[256,3], index: 2, kind: input, shape index: {}]   ;;  %s7062_s3 = inlined_call_operand.vmem [shape: f32[2,256,3], index: 3, kind: input, shape index: {}]   ;;  %s7063_s4 = inlined_call_operand.vmem [shape: f32[8,64], index: 4, kind: input, shape index: {}]   ;;  %s7064_s5 = inlined_call_operand.vmem [shape: f32[1,64], index: 5, kind: input, shape index: {}]   ;;  %s7065_s6 = inlined_call_operand.vmem [shape: f32[64,256], index: 6, kind: input, shape index: {}]   ;;  %s7066_s7 = inlined_call_operand.vmem [shape: f32[1,256], index: 7, kind: input, shape index: {}]   ;;  %s7067_s8 = inlined_call_operand.vmem [shape: f32[256,64], index: 8, kind: input, shape index: {}]   ;;  %s7068_s9 = inlined_call_operand.vmem [shape: f32[1,64], index: 9, kind: input, shape index: {}]   ;;  %s7069_s10 = inlined_call_operand.vmem [shape: f32[256,64], index: 10, kind: input, shape index: {}]   ;;  %s7070_s11 = inlined_call_operand.vmem [shape: f32[1,64], index: 11, kind: input, shape index: {}]   ;;  %s7071_s12 = inlined_call_operand.vmem [shape: f32[3,256], index: 12, kind: input, shape index: {}]   ;;  %s7072_s13 = inlined_call_operand.vmem [shape: f32[64,256], index: 13, kind: input, shape index: {}]   ;;  %s7073_s14 = inlined_call_operand.vmem [shape: f32[1,256], index: 14, kind: input, shape index: {}]   ;;  %s7074_s15 = inlined_call_operand.vmem [shape: f32[256,256], index: 15, kind: input, shape index: {}]   ;;  %s7075_s16 = inlined_call_operand.vmem [shape: f32[1,256], index: 16, kind: input, shape index: {}]   ;;  %s7076_s17 = inlined_call_operand.vmem [shape: f32[3,256], index: 17, kind: input, shape index: {}]   ;;  %s7077_s18 = inlined_call_operand.vmem [shape: f32[3,1], index: 18, kind: input, shape index: {}]   ;;  %s7078_s19 = inlined_call_operand.vmem [shape: f32[3,512], index: 19, kind: output, shape index: {0}]   ;;  %s7079_s20 = inlined_call_operand.hbm [shape: f32[2,64], index: 20, kind: output, shape index: {1}]   ;;  %s7080_s21 = inlined_call_operand.hbm [shape: f32[2,64], index: 21, kind: output, shape index: {2}]  }
   0x1   :  { %7143 = sst [smem:[#allocation82_spill]] %s7059_s0 }
   0x2   :  { %7144 = sst [smem:[#allocation83_spill]] %s7060_s1 }
   0x3   :  { %7145 = sst [smem:[#allocation84_spill]] %s7061_s2 }
   0x4   :  { %7146 = sst [smem:[#allocation85_spill]] %s7062_s3 }
   0x5   :  { %7147 = sst [smem:[#allocation86_spill]] %s7063_s4 }
   0x6   :  { %7148 = sst [smem:[#allocation87_spill]] %s7064_s5 }
   0x7   :  { %27 = vsyncpa [#allocation3], 0  ;;  %s7149_s26 = sld [smem:[#allocation86_spill]]  ;;  %vm76_vm0 = vcmask 64512   ;;  %v7083_v2 = vmov 0.0   ;;  %vm3701_vm1 = vmmov 0  }
   0x8   :  { %s7150_s28 = sld [smem:[#allocation82_spill]]  ;;  %3499 = vmatprep.subr.mxu1 %v7083_v2  ;;  %3501 = vmatprep.mubr.msk.f32.mxu1 %vm3701_vm1, %v7083_v2  ;;  %v7084_v5 = vmov 2   ;;  %v7089_v9 = vmov 1   ;;  %v166_v10 = vld [vmem:[%s7065_s6 + $0x78] sm:$0xff]  ;;  %v165_v11 = vld [vmem:[%s7065_s6 + $0x70] sm:$0xff]  ;;  %v164_v15 = vld [vmem:[%s7065_s6 + $0x68] sm:$0xff] }
   0x9   :  { %s7151_s4 = sld [smem:[#allocation84_spill]]  ;;  %3513 = vset.pattern.permute.xlu1 %v7084_v5  ;;  %3512 = vset.pattern.permute.xlu0 %v7089_v9  ;;  %v163_v16 = vld [vmem:[%s7065_s6 + $0x60] sm:$0xff]  ;;  %v162_v17 = vld [vmem:[%s7065_s6 + $0x58] sm:$0xff]  ;;  %v161_v18 = vld [vmem:[%s7065_s6 + $0x50] sm:$0xff]  ;;  %v7086_v19 = vmov 0  }
   0xa   :  { %s7152_s22 = sld [smem:[#allocation85_spill]]  ;;  %v160_v21 = vld [vmem:[%s7065_s6 + $0x48] sm:$0xff]  ;;  %v159_v22 = vld [vmem:[%s7065_s6 + $0x40] sm:$0xff] }
   0xd   :  { %v68_v0 = vld [vmem:[%s7149_s26] sm:$0xff] }
   0xe   :  { %v67_v1 = vld [vmem:[%s7150_s28] sm:$0x3]  ;;  %3500 = vmatpush3.msra.mxu1 %v68_v0 }
   0xf   :  { %v3829_v3 = vld [vmem:[%s7151_s4] sm:$0xff]  ;;  %v3841_v7 = vld [vmem:[%s7151_s4 + $0x8] sm:$0xff]  ;;  %3502 = vmatmul.mubr.msk.f32.vlgmr.msra.gmra.mxu1 %vm76_vm0, %v67_v1  ;;  %199 = vmatprep.subr.mxu1 %v166_v10  ;;  %v3861_v13 = vld [vmem:[%s7151_s4 + $0x18] sm:$0xff] }
  0x10   :  { %v617_v4 = vld [vmem:[%s7152_s22] sm:$0xff]  ;;  %v618_v8 = vld [vmem:[%s7152_s22 + $0x8] sm:$0xff]  ;;  %247 = vmatprep.mubr.f32.mxu1 %v7083_v2  ;;  %v620_v14 = vld [vmem:[%s7152_s22 + $0x18] sm:$0xff]  ;;  %200 = vmatpush1.msra.mxu1 %v165_v11 }
  0x11   :  { %v3836_v6 = vadd.f32 %v617_v4, %v3829_v3  ;;  %v3856_v12 = vadd.f32 %v618_v8, %v3841_v7  ;;  %201 = vmatprep.subr.mxu1 %v164_v15  ;;  %v684_v20 = vadd.f32 %v620_v14, %v3861_v13 }
  0x12   :  { %202 = vmatpush1.msra.mxu1 %v163_v16 }
  0x13   :  { %1744 = vperm.xlu1 %3513, %v3836_v6   ;;  %1214 = vperm.xlu0 %3512, %v3836_v6  }
  0x14   :  { %203 = vmatprep.subr.mxu1 %v162_v17 }
  0x17   :  { %3514 = vset.pattern.permute.xlu1 %v7086_v19 }
  0x18   :  { %753 = vperm.xlu1 %3514, %v3856_v12  }
  0x19   :  { %28 = vsyncpa [#allocation5], 0  ;;  %204 = vmatpush1.msra.mxu1 %v161_v18  ;;  %v158_v23 = vld [vmem:[%s7065_s6 + $0x38] sm:$0xff]  ;;  %1226 = vperm.xlu0 %3512, %v684_v20   ;;  %v157_v24 = vld [vmem:[%s7065_s6 + $0x30] sm:$0xff]  ;;  %s7153_s2 = sld [smem:[#allocation87_spill]]  ;;  %vm179_vm2 = vcmask 523264  }
  0x1a   :  { %205 = vmatprep.subr.mxu1 %v160_v21  ;;  %v3897_v25 = vld [vmem:[%s7151_s4 + $0x10] sm:$0xff]  ;;  %v156_v27 = vld [vmem:[%s7065_s6 + $0x28] sm:$0xff]  ;;  %v3920_v29 = vld [vmem:[%s7151_s4 + $0x20] sm:$0xff]  ;;  %vm474_vm3 = vcmask 517120   ;;  %s7255_s3 = sld [smem:[#allocation83_spill]]  ;;  %s3707_s26 = smov [#allocation4]  }
  0x1b   :  { %v619_v26 = vld [vmem:[%s7152_s22 + $0x10] sm:$0xff]  ;;  %206 = vmatpush1.msra.mxu1 %v159_v22  ;;  %v621_v30 = vld [vmem:[%s7152_s22 + $0x20] sm:$0xff]  ;;  %v154_v33 = vld [vmem:[%s7065_s6 + $0x18] sm:$0xff]  ;;  %s3407_s27 = sshll.u32 %s3707_s26, 4  ;;  %s3408_s27 = int_to_ptr.vmem [resolvable:$true] %s3407_s27 }
  0x1c   :  { %3515 = vset.pattern.permute.xlu1 %v7089_v9  ;;  %207 = vmatprep.subr.mxu1 %v158_v23  ;;  %v3908_v28 = vadd.f32 %v619_v26, %v3897_v25  ;;  %v155_v31 = vld [vmem:[%s7065_s6 + $0x20] sm:$0xff]  ;;  %v685_v32 = vadd.f32 %v621_v30, %v3920_v29  ;;  %v153_v34 = vld [vmem:[%s7065_s6 + $0x10] sm:$0xff]  ;;  %v152_v35 = vld [vmem:[%s7065_s6 + $0x8] sm:$0xff] }
  0x1d   :  { %1218 = vperm.xlu1 %3515, %v3856_v12   ;;  %208 = vmatpush1.msra.mxu1 %v157_v24  ;;  %v151_v36 = vld [vmem:[%s7065_s6] sm:$0xff]  ;;  %v3945_v37 = vld [vmem:[%s7151_s4 + $0x28] sm:$0xff]  ;;  %v3975_v46 = vld [vmem:[%s7151_s4 + $0x30] sm:$0xff] }
  0x1e   :  { %209 = vmatprep.subr.mxu1 %v156_v27  ;;  %1230 = vperm.xlu0 %3512, %v685_v32   ;;  %v622_v38 = vld [vmem:[%s7152_s22 + $0x28] sm:$0xff]  ;;  %v3954_v40 = vld [vmem:[%s7151_s4 + $0x40] sm:$0xff]  ;;  %v623_v47 = vld [vmem:[%s7152_s22 + $0x30] sm:$0xff] }
  0x1f   :  { %210 = vmatpush1.msra.mxu1 %v155_v31  ;;  %v686_v39 = vadd.f32 %v622_v38, %v3945_v37  ;;  %v625_v41 = vld [vmem:[%s7152_s22 + $0x40] sm:$0xff]  ;;  %v3964_v43 = vld [vmem:[%s7151_s4 + $0x48] sm:$0xff]  ;;  %v3983_v48 = vadd.f32 %v623_v47, %v3975_v46  ;;  %v3988_v49 = vld [vmem:[%s7151_s4 + $0x38] sm:$0xff] }
  0x20   :  { %211 = vmatprep.subr.mxu1 %v154_v33  ;;  %v689_v42 = vadd.f32 %v625_v41, %v3954_v40  ;;  %v626_v44 = vld [vmem:[%s7152_s22 + $0x48] sm:$0xff]  ;;  %v624_v50 = vld [vmem:[%s7152_s22 + $0x38] sm:$0xff]  ;;  %v4005_v52 = vld [vmem:[%s7151_s4 + $0x50] sm:$0xff] }
  0x21   :  { %3516 = vset.pattern.permute.xlu1 %v7086_v19  ;;  %212 = vmatpush1.msra.mxu1 %v153_v34  ;;  %v3970_v45 = vadd.f32 %v626_v44, %v3964_v43  ;;  %v3998_v51 = vadd.f32 %v624_v50, %v3988_v49  ;;  %v627_v53 = vld [vmem:[%s7152_s22 + $0x50] sm:$0xff]  ;;  %v4019_v55 = vld [vmem:[%s7151_s4 + $0x58] sm:$0xff]  ;;  %v601_v61 = vld [vmem:[%s7151_s4 + $0x80] sm:$0xff] }
  0x22   :  { %758 = vperm.xlu1 %3516, %v3908_v28   ;;  %213 = vmatprep.subr.mxu1 %v152_v35  ;;  %v4013_v54 = vadd.f32 %v627_v53, %v4005_v52  ;;  %v628_v56 = vld [vmem:[%s7152_s22 + $0x58] sm:$0xff]  ;;  %v633_v62 = vld [vmem:[%s7152_s22 + $0x80] sm:$0xff]  ;;  %v286_v8 = vld [vmem:[%s7067_s8 + $0xf0] sm:$0xff] }
  0x23   :  { %214 = vmatpush1.msra.mxu1 %v151_v36  ;;  %1246 = vperm.xlu0 %3512, %v689_v42   ;;  %v4026_v57 = vadd.f32 %v628_v56, %v4019_v55  ;;  %v600_v58 = vld [vmem:[%s7151_s4 + $0x78] sm:$0xff]  ;;  %v4046_v63 = vadd.f32 %v633_v62, %v601_v61  ;;  %v605_v0 = vld [vmem:[%s7151_s4 + $0xa0] sm:$0xff]  ;;  %v606_v11 = vld [vmem:[%s7151_s4 + $0xa8] sm:$0xff] }
  0x24   :  { %v632_v59 = vld [vmem:[%s7152_s22 + $0x78] sm:$0xff]  ;;  %v637_v1 = vld [vmem:[%s7152_s22 + $0xa0] sm:$0xff]  ;;  %v638_v14 = vld [vmem:[%s7152_s22 + $0xa8] sm:$0xff] }
  0x25   :  { %v4036_v60 = vadd.f32 %v632_v59, %v600_v58  ;;  %v287_v4 = vld [vmem:[%s7067_s8 + $0xf8] sm:$0xff]  ;;  %v4066_v10 = vadd.f32 %v637_v1, %v605_v0  ;;  %v270_v15 = vld [vmem:[%s7067_s8 + $0x70] sm:$0xff]  ;;  %v285_v16 = vld [vmem:[%s7067_s8 + $0xe8] sm:$0xff]  ;;  %v4091_v21 = vadd.f32 %v638_v14, %v606_v11 }
  0x26   :  { %3517 = vset.pattern.permute.xlu1 %v7089_v9  ;;  %3429 = vmatprep.subr.mxu0 %v287_v4  ;;  %v269_v17 = vld [vmem:[%s7067_s8 + $0x68] sm:$0xff]  ;;  %v284_v18 = vld [vmem:[%s7067_s8 + $0xe0] sm:$0xff]  ;;  %v283_v22 = vld [vmem:[%s7067_s8 + $0xd8] sm:$0xff] }
  0x27   :  { %1222 = vperm.xlu1 %3517, %v3908_v28   ;;  %1250 = vperm.xlu0 %3512, %v3970_v45   ;;  %v267_v23 = vld [vmem:[%s7067_s8 + $0x58] sm:$0xff]  ;;  %v282_v24 = vld [vmem:[%s7067_s8 + $0xd0] sm:$0xff]  ;;  %v281_v27 = vld [vmem:[%s7067_s8 + $0xc8] sm:$0xff] }
  0x28   :  { %v266_v26 = vld [vmem:[%s7067_s8 + $0x50] sm:$0xff]  ;;  %v265_v30 = vld [vmem:[%s7067_s8 + $0x48] sm:$0xff]  ;;  %v280_v31 = vld [vmem:[%s7067_s8 + $0xc0] sm:$0xff] }
  0x29   :  { %v279_v33 = vld [vmem:[%s7067_s8 + $0xb8] sm:$0xff]  ;;  %v278_v35 = vld [vmem:[%s7067_s8 + $0xb0] sm:$0xff]  ;;  %v610_v36 = vld [vmem:[%s7151_s4 + $0xc8] sm:$0xff] }
  0x2a   :  { %v263_v34 = vld [vmem:[%s7067_s8 + $0x38] sm:$0xff]  ;;  %v642_v38 = vld [vmem:[%s7152_s22 + $0xc8] sm:$0xff]  ;;  %v262_v41 = vld [vmem:[%s7067_s8 + $0x30] sm:$0xff] }
  0x2b   :  { %3518 = vset.pattern.permute.xlu1 %v7086_v19  ;;  %3530 = vset.pattern.permute.xlu0 %v7086_v19  ;;  %v629_v44 = vld [vmem:[%s7152_s22 + $0x60] sm:$0xff]  ;;  %v4159_v50 = vadd.f32 %v642_v38, %v610_v36  ;;  %v275_v56 = vld [vmem:[%s7067_s8 + $0x98] sm:$0xff]  ;;  %v4177_v58 = vld [vmem:[%s7151_s4 + $0x68] sm:$0xff]  ;;  %v169_v36 = vlaneseq }
  0x2c   :  { %763 = vperm.xlu1 %3518, %v684_v20   ;;  %748 = vperm.xlu0 %3530, %v3836_v6   ;;  %v271_v6 = vld [vmem:[%s7067_s8 + $0x78] sm:$0xff]  ;;  %v276_v47 = vld [vmem:[%s7067_s8 + $0xa0] sm:$0xff]  ;;  %v630_v59 = vld [vmem:[%s7152_s22 + $0x68] sm:$0xff] }
  0x2d   :  { %3430 = vmatpush3.msra.mxu0 %v271_v6  ;;  %v4185_v61 = vadd.f32 %v630_v59, %v4177_v58  ;;  %v4192_v62 = vld [vmem:[%s7151_s4 + $0x70] sm:$0xff]  ;;  %v602_v4 = vld [vmem:[%s7151_s4 + $0x88] sm:$0xff]  ;;  %v259_v38 = vld [vmem:[%s7067_s8 + $0x18] sm:$0xff] }
  0x2e   :  { %3431 = vmatprep.subr.mxu0 %v286_v8  ;;  %v631_v0 = vld [vmem:[%s7152_s22 + $0x70] sm:$0xff]  ;;  %v634_v6 = vld [vmem:[%s7152_s22 + $0x88] sm:$0xff]  ;;  %v4334_v59 = vld [vmem:[%s7071_s12] sm:$0x77] }
  0x2f   :  { %3432 = vmatpush3.msra.mxu0 %v270_v15  ;;  %v4200_v1 = vadd.f32 %v631_v0, %v4192_v62  ;;  %v4218_v8 = vadd.f32 %v634_v6, %v602_v4  ;;  %v635_v11 = vld [vmem:[%s7152_s22 + $0x90] sm:$0xff]  ;;  %v3421_v15 = vld [vmem:[%s7153_s2] ss:$0 sm:$0xff]  ;;  %v257_v0 = vld [vmem:[%s7067_s8 + $0x8] sm:$0xff] }
  0x30   :  { %3519 = vset.pattern.permute.xlu1 %v7084_v5  ;;  %773 = vperm.xlu0 %3530, %v686_v39  }
  0x31   :  { %1756 = vperm.xlu1 %3519, %v684_v20   ;;  %3433 = vmatprep.subr.mxu0 %v285_v16  ;;  %v268_v20 = vld [vmem:[%s7067_s8 + $0x60] sm:$0xff] }
  0x32   :  { %3434 = vmatpush3.msra.mxu0 %v269_v17 }
  0x33   :  { %3435 = vmatprep.subr.mxu0 %v284_v18  ;;  %v4243_v18 = vld [vmem:[%s7151_s4 + $0x98] sm:$0xff] }
  0x34   :  { %778 = vperm.xlu0 %3530, %v3983_v48   ;;  %3436 = vmatpush3.msra.mxu0 %v268_v20  ;;  %v636_v20 = vld [vmem:[%s7152_s22 + $0x98] sm:$0xff] }
  0x35   :  { %3520 = vset.pattern.permute.xlu1 %v7086_v19  ;;  %3437 = vmatprep.subr.mxu0 %v283_v22 }
  0x36   :  { %768 = vperm.xlu1 %3520, %v685_v32   ;;  %3438 = vmatpush3.msra.mxu0 %v267_v23 }
  0x37   :  { %3439 = vmatprep.subr.mxu0 %v282_v24  ;;  %v4251_v24 = vadd.f32 %v636_v20, %v4243_v18 }
  0x38   :  { %798 = vperm.xlu0 %3530, %v4013_v54   ;;  %3440 = vmatpush3.msra.mxu0 %v266_v26  ;;  %v607_v26 = vld [vmem:[%s7151_s4 + $0xb0] sm:$0xff] }
  0x39   :  { %3441 = vmatprep.subr.mxu0 %v281_v27  ;;  %v639_v27 = vld [vmem:[%s7152_s22 + $0xb0] sm:$0xff] }
  0x3a   :  { %3521 = vset.pattern.permute.xlu1 %v7084_v5  ;;  %3442 = vmatpush3.msra.mxu0 %v265_v30  ;;  %v4270_v30 = vadd.f32 %v639_v27, %v607_v26  ;;  %v612_v26 = vld [vmem:[%s7151_s4 + $0xd8] sm:$0xff] }
  0x3b   :  { %1760 = vperm.xlu1 %3521, %v685_v32   ;;  %v264_v32 = vld [vmem:[%s7067_s8 + $0x40] sm:$0xff]  ;;  %3443 = vmatprep.subr.mxu0 %v280_v31  ;;  %v640_v31 = vld [vmem:[%s7152_s22 + $0xb8] sm:$0xff] }
  0x3c   :  { %803 = vperm.xlu0 %3530, %v4026_v57   ;;  %3444 = vmatpush3.msra.mxu0 %v264_v32  ;;  %v644_v27 = vld [vmem:[%s7152_s22 + $0xd8] sm:$0xff] }
  0x3d   :  { %3445 = vmatprep.subr.mxu0 %v279_v33  ;;  %v4289_v33 = vld [vmem:[%s7151_s4 + $0xc0] sm:$0xff] }
  0x3e   :  { %3446 = vmatpush3.msra.mxu0 %v263_v34  ;;  %v641_v34 = vld [vmem:[%s7152_s22 + $0xc0] sm:$0xff] }
  0x3f   :  { %3522 = vset.pattern.permute.xlu1 %v7089_v9  ;;  %3447 = vmatprep.subr.mxu0 %v278_v35  ;;  %v4297_v35 = vadd.f32 %v641_v34, %v4289_v33 }
  0x40   :  { %1234 = vperm.xlu1 %3522, %v686_v39   ;;  %823 = vperm.xlu0 %3530, %v4036_v60  }
  0x41   :  { %3448 = vmatpush3.msra.mxu0 %v262_v41  ;;  %v274_v41 = vld [vmem:[%s7067_s8 + $0x90] sm:$0xff] }
  0x44   :  { %3523 = vset.pattern.permute.xlu1 %v7084_v5  ;;  %828 = vperm.xlu0 %3530, %v4046_v63  }
  0x45   :  { %1764 = vperm.xlu1 %3523, %v686_v39   ;;  %v4141_v39 = vld [vmem:[%s7151_s4 + $0x60] sm:$0xff] }
  0x46   :  { %v4163_v53 = vadd.f32 %v629_v44, %v4141_v39  ;;  %v258_v44 = vld [vmem:[%s7067_s8 + $0x10] sm:$0xff] }
  0x48   :  { %848 = vperm.xlu0 %3530, %v4066_v10  }
  0x49   :  { %3524 = vset.pattern.permute.xlu1 %v7089_v9 }
  0x4a   :  { %1238 = vperm.xlu1 %3524, %v3983_v48  }
  0x4c   :  { %853 = vperm.xlu0 %3530, %v4091_v21  }
  0x4e   :  { %3525 = vset.pattern.permute.xlu1 %v7086_v19 }
  0x4f   :  { %783 = vperm.xlu1 %3525, %v3998_v51  }
  0x50   :  { %873 = vperm.xlu0 %3530, %v4159_v50  }
  0x53   :  { %3526 = vset.pattern.permute.xlu1 %v7089_v9 }
  0x54   :  { %1242 = vperm.xlu1 %3526, %v3998_v51  }
  0x58   :  { %3527 = vset.pattern.permute.xlu1 %v7086_v19 }
  0x59   :  { %788 = vperm.xlu1 %3527, %v689_v42  }
  0x5d   :  { %3528 = vset.pattern.permute.xlu1 %v7084_v5 }
  0x5e   :  { %1776 = vperm.xlu1 %3528, %v689_v42   ;;  %v277_v42 = vld [vmem:[%s7067_s8 + $0xa8] sm:$0xff] }
  0x5f   :  { %3449 = vmatprep.subr.mxu0 %v277_v42  ;;  %v4313_v42 = vshrl.u32 %v169_v36, 7 }
  0x61   :  { %7154 = vst [vmem:[#allocation8_spill] sm:$0xff] %v4313_v42  ;;  %v4344_v6 = vsub.s32 0, %v4313_v42 }
  0x62   :  { %3529 = vset.pattern.permute.xlu1 %v7086_v19 }
  0x63   :  { %793 = vperm.xlu1 %3529, %v3970_v45   ;;  %7156 = vst [vmem:[#allocation10_spill] sm:$0xff] %v4344_v6  ;;  %v1070_v20 = vrot.slane %v4334_v59, %v4344_v6 }
  0x67   :  { %3531 = vset.pattern.permute.xlu1 %v7084_v5 }
  0x68   :  { %1780 = vperm.xlu1 %3531, %v3970_v45   ;;  %v261_v45 = vld [vmem:[%s7067_s8 + $0x28] sm:$0xff] }
  0x69   :  { %3450 = vmatpush3.msra.mxu0 %v261_v45  ;;  %v611_v45 = vld [vmem:[%s7151_s4 + $0xd0] sm:$0xff] }
  0x6a   :  { %3451 = vmatprep.subr.mxu0 %v276_v47  ;;  %v643_v47 = vld [vmem:[%s7152_s22 + $0xd0] sm:$0xff] }
  0x6c   :  { %3532 = vset.pattern.permute.xlu1 %v7089_v9 }
  0x6d   :  { %1254 = vperm.xlu1 %3532, %v4013_v54  }
  0x71   :  { %3533 = vset.pattern.permute.xlu1 %v7084_v5 }
  0x72   :  { %1784 = vperm.xlu1 %3533, %v4013_v54   ;;  %v260_v54 = vld [vmem:[%s7067_s8 + $0x20] sm:$0xff] }
  0x73   :  { %3452 = vmatpush3.msra.mxu0 %v260_v54  ;;  %v4327_v54 = vadd.f32 %v643_v47, %v611_v45 }
  0x74   :  { %3453 = vmatprep.subr.mxu0 %v275_v56  ;;  %v1073_v56 = vsub.s32 4, %v4313_v42 }
  0x75   :  { %3454 = vmatpush3.msra.mxu0 %v259_v38  ;;  %878 = vperm.xlu0 %3530, %v4327_v54   ;;  %v4378_v38 = vrot.slane %v1070_v20, %v4344_v6 }
  0x76   :  { %3534 = vset.pattern.permute.xlu1 %v7089_v9  ;;  %3455 = vmatprep.subr.mxu0 %v274_v41 }
  0x77   :  { %1258 = vperm.xlu1 %3534, %v4026_v57   ;;  %3456 = vmatpush3.msra.mxu0 %v258_v44  ;;  %7158 = vst [vmem:[#allocation12_spill] sm:$0xff] %v4378_v38 }
  0x79   :  { %3561 = vset.pattern.permute.xlu0 %v7084_v5 }
  0x7a   :  { %1748 = vperm.xlu0 %3561, %v3856_v12  }
  0x7b   :  { %3535 = vset.pattern.permute.xlu1 %v7086_v19 }
  0x7c   :  { %808 = vperm.xlu1 %3535, %v4163_v53  }
  0x7e   :  { %1752 = vperm.xlu0 %3561, %v3908_v28  }
  0x80   :  { %3536 = vset.pattern.permute.xlu1 %v7089_v9 }
  0x81   :  { %1262 = vperm.xlu1 %3536, %v4163_v53  }
  0x82   :  { %1768 = vperm.xlu0 %3561, %v3983_v48  }
  0x85   :  { %3537 = vset.pattern.permute.xlu1 %v7086_v19 }
  0x86   :  { %813 = vperm.xlu1 %3537, %v4185_v61   ;;  %1772 = vperm.xlu0 %3561, %v3998_v51   ;;  %v614_v51 = vld [vmem:[%s7151_s4 + $0xe8] sm:$0xff] }
  0x8a   :  { %3538 = vset.pattern.permute.xlu1 %v7084_v5  ;;  %1788 = vperm.xlu0 %3561, %v4026_v57  }
  0x8b   :  { %1796 = vperm.xlu1 %3538, %v4185_v61  }
  0x8e   :  { %v4340_v4 = vpop.permute.xlu1 %1744  ;;  %1792 = vperm.xlu0 %3561, %v4163_v53   ;;  %v616_v53 = vld [vmem:[%s7151_s4 + $0xf8] sm:$0xff] }
  0x8f   :  { %3539 = vset.pattern.permute.xlu1 %v7086_v19  ;;  %7155 = vst [vmem:[#allocation9_spill] sm:$0xff] %v4340_v4 }
  0x90   :  { %818 = vperm.xlu1 %3539, %v4200_v1  }
  0x92   :  { %1808 = vperm.xlu0 %3561, %v4046_v63  }
  0x93   :  { %v754_v36 = vpop.permute.xlu1 %753 }
  0x94   :  { %3540 = vset.pattern.permute.xlu1 %v7084_v5  ;;  %v1087_v47 = vmul.f32 %v4378_v38, %v754_v36 }
  0x95   :  { %1800 = vperm.xlu1 %3540, %v4200_v1  }
  0x96   :  { %1812 = vperm.xlu0 %3561, %v4218_v8  }
  0x99   :  { %3541 = vset.pattern.permute.xlu1 %v7089_v9 }
  0x9a   :  { %1274 = vperm.xlu1 %3541, %v4036_v60   ;;  %1828 = vperm.xlu0 %3561, %v4091_v21  }
  0x9e   :  { %3542 = vset.pattern.permute.xlu1 %v7084_v5  ;;  %1832 = vperm.xlu0 %3561, %v4270_v30  }
  0x9f   :  { %1804 = vperm.xlu1 %3542, %v4036_v60   ;;  %v4225_v60 = vld [vmem:[%s7151_s4 + $0x90] sm:$0xff] }
  0xa0   :  { %v4233_v14 = vadd.f32 %v635_v11, %v4225_v60  ;;  %v1475_v11 = vsub.s32 5, %v4313_v42 }
  0xa2   :  { %1848 = vperm.xlu0 %3561, %v4327_v54  }
  0xa3   :  { %3543 = vset.pattern.permute.xlu1 %v7089_v9 }
  0xa4   :  { %1278 = vperm.xlu1 %3543, %v4046_v63  }
  0xa8   :  { %3544 = vset.pattern.permute.xlu1 %v7086_v19 }
  0xa9   :  { %833 = vperm.xlu1 %3544, %v4218_v8  }
  0xad   :  { %3545 = vset.pattern.permute.xlu1 %v7089_v9 }
  0xae   :  { %1282 = vperm.xlu1 %3545, %v4218_v8  }
  0xb2   :  { %3546 = vset.pattern.permute.xlu1 %v7086_v19 }
  0xb3   :  { %838 = vperm.xlu1 %3546, %v4233_v14  }
  0xb7   :  { %3547 = vset.pattern.permute.xlu1 %v7084_v5 }
  0xb8   :  { %1816 = vperm.xlu1 %3547, %v4233_v14  }
  0xbc   :  { %3548 = vset.pattern.permute.xlu1 %v7086_v19 }
  0xbd   :  { %843 = vperm.xlu1 %3548, %v4251_v24  }
  0xc1   :  { %3549 = vset.pattern.permute.xlu1 %v7084_v5 }
  0xc2   :  { %1820 = vperm.xlu1 %3549, %v4251_v24  }
  0xc6   :  { %3550 = vset.pattern.permute.xlu1 %v7089_v9 }
  0xc7   :  { %1294 = vperm.xlu1 %3550, %v4066_v10  }
  0xcb   :  { %3551 = vset.pattern.permute.xlu1 %v7084_v5 }
  0xcc   :  { %1824 = vperm.xlu1 %3551, %v4066_v10   ;;  %v608_v10 = vld [vmem:[%s7151_s4 + $0xb8] sm:$0xff] }
  0xcd   :  { %v4282_v32 = vadd.f32 %v640_v31, %v608_v10  ;;  %v4369_v10 = vadd.f32 %v644_v27, %v612_v26  ;;  %v1476_v31 = vrot.slane %v4334_v59, %v1475_v11 }
  0xcf   :  { %v146_v16 = vpop.f32.mrf.mxu1  ;;  %1852 = vperm.xlu0 %3561, %v4369_v10  }
  0xd0   :  { %v147_v17 = vadd.f32 %v3421_v15, %v146_v16  ;;  %3552 = vset.pattern.permute.xlu1 %v7089_v9  ;;  %v272_v15 = vld [vmem:[%s7067_s8 + $0x80] sm:$0xff] }
  0xd1   :  { %v3503_v22 = vpop.f32.mrf.mxu1  ;;  %1298 = vperm.xlu1 %3552, %v4091_v21   ;;  %v256_v16 = vld [vmem:[%s7067_s8] sm:$0xff] }
  0xd2   :  { %v150_v23 = vmax.f32 %v147_v17, 0.0  ;;  %v396_v17 = vld [vmem:[%s7069_s10 + $0xf8] sm:$0xff]  ;;  %v1074_v22 = vrot.slane %v4334_v59, %v1073_v56  ;;  %v1219_v56 = vpop.permute.xlu1 %1218  ;;  %v649_v21 = vld [vmem:[%s7152_s22 + $0x100] sm:$0xff] }
  0xd4   :  { %3423 = vmatmul.mubr.msk.f32.vlgmr.msra.gmra.mxu1 %vm179_vm2, %v150_v23  ;;  %v4360_v23 = vsub.s32 1, %v4313_v42  ;;  %v4381_v41 = vrot.slane %v1074_v22, %v4344_v6 }
  0xd5   :  { %3553 = vset.pattern.permute.xlu1 %v7086_v19 }
  0xd6   :  { %858 = vperm.xlu1 %3553, %v4270_v30   ;;  %7157 = vst [vmem:[#allocation11_spill] sm:$0xff] %v4360_v23  ;;  %v1472_v34 = vrot.slane %v4334_v59, %v4360_v23  ;;  %7159 = vst [vmem:[#allocation13_spill] sm:$0xff] %v4381_v41  ;;  %v4387_v45 = vrot.slane %v1476_v31, %v4360_v23  ;;  %v759_v20 = vpop.permute.xlu1 %758 }
  0xd7   :  { %v1089_v22 = vmul.f32 %v4378_v38, %v759_v20  ;;  %v1090_v26 = vmul.f32 %v4381_v41, %v759_v20 }
  0xd8   :  { %v4384_v44 = vrot.slane %v1472_v34, %v4360_v23  ;;  %7161 = vst [vmem:[#allocation15_spill] sm:$0xff] %v4387_v45 }
  0xda   :  { %3554 = vset.pattern.permute.xlu1 %v7089_v9  ;;  %7160 = vst [vmem:[#allocation14_spill] sm:$0xff] %v4384_v44  ;;  %v1489_v12 = vmul.f32 %v4384_v44, %v1219_v56  ;;  %v1223_v27 = vpop.permute.xlu1 %1222 }
  0xdb   :  { %1302 = vperm.xlu1 %3554, %v4270_v30   ;;  %v1491_v31 = vmul.f32 %v4384_v44, %v1223_v27  ;;  %v1492_v34 = vmul.f32 %v4387_v45, %v1223_v27 }
  0xdc   :  { %v4396_v11 = vadd.f32 %v1489_v12, %v1087_v47 }
  0xdd   :  { %v4419_v48 = vadd.f32 %v1492_v34, %v1090_v26 }
  0xde   :  { %7162 = vst [vmem:[#allocation16_spill] sm:$0xff] %v4396_v11  ;;  %v4422_v47 = vpop.permute.xlu1 %763 }
  0xdf   :  { %3555 = vset.pattern.permute.xlu1 %v7086_v19  ;;  %7165 = vst [vmem:[#allocation19_spill] sm:$0xff] %v4419_v48 }
  0xe0   :  { %863 = vperm.xlu1 %3555, %v4282_v32  }
  0xe2   :  { %v4435_v12 = vpop.permute.xlu1 %1756 }
  0xe4   :  { %3556 = vset.pattern.permute.xlu1 %v7084_v5 }
  0xe5   :  { %1836 = vperm.xlu1 %3556, %v4282_v32  }
  0xe6   :  { %v4439_v57 = vpop.permute.xlu1 %768 }
  0xe9   :  { %3557 = vset.pattern.permute.xlu1 %v7086_v19 }
  0xea   :  { %868 = vperm.xlu1 %3557, %v4297_v35  }
  0xee   :  { %3558 = vset.pattern.permute.xlu1 %v7084_v5 }
  0xef   :  { %1840 = vperm.xlu1 %3558, %v4297_v35  }
  0xf3   :  { %3559 = vset.pattern.permute.xlu1 %v7089_v9 }
  0xf4   :  { %1314 = vperm.xlu1 %3559, %v4159_v50  }
  0xf8   :  { %3560 = vset.pattern.permute.xlu1 %v7084_v5 }
  0xf9   :  { %1844 = vperm.xlu1 %3560, %v4159_v50   ;;  %v273_v50 = vld [vmem:[%s7067_s8 + $0x88] sm:$0xff] }
  0xfa   :  { %3457 = vmatprep.subr.mxu0 %v273_v50  ;;  %v1088_v50 = vmul.f32 %v4381_v41, %v754_v36  ;;  %v4417_v36 = vadd.f32 %v1491_v31, %v1089_v22  ;;  %v648_v22 = vld [vmem:[%s7152_s22 + $0xf8] sm:$0xff]  ;;  %v713_v31 = vadd.f32 %v649_v21, %v3829_v3 }
  0xfb   :  { %3458 = vmatpush3.msra.mxu0 %v257_v0  ;;  %v1490_v0 = vmul.f32 %v4387_v45, %v1219_v56  ;;  %v4469_v26 = vadd.f32 %v648_v22, %v616_v53 }
  0xfc   :  { %3459 = vmatprep.subr.mxu0 %v272_v15  ;;  %7164 = vst [vmem:[#allocation18_spill] sm:$0xff] %v4417_v36 }
  0xfd   :  { %3562 = vset.pattern.permute.xlu1 %v7089_v9  ;;  %3460 = vmatpush3.msra.mxu0 %v256_v16  ;;  %v4398_v15 = vadd.f32 %v1490_v0, %v1088_v50  ;;  %v613_v16 = vld [vmem:[%s7151_s4 + $0xe0] sm:$0xff]  ;;  %v646_v50 = vld [vmem:[%s7152_s22 + $0xe8] sm:$0xff]  ;;  %v615_v0 = vld [vmem:[%s7151_s4 + $0xf0] sm:$0xff] }
  0xfe   :  { %1318 = vperm.xlu1 %3562, %v4327_v54   ;;  %3464 = vmatprep.subr.mxu0 %v396_v17  ;;  %v645_v17 = vld [vmem:[%s7152_s22 + $0xe0] sm:$0xff]  ;;  %v4431_v56 = vadd.f32 %v646_v50, %v614_v51  ;;  %v650_v50 = vld [vmem:[%s7152_s22 + $0x108] sm:$0xff] }
  0xff   :  { %7163 = vst [vmem:[#allocation17_spill] sm:$0xff] %v4398_v15  ;;  %v4406_v28 = vadd.f32 %v645_v17, %v613_v16  ;;  %v647_v16 = vld [vmem:[%s7152_s22 + $0xf0] sm:$0xff]  ;;  %v4449_v17 = vpop.permute.xlu1 %1760  ;;  %1868 = vperm.xlu0 %3561, %v4469_v26  }
 0x100   :  { %v4451_v20 = vadd.f32 %v647_v16, %v615_v0  ;;  %v653_v16 = vld [vmem:[%s7152_s22 + $0x120] sm:$0xff] }
 0x102   :  { %3563 = vset.pattern.permute.xlu1 %v7086_v19 }
 0x103   :  { %883 = vperm.xlu1 %3563, %v4369_v10   ;;  %v4456_v63 = vpop.permute.xlu1 %1234  ;;  %1872 = vperm.xlu0 %3561, %v713_v31  }
 0x107   :  { %3564 = vset.pattern.permute.xlu1 %v7089_v9  ;;  %v4467_v8 = vpop.permute.xlu1 %1764 }
 0x108   :  { %1322 = vperm.xlu1 %3564, %v4369_v10   ;;  %v4493_v10 = vadd.f32 %v650_v50, %v3841_v7  ;;  %v654_v7 = vld [vmem:[%s7152_s22 + $0x128] sm:$0xff] }
 0x10b   :  { %v4477_v27 = vpop.permute.xlu1 %1238 }
 0x10c   :  { %3565 = vset.pattern.permute.xlu1 %v7086_v19  ;;  %7166 = vst [vmem:[#allocation20_spill] sm:$0xff] %v4477_v27 }
 0x10d   :  { %888 = vperm.xlu1 %3565, %v4406_v28  }
 0x10f   :  { %v784_v34 = vpop.permute.xlu1 %783 }
 0x110   :  { %v1099_v30 = vmul.f32 %v4378_v38, %v784_v34  ;;  %v1100_v51 = vmul.f32 %v4381_v41, %v784_v34  ;;  %v4505_v34 = vadd.f32 %v653_v16, %v3920_v29 }
 0x111   :  { %3566 = vset.pattern.permute.xlu1 %v7084_v5 }
 0x112   :  { %1856 = vperm.xlu1 %3566, %v4406_v28   ;;  %1888 = vperm.xlu0 %3561, %v4505_v34  }
 0x113   :  { %v1243_v0 = vpop.permute.xlu1 %1242 }
 0x114   :  { %v1501_v3 = vmul.f32 %v4384_v44, %v1243_v0  ;;  %v1502_v54 = vmul.f32 %v4387_v45, %v1243_v0 }
 0x116   :  { %3567 = vset.pattern.permute.xlu1 %v7086_v19  ;;  %v4498_v53 = vadd.f32 %v1501_v3, %v1099_v30  ;;  %v4500_v22 = vadd.f32 %v1502_v54, %v1100_v51  ;;  %v651_v30 = vld [vmem:[%s7152_s22 + $0x110] sm:$0xff]  ;;  %v4528_v3 = vpop.permute.xlu0 %1214 }
 0x117   :  { %893 = vperm.xlu1 %3567, %v4431_v56   ;;  %v4502_v21 = vpop.permute.xlu1 %788  ;;  %v715_v51 = vadd.f32 %v651_v30, %v3897_v25  ;;  %7167 = vst [vmem:[#allocation21_spill] sm:$0xff] %v4528_v3 }
 0x11a   :  { %v4541_v16 = vpop.permute.xlu0 %1226 }
 0x11b   :  { %3568 = vset.pattern.permute.xlu1 %v7084_v5  ;;  %v4512_v50 = vpop.permute.xlu1 %1776 }
 0x11c   :  { %1860 = vperm.xlu1 %3568, %v4431_v56  }
 0x11e   :  { %v4550_v30 = vpop.permute.xlu0 %1230 }
 0x11f   :  { %v4521_v29 = vpop.permute.xlu1 %793 }
 0x120   :  { %3569 = vset.pattern.permute.xlu1 %v7089_v9 }
 0x121   :  { %1334 = vperm.xlu1 %3569, %v4451_v20  }
 0x123   :  { %v4525_v0 = vpop.permute.xlu1 %1780 }
 0x125   :  { %3570 = vset.pattern.permute.xlu1 %v7084_v5 }
 0x126   :  { %1864 = vperm.xlu1 %3570, %v4451_v20  }
 0x127   :  { %v4534_v54 = vpop.permute.xlu1 %1254 }
 0x12a   :  { %3571 = vset.pattern.permute.xlu1 %v7089_v9 }
 0x12b   :  { %1338 = vperm.xlu1 %3571, %v4469_v26  }
 0x12f   :  { %3572 = vset.pattern.permute.xlu1 %v7086_v19 }
 0x130   :  { %908 = vperm.xlu1 %3572, %v713_v31  }
 0x134   :  { %3573 = vset.pattern.permute.xlu1 %v7089_v9 }
 0x135   :  { %1342 = vperm.xlu1 %3573, %v713_v31   ;;  %v718_v31 = vadd.f32 %v654_v7, %v3945_v37  ;;  %v652_v37 = vld [vmem:[%s7152_s22 + $0x118] sm:$0xff]  ;;  %v4543_v7 = vpop.permute.xlu1 %1784 }
 0x136   :  { %v4539_v25 = vadd.f32 %v652_v37, %v3861_v13  ;;  %v4558_v37 = vpop.permute.xlu0 %1246 }
 0x137   :  { %1892 = vperm.xlu0 %3561, %v718_v31  }
 0x139   :  { %3574 = vset.pattern.permute.xlu1 %v7086_v19 }
 0x13a   :  { %913 = vperm.xlu1 %3574, %v4493_v10   ;;  %v4572_v36 = vpop.permute.xlu0 %1250 }
 0x13b   :  { %3583 = vset.pattern.permute.xlu0 %v7089_v9 }
 0x13c   :  { %1266 = vperm.xlu0 %3583, %v4185_v61   ;;  %v4548_v61 = vpop.permute.xlu1 %1258 }
 0x13e   :  { %3575 = vset.pattern.permute.xlu1 %v7084_v5 }
 0x13f   :  { %1876 = vperm.xlu1 %3575, %v4493_v10  }
 0x140   :  { %1270 = vperm.xlu0 %3583, %v4200_v1   ;;  %v809_v13 = vpop.permute.xlu1 %808 }
 0x141   :  { %v1109_v1 = vmul.f32 %v4378_v38, %v809_v13 }
 0x143   :  { %3576 = vset.pattern.permute.xlu1 %v7086_v19 }
 0x144   :  { %918 = vperm.xlu1 %3576, %v715_v51   ;;  %1286 = vperm.xlu0 %3583, %v4233_v14   ;;  %v1110_v14 = vmul.f32 %v4381_v41, %v809_v13  ;;  %v1263_v2 = vpop.permute.xlu1 %1262  ;;  %v7168_v13 = vmov 0  }
 0x148   :  { %3577 = vset.pattern.permute.xlu1 %v7084_v5  ;;  %1290 = vperm.xlu0 %3583, %v4251_v24   ;;  %v1511_v24 = vmul.f32 %v4384_v44, %v1263_v2  ;;  %v4569_v27 = vpop.permute.xlu1 %813 }
 0x149   :  { %1880 = vperm.xlu1 %3577, %v715_v51  }
 0x14a   :  { %v4565_v19 = vadd.f32 %v1511_v24, %v1109_v1 }
 0x14c   :  { %1306 = vperm.xlu0 %3583, %v4282_v32  }
 0x14d   :  { %3578 = vset.pattern.permute.xlu1 %v7089_v9 }
 0x14e   :  { %1354 = vperm.xlu1 %3578, %v4539_v25  }
 0x150   :  { %1310 = vperm.xlu0 %3583, %v4297_v35   ;;  %v7170_v35 = vmov 1  }
 0x152   :  { %3579 = vset.pattern.permute.xlu1 %v7084_v5  ;;  %v1512_v5 = vmul.f32 %v4387_v45, %v1263_v2  ;;  %v655_v2 = vld [vmem:[%s7152_s22 + $0x130] sm:$0xff] }
 0x153   :  { %1884 = vperm.xlu1 %3579, %v4539_v25   ;;  %v719_v1 = vadd.f32 %v655_v2, %v3975_v46  ;;  %v660_v2 = vld [vmem:[%s7152_s22 + $0x158] sm:$0xff] }
 0x154   :  { %v4567_v32 = vadd.f32 %v1512_v5, %v1110_v14  ;;  %1326 = vperm.xlu0 %3583, %v4406_v28   ;;  %v4582_v5 = vpop.permute.xlu0 %748 }
 0x155   :  { %7171 = vst [vmem:[#allocation23_spill] sm:$0xff] %v4582_v5 }
 0x157   :  { %3580 = vset.pattern.permute.xlu1 %v7089_v9  ;;  %v4575_v9 = vpop.permute.xlu1 %1796 }
 0x158   :  { %1358 = vperm.xlu1 %3580, %v4505_v34   ;;  %7169 = vst [vmem:[#allocation22_spill] sm:$0xff] %v4575_v9  ;;  %1330 = vperm.xlu0 %3583, %v4431_v56   ;;  %v4591_v24 = vpop.permute.xlu0 %773  ;;  %v656_v56 = vld [vmem:[%s7152_s22 + $0x138] sm:$0xff] }
 0x159   :  { %v720_v46 = vadd.f32 %v656_v56, %v3988_v49  ;;  %v657_v56 = vld [vmem:[%s7152_s22 + $0x140] sm:$0xff] }
 0x15b   :  { %v4585_v14 = vpop.permute.xlu1 %818 }
 0x15c   :  { %3581 = vset.pattern.permute.xlu1 %v7168_v13  ;;  %7172 = vst [vmem:[#allocation24_spill] sm:$0xff] %v4585_v14  ;;  %1346 = vperm.xlu0 %3583, %v4493_v10   ;;  %v4600_v10 = vpop.permute.xlu0 %778 }
 0x15d   :  { %933 = vperm.xlu1 %3581, %v718_v31   ;;  %7176 = vst [vmem:[#allocation27_spill] sm:$0xff] %v4600_v10  ;;  %v167_v10 = vld [vmem:[%s7066_s7] sm:$0x3] }
 0x15e   :  { %v172_v4 = vrot.slane %v167_v10, %v4344_v6  ;;  %v176_v3 = vrot.slane %v167_v10, %v4360_v23 }
 0x15f   :  { %v4589_v28 = vpop.permute.xlu1 %1800 }
 0x160   :  { %7173 = vst [vmem:[#allocation25_spill] sm:$0xff] %v4589_v28  ;;  %1350 = vperm.xlu0 %3583, %v715_v51   ;;  %v4609_v51 = vadd.f32 %v660_v2, %v4019_v55  ;;  %v4622_v15 = vpop.permute.xlu0 %798  ;;  %v4630_v2 = vadd.f32 %v657_v56, %v3954_v40 }
 0x161   :  { %3582 = vset.pattern.permute.xlu1 %v7170_v35 }
 0x162   :  { %1362 = vperm.xlu1 %3582, %v718_v31   ;;  %v7174_v31 = vmov 2  }
 0x163   :  { %v4597_v48 = vpop.permute.xlu1 %1274 }
 0x164   :  { %7175 = vst [vmem:[#allocation26_spill] sm:$0xff] %v4597_v48  ;;  %1366 = vperm.xlu0 %3583, %v719_v1   ;;  %v4635_v48 = vpop.permute.xlu0 %803 }
 0x166   :  { %3584 = vset.pattern.permute.xlu1 %v7168_v13 }
 0x167   :  { %938 = vperm.xlu1 %3584, %v719_v1   ;;  %v4605_v11 = vpop.permute.xlu1 %1804 }
 0x168   :  { %7177 = vst [vmem:[#allocation28_spill] sm:$0xff] %v4605_v11  ;;  %1370 = vperm.xlu0 %3583, %v720_v46  }
 0x16b   :  { %3585 = vset.pattern.permute.xlu1 %v7174_v31  ;;  %v4614_v49 = vpop.permute.xlu1 %1278 }
 0x16c   :  { %1896 = vperm.xlu1 %3585, %v719_v1   ;;  %v661_v1 = vld [vmem:[%s7152_s22 + $0x160] sm:$0xff]  ;;  %1386 = vperm.xlu0 %3583, %v4609_v51  }
 0x16d   :  { %v4627_v55 = vadd.f32 %v661_v1, %v4141_v39 }
 0x16f   :  { %v834_v5 = vpop.permute.xlu1 %833 }
 0x170   :  { %3586 = vset.pattern.permute.xlu1 %v7168_v13  ;;  %1390 = vperm.xlu0 %3583, %v4627_v55   ;;  %v1119_v28 = vmul.f32 %v4378_v38, %v834_v5  ;;  %v1120_v14 = vmul.f32 %v4381_v41, %v834_v5  ;;  %v658_v5 = vld [vmem:[%s7152_s22 + $0x148] sm:$0xff] }
 0x171   :  { %943 = vperm.xlu1 %3586, %v720_v46  }
 0x174   :  { %3596 = vset.pattern.permute.xlu0 %v7168_v13 }
 0x175   :  { %3587 = vset.pattern.permute.xlu1 %v7174_v31  ;;  %898 = vperm.xlu0 %3596, %v4451_v20   ;;  %v395_v20 = vld [vmem:[%s7069_s10 + $0xf0] sm:$0xff] }
 0x176   :  { %1900 = vperm.xlu1 %3587, %v720_v46   ;;  %v1283_v46 = vpop.permute.xlu1 %1282 }
 0x177   :  { %v1521_v10 = vmul.f32 %v4384_v44, %v1283_v46  ;;  %v1522_v56 = vmul.f32 %v4387_v45, %v1283_v46  ;;  %v4673_v46 = vpop.permute.xlu0 %823 }
 0x178   :  { %7179 = vst [vmem:[#allocation30_spill] sm:$0xff] %v4673_v46 }
 0x179   :  { %903 = vperm.xlu0 %3596, %v4469_v26   ;;  %v377_v26 = vld [vmem:[%s7069_s10 + $0x60] sm:$0xff] }
 0x17a   :  { %3588 = vset.pattern.permute.xlu1 %v7170_v35 }
 0x17b   :  { %1374 = vperm.xlu1 %3588, %v4630_v2  }
 0x17d   :  { %923 = vperm.xlu0 %3596, %v4539_v25   ;;  %v375_v25 = vld [vmem:[%s7069_s10 + $0x50] sm:$0xff] }
 0x17f   :  { %3589 = vset.pattern.permute.xlu1 %v7174_v31 }
 0x180   :  { %1904 = vperm.xlu1 %3589, %v4630_v2  }
 0x181   :  { %928 = vperm.xlu0 %3596, %v4505_v34   ;;  %v388_v34 = vld [vmem:[%s7069_s10 + $0xb8] sm:$0xff] }
 0x184   :  { %3590 = vset.pattern.permute.xlu1 %v7170_v35 }
 0x185   :  { %948 = vperm.xlu0 %3596, %v4630_v2   ;;  %v370_v2 = vld [vmem:[%s7069_s10 + $0x28] sm:$0xff] }
 0x194   :  { %v249_v11 = vpop.f32.mrf.mxu1 }
 0x195   :  { %v4640_v39 = vadd.f32 %v249_v11, %v172_v4  ;;  %v4650_v4 = vadd.f32 %v1521_v10, %v1119_v28  ;;  %v4652_v11 = vadd.f32 %v1522_v56, %v1120_v14  ;;  %v4666_v14 = vadd.f32 %v658_v5, %v3964_v43  ;;  %v379_v28 = vld [vmem:[%s7069_s10 + $0x70] sm:$0xff]  ;;  %v378_v10 = vld [vmem:[%s7069_s10 + $0x68] sm:$0xff] }
 0x196   :  { %v251_v40 = vpop.f32.mrf.mxu1  ;;  %v659_v43 = vld [vmem:[%s7152_s22 + $0x150] sm:$0xff] }
 0x197   :  { %v252_v1 = vadd.f32 %v251_v40, %v176_v3  ;;  %v7103_v6 = vmax.f32 %v4640_v39, 0.0  ;;  %v380_v3 = vld [vmem:[%s7069_s10 + $0x78] sm:$0xff]  ;;  %v4659_v40 = vpop.permute.xlu1 %838  ;;  %1378 = vperm.xlu1 %3590, %v4666_v14   ;;  %v4696_v5 = vadd.f32 %v659_v43, %v4005_v52  ;;  %v391_v52 = vld [vmem:[%s7069_s10 + $0xd0] sm:$0xff]  ;;  %v2001_v43 = vsub.s32 2, %v4313_v42  ;;  %953 = vperm.xlu0 %3596, %v4666_v14  }
 0x198   :  { %7178 = vst [vmem:[#allocation29_spill] sm:$0xff] %v4659_v40 }
 0x199   :  { %v255_v23 = vmax.f32 %v252_v1, 0.0  ;;  %v394_v1 = vld [vmem:[%s7069_s10 + $0xe8] sm:$0xff] }
 0x19b   :  { %359 = vmatprep.mubr.f32.mxu0 %v255_v23  ;;  %v4685_v56 = vpop.permute.xlu1 %1816  ;;  %3591 = vset.pattern.permute.xlu1 %v7168_v13 }
 0x19c   :  { %360 = vmatmul.mubr.f32.vlgmr.msra.gmra.mxu0 %v7103_v6  ;;  %7180 = vst [vmem:[#allocation31_spill] sm:$0xff] %v4685_v56  ;;  %958 = vperm.xlu1 %3591, %v4696_v5   ;;  %v2002_v6 = vrot.slane %v4334_v59, %v2001_v43 }
 0x19d   :  { %3465 = vmatpush3.msra.mxu0 %v380_v3  ;;  %468 = vmatprep.mubr.f32.mxu0 %v255_v23  ;;  %v393_v23 = vld [vmem:[%s7069_s10 + $0xe0] sm:$0xff]  ;;  %v392_v3 = vld [vmem:[%s7069_s10 + $0xd8] sm:$0xff] }
 0x19e   :  { %3466 = vmatprep.subr.mxu0 %v395_v20  ;;  %v376_v20 = vld [vmem:[%s7069_s10 + $0x58] sm:$0xff] }
 0x19f   :  { %3467 = vmatpush3.msra.mxu0 %v379_v28  ;;  %v4705_v28 = vpop.permute.xlu0 %828 }
 0x1a0   :  { %3468 = vmatprep.subr.mxu0 %v394_v1  ;;  %v4707_v1 = vpop.permute.xlu1 %843  ;;  %3592 = vset.pattern.permute.xlu1 %v7170_v35 }
 0x1a1   :  { %3469 = vmatpush3.msra.mxu0 %v378_v10  ;;  %7181 = vst [vmem:[#allocation32_spill] sm:$0xff] %v4707_v1  ;;  %v2005_v10 = vsub.s32 6, %v4313_v42  ;;  %1382 = vperm.xlu1 %3592, %v4696_v5  }
 0x1a2   :  { %3470 = vmatprep.subr.mxu0 %v393_v23  ;;  %v390_v23 = vld [vmem:[%s7069_s10 + $0xc8] sm:$0xff] }
 0x1a3   :  { %3471 = vmatpush3.msra.mxu0 %v377_v26  ;;  %v374_v26 = vld [vmem:[%s7069_s10 + $0x48] sm:$0xff]  ;;  %v849_v42 = vpop.permute.xlu0 %848  ;;  %v2006_v46 = vrot.slane %v4334_v59, %v2005_v10  ;;  %v387_v59 = vld [vmem:[%s7069_s10 + $0xb0] sm:$0xff] }
 0x1a4   :  { %3472 = vmatprep.subr.mxu0 %v392_v3  ;;  %v4725_v3 = vpop.permute.xlu1 %1820 }
 0x1a5   :  { %3473 = vmatpush3.msra.mxu0 %v376_v20  ;;  %7182 = vst [vmem:[#allocation33_spill] sm:$0xff] %v4725_v3  ;;  %v389_v20 = vld [vmem:[%s7069_s10 + $0xc0] sm:$0xff]  ;;  %v1126_v3 = vmul.f32 %v4381_v41, %v849_v42  ;;  %v4757_v56 = vrot.slane %v2006_v46, %v2001_v43  ;;  %3593 = vset.pattern.permute.xlu1 %v7168_v13 }
 0x1a6   :  { %3474 = vmatprep.subr.mxu0 %v391_v52  ;;  %v373_v52 = vld [vmem:[%s7069_s10 + $0x40] sm:$0xff]  ;;  %963 = vperm.xlu1 %3593, %v4609_v51  }
 0x1a7   :  { %3475 = vmatpush3.msra.mxu0 %v375_v25  ;;  %v1125_v25 = vmul.f32 %v4378_v38, %v849_v42  ;;  %v371_v42 = vld [vmem:[%s7069_s10 + $0x30] sm:$0xff]  ;;  %7184 = vst [vmem:[#allocation35_spill] sm:$0xff] %v4757_v56 }
 0x1a8   :  { %3476 = vmatprep.subr.mxu0 %v390_v23  ;;  %v372_v23 = vld [vmem:[%s7069_s10 + $0x38] sm:$0xff]  ;;  %v1295_v1 = vpop.permute.xlu1 %1294 }
 0x1a9   :  { %3477 = vmatpush3.msra.mxu0 %v374_v26  ;;  %v1527_v10 = vmul.f32 %v4384_v44, %v1295_v1  ;;  %v1528_v26 = vmul.f32 %v4387_v45, %v1295_v1 }
 0x1aa   :  { %3478 = vmatprep.subr.mxu0 %v389_v20  ;;  %v4755_v20 = vrot.slane %v2002_v6, %v2001_v43  ;;  %v385_v6 = vld [vmem:[%s7069_s10 + $0xa0] sm:$0xff]  ;;  %3594 = vset.pattern.permute.xlu1 %v7174_v31 }
 0x1ab   :  { %3479 = vmatpush3.msra.mxu0 %v373_v52  ;;  %v386_v52 = vld [vmem:[%s7069_s10 + $0xa8] sm:$0xff]  ;;  %v1655_v40 = vadd.f32 %v1527_v10, %v1125_v25  ;;  %v1656_v9 = vadd.f32 %v1528_v26, %v1126_v3  ;;  %v384_v25 = vld [vmem:[%s7069_s10 + $0x98] sm:$0xff]  ;;  %1916 = vperm.xlu1 %3594, %v4609_v51   ;;  %v381_v51 = vld [vmem:[%s7069_s10 + $0x80] sm:$0xff] }
 0x1ac   :  { %3480 = vmatprep.subr.mxu0 %v388_v34  ;;  %7183 = vst [vmem:[#allocation34_spill] sm:$0xff] %v4755_v20  ;;  %v1825_v1 = vpop.permute.xlu1 %1824  ;;  %v662_v3 = vld [vmem:[%s7152_s22 + $0x168] sm:$0xff]  ;;  %v369_v34 = vld [vmem:[%s7069_s10 + $0x20] sm:$0xff]  ;;  %v368_v10 = vld [vmem:[%s7069_s10 + $0x18] sm:$0xff] }
 0x1ad   :  { %3481 = vmatpush3.msra.mxu0 %v372_v23  ;;  %v2057_v46 = vmul.f32 %v4755_v20, %v1825_v1  ;;  %v2058_v43 = vmul.f32 %v4757_v56, %v1825_v1 }
 0x1ae   :  { %3482 = vmatprep.subr.mxu0 %v387_v59 }
 0x1af   :  { %3483 = vmatpush3.msra.mxu0 %v371_v42  ;;  %v4782_v23 = vadd.f32 %v2057_v46, %v1655_v40  ;;  %v4784_v59 = vadd.f32 %v2058_v43, %v1656_v9  ;;  %v726_v42 = vadd.f32 %v662_v3, %v4177_v58  ;;  %v367_v9 = vld [vmem:[%s7069_s10 + $0x10] sm:$0xff]  ;;  %v382_v58 = vld [vmem:[%s7069_s10 + $0x88] sm:$0xff]  ;;  %v365_v46 = vld [vmem:[%s7069_s10] sm:$0xff]  ;;  %3595 = vset.pattern.permute.xlu1 %v7168_v13 }
 0x1b0   :  { %3484 = vmatprep.subr.mxu0 %v386_v52  ;;  %v4789_v26 = vpop.permute.xlu1 %1298  ;;  %v383_v52 = vld [vmem:[%s7069_s10 + $0x90] sm:$0xff]  ;;  %968 = vperm.xlu1 %3595, %v4627_v55  }
 0x1b1   :  { %3485 = vmatpush3.msra.mxu0 %v370_v2  ;;  %7185 = vst [vmem:[#allocation36_spill] sm:$0xff] %v4782_v23  ;;  %7186 = vst [vmem:[#allocation37_spill] sm:$0xff] %v4784_v59  ;;  %v663_v40 = vld [vmem:[%s7152_s22 + $0x170] sm:$0xff]  ;;  %973 = vperm.xlu0 %3596, %v726_v42   ;;  %v366_v2 = vld [vmem:[%s7069_s10 + $0x8] sm:$0xff] }
 0x1b2   :  { %3486 = vmatprep.subr.mxu0 %v385_v6  ;;  %v4813_v6 = vadd.f32 %v663_v40, %v4192_v62  ;;  %v667_v43 = vld [vmem:[%s7152_s22 + $0x190] sm:$0xff]  ;;  %v7187_v40 = vmax.f32 %v4640_v39, 0.0 }
 0x1b3   :  { %3487 = vmatpush3.msra.mxu0 %v369_v34 }
 0x1b4   :  { %3488 = vmatprep.subr.mxu0 %v384_v25  ;;  %v859_v1 = vpop.permute.xlu1 %858  ;;  %3597 = vset.pattern.permute.xlu1 %v7174_v31 }
 0x1b5   :  { %3489 = vmatpush3.msra.mxu0 %v368_v10  ;;  %v1129_v3 = vmul.f32 %v4378_v38, %v859_v1  ;;  %v1130_v34 = vmul.f32 %v4381_v41, %v859_v1  ;;  %978 = vperm.xlu0 %3596, %v4813_v6  }
 0x1b6   :  { %3490 = vmatprep.subr.mxu0 %v383_v52  ;;  %v4829_v52 = vadd.f32 %v667_v43, %v4225_v60  ;;  %v7188_v60 = vmov 0.0   ;;  %1920 = vperm.xlu1 %3597, %v4627_v55   ;;  %v1091_v43 = vmul.f32 %v4378_v38, %v4422_v47 }
 0x1b7   :  { %3491 = vmatpush3.msra.mxu0 %v367_v9  ;;  %v1092_v9 = vmul.f32 %v4381_v41, %v4422_v47 }
 0x1b8   :  { %3492 = vmatprep.subr.mxu0 %v382_v58  ;;  %v1303_v62 = vpop.permute.xlu1 %1302  ;;  %v668_v58 = vld [vmem:[%s7152_s22 + $0x198] sm:$0xff] }
 0x1b9   :  { %3493 = vmatpush3.msra.mxu0 %v366_v2  ;;  %v1531_v25 = vmul.f32 %v4384_v44, %v1303_v62  ;;  %v1532_v10 = vmul.f32 %v4387_v45, %v1303_v62  ;;  %v1494_v2 = vmul.f32 %v4387_v45, %v4541_v16  ;;  %998 = vperm.xlu0 %3596, %v4829_v52  }
 0x1ba   :  { %3494 = vmatprep.subr.mxu0 %v381_v51  ;;  %v4851_v39 = vadd.f32 %v668_v58, %v4243_v18  ;;  %3598 = vset.pattern.permute.xlu1 %v7170_v35  ;;  %v2023_v18 = vmul.f32 %v4755_v20, %v4435_v12  ;;  %v664_v58 = vld [vmem:[%s7152_s22 + $0x178] sm:$0xff] }
 0x1bb   :  { %3495 = vmatpush3.msra.mxu0 %v365_v46  ;;  %v4840_v1 = vadd.f32 %v1531_v25, %v1129_v3  ;;  %v4842_v51 = vadd.f32 %v1532_v10, %v1130_v34  ;;  %v1493_v3 = vmul.f32 %v4384_v44, %v4541_v16  ;;  %v2024_v34 = vmul.f32 %v4757_v56, %v4435_v12  ;;  %v4859_v25 = vpop.permute.xlu0 %853 }
 0x1bc   :  { %469 = vmatmul.mubr.f32.vlgmr.msra.gmra.mxu0 %v7187_v40  ;;  %v4847_v46 = vpop.permute.xlu1 %863  ;;  %v1622_v62 = vadd.f32 %v1494_v2, %v1092_v9  ;;  %1394 = vperm.xlu1 %3598, %v726_v42   ;;  %v1093_v12 = vmul.f32 %v4378_v38, %v4439_v57  ;;  %v1094_v2 = vmul.f32 %v4381_v41, %v4439_v57 }
 0x1bd   :  { %578 = vmatprep.mubr.f32.mxu0 %v7188_v60  ;;  %1003 = vperm.xlu0 %3596, %v4851_v39   ;;  %v1621_v47 = vadd.f32 %v1493_v3, %v1091_v43  ;;  %v1495_v60 = vmul.f32 %v4384_v44, %v4550_v30  ;;  %v1496_v43 = vmul.f32 %v4387_v45, %v4550_v30 }
 0x1be   :  { %v4867_v10 = vadd.f32 %v2024_v34, %v1622_v62  ;;  %v2025_v30 = vmul.f32 %v4755_v20, %v4449_v17 }
 0x1bf   :  { %v874_v9 = vpop.permute.xlu0 %873  ;;  %v4874_v40 = vadd.f32 %v2023_v18, %v1621_v47  ;;  %v1623_v18 = vadd.f32 %v1495_v60, %v1093_v12  ;;  %v1624_v47 = vadd.f32 %v1496_v43, %v1094_v2  ;;  %v1497_v60 = vmul.f32 %v4384_v44, %v4456_v63 }
 0x1c0   :  { %v4862_v55 = vpop.permute.xlu1 %1836  ;;  %7189 = vst [vmem:[#allocation38_spill] sm:$0xff] %v4867_v10  ;;  %3599 = vset.pattern.permute.xlu1 %v7174_v31  ;;  %v1135_v34 = vmul.f32 %v4378_v38, %v874_v9  ;;  %v1136_v57 = vmul.f32 %v4381_v41, %v874_v9  ;;  %v1095_v43 = vmul.f32 %v4378_v38, %v4591_v24 }
 0x1c1   :  { %3609 = vset.pattern.permute.xlu0 %v7174_v31  ;;  %1924 = vperm.xlu1 %3599, %v726_v42   ;;  %7190 = vst [vmem:[#allocation39_spill] sm:$0xff] %v4874_v40  ;;  %v3642_v42 = vld [vmem:[%s7151_s4 + $0x78] sm:$0xff] }
 0x1c2   :  { %1908 = vperm.xlu0 %3609, %v4666_v14   ;;  %v728_v3 = vadd.f32 %v3642_v42, %v664_v58 }
 0x1c3   :  { %v4896_v62 = vpop.permute.xlu0 %878 }
 0x1c4   :  { %v4869_v16 = vpop.permute.xlu1 %868 }
 0x1c5   :  { %3600 = vset.pattern.permute.xlu1 %v7170_v35 }
 0x1c6   :  { %1912 = vperm.xlu0 %3609, %v4696_v5   ;;  %1398 = vperm.xlu1 %3600, %v4813_v6   ;;  %v2026_v5 = vmul.f32 %v4757_v56, %v4449_v17 }
 0x1c7   :  { %v4911_v17 = vpop.permute.xlu0 %1748 }
 0x1c8   :  { %v4887_v14 = vpop.permute.xlu1 %1840  ;;  %v4907_v10 = vadd.f32 %v2026_v5, %v1624_v47 }
 0x1c9   :  { %7191 = vst [vmem:[#allocation40_spill] sm:$0xff] %v4887_v14  ;;  %v4909_v14 = vadd.f32 %v2025_v30, %v1623_v18  ;;  %v2028_v18 = vmul.f32 %v4757_v56, %v4467_v8 }
 0x1ca   :  { %1928 = vperm.xlu0 %3609, %v4813_v6   ;;  %3601 = vset.pattern.permute.xlu1 %v7168_v13  ;;  %7192 = vst [vmem:[#allocation41_spill] sm:$0xff] %v4907_v10  ;;  %v665_v6 = vld [vmem:[%s7152_s22 + $0x180] sm:$0xff] }
 0x1cb   :  { %983 = vperm.xlu1 %3601, %v728_v3   ;;  %7193 = vst [vmem:[#allocation42_spill] sm:$0xff] %v4909_v14  ;;  %v4936_v5 = vpop.permute.xlu0 %1752 }
 0x1cc   :  { %v1315_v23 = vpop.permute.xlu1 %1314 }
 0x1cd   :  { %v1537_v59 = vmul.f32 %v4384_v44, %v1315_v23  ;;  %v1538_v58 = vmul.f32 %v4387_v45, %v1315_v23  ;;  %v1498_v23 = vmul.f32 %v4387_v45, %v4456_v63  ;;  %v3643_v63 = vld [vmem:[%s7151_s4 + $0x80] sm:$0xff] }
 0x1ce   :  { %1932 = vperm.xlu0 %3609, %v728_v3  }
 0x1cf   :  { %v1665_v9 = vadd.f32 %v1537_v59, %v1135_v34  ;;  %v1666_v42 = vadd.f32 %v1538_v58, %v1136_v57  ;;  %v1096_v59 = vmul.f32 %v4381_v41, %v4591_v24  ;;  %v669_v57 = vld [vmem:[%s7152_s22 + $0x1a0] sm:$0xff]  ;;  %3602 = vset.pattern.permute.xlu1 %v7170_v35  ;;  %v729_v24 = vadd.f32 %v3643_v63, %v665_v6  ;;  %v4955_v6 = vpop.permute.xlu0 %1768 }
 0x1d0   :  { %v1845_v40 = vpop.permute.xlu1 %1844  ;;  %1402 = vperm.xlu1 %3602, %v728_v3   ;;  %v3644_v58 = vld [vmem:[%s7151_s4 + $0xa0] sm:$0xff]  ;;  %v2027_v3 = vmul.f32 %v4755_v20, %v4467_v8 }
 0x1d1   :  { %v2067_v12 = vmul.f32 %v4755_v20, %v1845_v40  ;;  %v2068_v2 = vmul.f32 %v4757_v56, %v1845_v40  ;;  %v1626_v47 = vadd.f32 %v1498_v23, %v1096_v59 }
 0x1d2   :  { %1948 = vperm.xlu0 %3609, %v4851_v39  }
 0x1d3   :  { %v4926_v34 = vadd.f32 %v2067_v12, %v1665_v9  ;;  %v4928_v40 = vadd.f32 %v2068_v2, %v1666_v42  ;;  %v4947_v9 = vadd.f32 %v3644_v58, %v669_v57  ;;  %v1625_v42 = vadd.f32 %v1497_v60, %v1095_v43  ;;  %v673_v12 = vld [vmem:[%s7152_s22 + $0x1c0] sm:$0xff]  ;;  %v674_v57 = vld [vmem:[%s7152_s22 + $0x1c8] sm:$0xff] }
 0x1d4   :  { %v4934_v30 = vpop.permute.xlu1 %1318  ;;  %3603 = vset.pattern.permute.xlu1 %v7168_v13  ;;  %v4958_v23 = vadd.f32 %v2028_v18, %v1626_v47  ;;  %v4961_v59 = vadd.f32 %v673_v12, %v4289_v33  ;;  %v666_v58 = vld [vmem:[%s7152_s22 + $0x188] sm:$0xff]  ;;  %v1509_v47 = vmul.f32 %v4384_v44, %v4548_v61  ;;  %v1108_v12 = vmul.f32 %v4381_v41, %v4635_v48 }
 0x1d5   :  { %7194 = vst [vmem:[#allocation43_spill] sm:$0xff] %v4926_v34  ;;  %7195 = vst [vmem:[#allocation44_spill] sm:$0xff] %v4928_v40  ;;  %988 = vperm.xlu1 %3603, %v729_v24   ;;  %v4965_v43 = vadd.f32 %v2027_v3, %v1625_v42  ;;  %v1510_v3 = vmul.f32 %v4387_v45, %v4548_v61  ;;  %v1107_v42 = vmul.f32 %v4378_v38, %v4635_v48  ;;  %v1773_v61 = vpop.permute.xlu0 %1772 }
 0x1d6   :  { %1952 = vperm.xlu0 %3609, %v4947_v9   ;;  %7196 = vst [vmem:[#allocation45_spill] sm:$0xff] %v4958_v23  ;;  %v2031_v48 = vmul.f32 %v4755_v20, %v1773_v61  ;;  %v2032_v14 = vmul.f32 %v4757_v56, %v1773_v61 }
 0x1d7   :  { %7197 = vst [vmem:[#allocation46_spill] sm:$0xff] %v4965_v43  ;;  %v3646_v43 = vld [vmem:[%s7151_s4 + $0x88] sm:$0xff] }
 0x1d8   :  { %v884_v2 = vpop.permute.xlu1 %883  ;;  %v730_v23 = vadd.f32 %v3646_v43, %v666_v58 }
 0x1d9   :  { %v1139_v8 = vmul.f32 %v4378_v38, %v884_v2  ;;  %v1140_v60 = vmul.f32 %v4381_v41, %v884_v2  ;;  %3604 = vset.pattern.permute.xlu1 %v7174_v31  ;;  %v3645_v2 = vld [vmem:[%s7151_s4 + $0xc8] sm:$0xff] }
 0x1da   :  { %1968 = vperm.xlu0 %3609, %v4961_v59   ;;  %1936 = vperm.xlu1 %3604, %v729_v24  }
 0x1dc   :  { %v1323_v63 = vpop.permute.xlu1 %1322 }
 0x1dd   :  { %v1541_v18 = vmul.f32 %v4384_v44, %v1323_v63  ;;  %v1542_v33 = vmul.f32 %v4387_v45, %v1323_v63  ;;  %v4988_v63 = vadd.f32 %v3645_v2, %v674_v57  ;;  %v1637_v57 = vadd.f32 %v1509_v47, %v1107_v42 }
 0x1de   :  { %3605 = vset.pattern.permute.xlu1 %v7168_v13  ;;  %v1117_v47 = vmul.f32 %v4378_v38, %v4705_v28 }
 0x1df   :  { %v4990_v34 = vadd.f32 %v1541_v18, %v1139_v8  ;;  %v4992_v40 = vadd.f32 %v1542_v33, %v1140_v60  ;;  %1972 = vperm.xlu0 %3609, %v4988_v63   ;;  %v1638_v8 = vadd.f32 %v1510_v3, %v1108_v12  ;;  %v5003_v60 = vadd.f32 %v2031_v48, %v4498_v53  ;;  %v1789_v33 = vpop.permute.xlu0 %1788 }
 0x1e0   :  { %v4999_v10 = vpop.permute.xlu1 %888  ;;  %v5006_v18 = vadd.f32 %v2032_v14, %v4500_v22  ;;  %993 = vperm.xlu1 %3605, %v730_v23   ;;  %v2039_v43 = vmul.f32 %v4755_v20, %v1789_v33  ;;  %v2040_v58 = vmul.f32 %v4757_v56, %v1789_v33  ;;  %v1118_v53 = vmul.f32 %v4381_v41, %v4705_v28  ;;  %v670_v33 = vld [vmem:[%s7152_s22 + $0x1a8] sm:$0xff] }
 0x1e1   :  { %7198 = vst [vmem:[#allocation47_spill] sm:$0xff] %v5003_v60  ;;  %v1519_v22 = vmul.f32 %v4384_v44, %v4614_v49  ;;  %v1520_v14 = vmul.f32 %v4387_v45, %v4614_v49 }
 0x1e2   :  { %7199 = vst [vmem:[#allocation48_spill] sm:$0xff] %v5006_v18  ;;  %v5022_v3 = vadd.f32 %v2039_v43, %v1637_v57  ;;  %v5024_v42 = vadd.f32 %v2040_v58, %v1638_v8  ;;  %v3647_v58 = vld [vmem:[%s7151_s4 + $0xa8] sm:$0xff]  ;;  %v1141_v18 = vmul.f32 %v4378_v38, %v4999_v10 }
 0x1e3   :  { %3622 = vset.pattern.permute.xlu0 %v7170_v35  ;;  %v1793_v12 = vpop.permute.xlu0 %1792  ;;  %v1647_v49 = vadd.f32 %v1519_v22, %v1117_v47  ;;  %v1648_v57 = vadd.f32 %v1520_v14, %v1118_v53  ;;  %v1529_v53 = vmul.f32 %v4384_v44, %v4789_v26  ;;  %v1530_v22 = vmul.f32 %v4387_v45, %v4789_v26 }
 0x1e4   :  { %v5011_v2 = vpop.permute.xlu1 %1856  ;;  %7200 = vst [vmem:[#allocation49_spill] sm:$0xff] %v5022_v3  ;;  %7201 = vst [vmem:[#allocation50_spill] sm:$0xff] %v5024_v42  ;;  %1406 = vperm.xlu0 %3622, %v729_v24   ;;  %3606 = vset.pattern.permute.xlu1 %v7174_v31  ;;  %v2041_v61 = vmul.f32 %v4755_v20, %v1793_v12  ;;  %v2042_v28 = vmul.f32 %v4757_v56, %v1793_v12 }
 0x1e5   :  { %1940 = vperm.xlu1 %3606, %v730_v23   ;;  %v5043_v12 = vadd.f32 %v3647_v58, %v670_v33  ;;  %v1503_v33 = vmul.f32 %v4384_v44, %v4558_v37  ;;  %v1504_v26 = vmul.f32 %v4387_v45, %v4558_v37 }
 0x1e6   :  { %v5035_v8 = vadd.f32 %v2041_v61, %v4565_v19  ;;  %v5038_v24 = vadd.f32 %v2042_v28, %v4567_v32  ;;  %v671_v19 = vld [vmem:[%s7152_s22 + $0x1b0] sm:$0xff]  ;;  %v1127_v32 = vmul.f32 %v4378_v38, %v4859_v25  ;;  %v1101_v28 = vmul.f32 %v4378_v38, %v4502_v21 }
 0x1e7   :  { %v1809_v43 = vpop.permute.xlu0 %1808 }
 0x1e8   :  { %v5029_v48 = vpop.permute.xlu1 %893  ;;  %7202 = vst [vmem:[#allocation51_spill] sm:$0xff] %v5035_v8  ;;  %7203 = vst [vmem:[#allocation52_spill] sm:$0xff] %v5038_v24  ;;  %1410 = vperm.xlu0 %3622, %v730_v23   ;;  %v2049_v3 = vmul.f32 %v4755_v20, %v1809_v43  ;;  %v2050_v42 = vmul.f32 %v4757_v56, %v1809_v43  ;;  %v1128_v23 = vmul.f32 %v4381_v41, %v4859_v25 }
 0x1e9   :  { %3607 = vset.pattern.permute.xlu1 %v7170_v35  ;;  %v1102_v25 = vmul.f32 %v4381_v41, %v4502_v21  ;;  %v675_v21 = vld [vmem:[%s7152_s22 + $0x1d0] sm:$0xff] }
 0x1ea   :  { %v5061_v14 = vadd.f32 %v2049_v3, %v1647_v49  ;;  %v5063_v61 = vadd.f32 %v2050_v42, %v1648_v57  ;;  %1414 = vperm.xlu1 %3607, %v4829_v52   ;;  %v3648_v42 = vld [vmem:[%s7151_s4 + $0xb0] sm:$0xff]  ;;  %v1658_v8 = vadd.f32 %v1530_v22, %v1128_v23 }
 0x1eb   :  { %v1813_v3 = vpop.permute.xlu0 %1812  ;;  %v5078_v49 = vadd.f32 %v3648_v42, %v671_v19  ;;  %v2033_v19 = vmul.f32 %v4755_v20, %v4512_v50  ;;  %v1631_v42 = vadd.f32 %v1503_v33, %v1101_v28  ;;  %v1632_v60 = vadd.f32 %v1504_v26, %v1102_v25 }
 0x1ec   :  { %v5047_v47 = vpop.permute.xlu1 %1860  ;;  %7204 = vst [vmem:[#allocation53_spill] sm:$0xff] %v5063_v61  ;;  %1426 = vperm.xlu0 %3622, %v5043_v12   ;;  %v2051_v57 = vmul.f32 %v4755_v20, %v1813_v3  ;;  %v2052_v43 = vmul.f32 %v4757_v56, %v1813_v3  ;;  %v1657_v61 = vadd.f32 %v1529_v53, %v1127_v32 }
 0x1ed   :  { %v2034_v3 = vmul.f32 %v4757_v56, %v4512_v50  ;;  %v676_v50 = vld [vmem:[%s7152_s22 + $0x1d8] sm:$0xff]  ;;  %v1138_v28 = vmul.f32 %v4381_v41, %v4896_v62  ;;  %v1539_v25 = vmul.f32 %v4384_v44, %v4934_v30  ;;  %v1540_v33 = vmul.f32 %v4387_v45, %v4934_v30 }
 0x1ee   :  { %v5088_v37 = vadd.f32 %v2051_v57, %v4650_v4  ;;  %v5091_v24 = vadd.f32 %v2052_v43, %v4652_v11  ;;  %3608 = vset.pattern.permute.xlu1 %v7174_v31  ;;  %v3649_v4 = vld [vmem:[%s7151_s4 + $0xd0] sm:$0xff] }
 0x1ef   :  { %1944 = vperm.xlu1 %3608, %v4829_v52   ;;  %v1829_v32 = vpop.permute.xlu0 %1828  ;;  %v5103_v11 = vadd.f32 %v3649_v4, %v675_v21  ;;  %v1137_v52 = vmul.f32 %v4378_v38, %v4896_v62  ;;  %v5126_v21 = vadd.f32 %v2034_v3, %v1632_v60  ;;  %v3650_v62 = vld [vmem:[%s7151_s4 + $0xd8] sm:$0xff]  ;;  %v1103_v60 = vmul.f32 %v4378_v38, %v4521_v29 }
 0x1f0   :  { %v5082_v58 = vpop.permute.xlu1 %1334  ;;  %1430 = vperm.xlu0 %3622, %v5078_v49   ;;  %v2059_v23 = vmul.f32 %v4755_v20, %v1829_v32  ;;  %v2060_v53 = vmul.f32 %v4757_v56, %v1829_v32  ;;  %v5128_v32 = vadd.f32 %v2033_v19, %v1631_v42  ;;  %v5133_v4 = vadd.f32 %v3650_v62, %v676_v50 }
 0x1f1   :  { %7205 = vst [vmem:[#allocation54_spill] sm:$0xff] %v5126_v21  ;;  %v1104_v19 = vmul.f32 %v4381_v41, %v4521_v29  ;;  %v1505_v3 = vmul.f32 %v4384_v44, %v4572_v36  ;;  %v1506_v42 = vmul.f32 %v4387_v45, %v4572_v36 }
 0x1f2   :  { %v5120_v26 = vadd.f32 %v2059_v23, %v1657_v61  ;;  %v5122_v57 = vadd.f32 %v2060_v53, %v1658_v8  ;;  %7206 = vst [vmem:[#allocation55_spill] sm:$0xff] %v5128_v32  ;;  %v1667_v23 = vadd.f32 %v1539_v25, %v1137_v52  ;;  %v1668_v53 = vadd.f32 %v1540_v33, %v1138_v28  ;;  %v3651_v52 = vld [vmem:[%s7151_s4 + $0xb8] sm:$0xff] }
 0x1f3   :  { %3610 = vset.pattern.permute.xlu1 %v7170_v35  ;;  %v1833_v43 = vpop.permute.xlu0 %1832  ;;  %v2035_v33 = vmul.f32 %v4755_v20, %v4525_v0  ;;  %v2038_v32 = vmul.f32 %v4757_v56, %v4543_v7 }
 0x1f4   :  { %v5107_v22 = vpop.permute.xlu1 %1864  ;;  %1446 = vperm.xlu0 %3622, %v5103_v11   ;;  %1418 = vperm.xlu1 %3610, %v4851_v39   ;;  %v2061_v30 = vmul.f32 %v4755_v20, %v1833_v43  ;;  %v2062_v8 = vmul.f32 %v4757_v56, %v1833_v43  ;;  %v672_v39 = vld [vmem:[%s7152_s22 + $0x1b8] sm:$0xff] }
 0x1f5   :  { %v5164_v28 = vadd.f32 %v3651_v52, %v672_v39 }
 0x1f6   :  { %v5152_v50 = vadd.f32 %v2061_v30, %v4840_v1  ;;  %v5155_v43 = vadd.f32 %v2062_v8, %v4842_v51  ;;  %v2036_v1 = vmul.f32 %v4757_v56, %v4525_v0  ;;  %v1634_v51 = vadd.f32 %v1506_v42, %v1104_v19 }
 0x1f7   :  { %v1849_v29 = vpop.permute.xlu0 %1848  ;;  %v1633_v30 = vadd.f32 %v1505_v3, %v1103_v60  ;;  %v1507_v0 = vmul.f32 %v4384_v44, %v4534_v54  ;;  %v1508_v60 = vmul.f32 %v4387_v45, %v4534_v54  ;;  %v1105_v3 = vmul.f32 %v4378_v38, %v4622_v15  ;;  %v498_v54 = vld [vmem:[%s7072_s13 + $0x78] sm:$0xff] }
 0x1f8   :  { %v5138_v61 = vpop.permute.xlu1 %1338  ;;  %7207 = vst [vmem:[#allocation56_spill] sm:$0xff] %v5152_v50  ;;  %1450 = vperm.xlu0 %3622, %v5133_v4   ;;  %3611 = vset.pattern.permute.xlu1 %v7168_v13  ;;  %v2069_v62 = vmul.f32 %v4755_v20, %v1849_v29  ;;  %v2070_v36 = vmul.f32 %v4757_v56, %v1849_v29 }
 0x1f9   :  { %1008 = vperm.xlu1 %3611, %v4947_v9   ;;  %v5178_v19 = vadd.f32 %v2036_v1, %v1634_v51  ;;  %v5181_v42 = vadd.f32 %v2035_v33, %v1633_v30  ;;  %v1635_v30 = vadd.f32 %v1507_v0, %v1105_v3  ;;  %530 = vmatprep.subr.mxu0 %v498_v54  ;;  %v492_v54 = vld [vmem:[%s7072_s13 + $0x48] sm:$0xff] }
 0x1fa   :  { %v5171_v8 = vadd.f32 %v2069_v62, %v1667_v23  ;;  %v5173_v29 = vadd.f32 %v2070_v36, %v1668_v53  ;;  %v1106_v23 = vmul.f32 %v4381_v41, %v4622_v15 }
 0x1fb   :  { %v1853_v39 = vpop.permute.xlu0 %1852  ;;  %7210 = vst [vmem:[#allocation59_spill] sm:$0xff] %v5178_v19  ;;  %7211 = vst [vmem:[#allocation60_spill] sm:$0xff] %v5181_v42  ;;  %v2037_v19 = vmul.f32 %v4755_v20, %v4543_v7  ;;  %v493_v7 = vld [vmem:[%s7072_s13 + $0x50] sm:$0xff] }
 0x1fc   :  { %v909_v25 = vpop.permute.xlu1 %908  ;;  %7208 = vst [vmem:[#allocation57_spill] sm:$0xff] %v5171_v8  ;;  %7209 = vst [vmem:[#allocation58_spill] sm:$0xff] %v5173_v29  ;;  %3626 = vset.pattern.permute.xlu0 %v7168_v13  ;;  %v2071_v36 = vmul.f32 %v4755_v20, %v1853_v39  ;;  %v2072_v1 = vmul.f32 %v4757_v56, %v1853_v39  ;;  %v1636_v42 = vadd.f32 %v1508_v60, %v1106_v23 }
 0x1fd   :  { %1023 = vperm.xlu0 %3626, %v5164_v28   ;;  %3612 = vset.pattern.permute.xlu1 %v7170_v35  ;;  %v1150_v62 = vmul.f32 %v4381_v41, %v909_v25 }
 0x1fe   :  { %1422 = vperm.xlu1 %3612, %v4947_v9   ;;  %v1149_v9 = vmul.f32 %v4378_v38, %v909_v25  ;;  %v497_v25 = vld [vmem:[%s7072_s13 + $0x70] sm:$0xff]  ;;  %v5210_v39 = vadd.f32 %v2071_v36, %v4990_v34 }
 0x1ff   :  { %v5192_v53 = vpop.permute.xlu0 %1868  ;;  %531 = vmatpush1.msra.mxu0 %v497_v25  ;;  %v5250_v25 = vadd.f32 %v2038_v32, %v1636_v42  ;;  %v488_v32 = vld [vmem:[%s7072_s13 + $0x28] sm:$0xff]  ;;  %v487_v42 = vld [vmem:[%s7072_s13 + $0x20] sm:$0xff] }
 0x200   :  { %v1343_v52 = vpop.permute.xlu1 %1342  ;;  %7213 = vst [vmem:[#allocation62_spill] sm:$0xff] %v5210_v39 }
 0x201   :  { %1028 = vperm.xlu0 %3626, %v4961_v59   ;;  %v1551_v15 = vmul.f32 %v4384_v44, %v1343_v52  ;;  %v1552_v33 = vmul.f32 %v4387_v45, %v1343_v52  ;;  %v496_v52 = vld [vmem:[%s7072_s13 + $0x68] sm:$0xff]  ;;  %7218 = vst [vmem:[#allocation67_spill] sm:$0xff] %v5250_v25 }
 0x202   :  { %3613 = vset.pattern.permute.xlu1 %v7168_v13  ;;  %532 = vmatprep.subr.mxu0 %v496_v52  ;;  %v5252_v52 = vadd.f32 %v2037_v19, %v1635_v30 }
 0x203   :  { %1013 = vperm.xlu1 %3613, %v5043_v12   ;;  %v1679_v0 = vadd.f32 %v1551_v15, %v1149_v9  ;;  %v1680_v60 = vadd.f32 %v1552_v33, %v1150_v62  ;;  %v1873_v34 = vpop.permute.xlu0 %1872  ;;  %v491_v33 = vld [vmem:[%s7072_s13 + $0x40] sm:$0xff] }
 0x204   :  { %v5198_v51 = vpop.permute.xlu1 %913  ;;  %v2081_v3 = vmul.f32 %v4755_v20, %v1873_v34  ;;  %v2082_v23 = vmul.f32 %v4757_v56, %v1873_v34  ;;  %7219 = vst [vmem:[#allocation68_spill] sm:$0xff] %v5252_v52  ;;  %v486_v34 = vld [vmem:[%s7072_s13 + $0x18] sm:$0xff] }
 0x205   :  { %7212 = vst [vmem:[#allocation61_spill] sm:$0xff] %v5198_v51  ;;  %v5213_v51 = vadd.f32 %v2072_v1, %v4992_v40  ;;  %v495_v40 = vld [vmem:[%s7072_s13 + $0x60] sm:$0xff]  ;;  %v494_v1 = vld [vmem:[%s7072_s13 + $0x58] sm:$0xff] }
 0x206   :  { %v5236_v9 = vadd.f32 %v2081_v3, %v1679_v0  ;;  %v5238_v62 = vadd.f32 %v2082_v23, %v1680_v60  ;;  %533 = vmatpush1.msra.mxu0 %v495_v40  ;;  %v490_v60 = vld [vmem:[%s7072_s13 + $0x38] sm:$0xff]  ;;  %v485_v40 = vld [vmem:[%s7072_s13 + $0x10] sm:$0xff]  ;;  %v1111_v3 = vmul.f32 %v4378_v38, %v4569_v27  ;;  %v1112_v23 = vmul.f32 %v4381_v41, %v4569_v27 }
 0x207   :  { %7214 = vst [vmem:[#allocation63_spill] sm:$0xff] %v5213_v51  ;;  %3614 = vset.pattern.permute.xlu1 %v7174_v31  ;;  %534 = vmatprep.subr.mxu0 %v494_v1  ;;  %v5245_v15 = vpop.permute.xlu0 %1888  ;;  %v484_v1 = vld [vmem:[%s7072_s13 + $0x8] sm:$0xff] }
 0x208   :  { %v5228_v36 = vpop.permute.xlu1 %1876  ;;  %7216 = vst [vmem:[#allocation65_spill] sm:$0xff] %v5236_v9  ;;  %7217 = vst [vmem:[#allocation66_spill] sm:$0xff] %v5238_v62  ;;  %1956 = vperm.xlu1 %3614, %v5043_v12   ;;  %535 = vmatpush1.msra.mxu0 %v493_v7  ;;  %v489_v12 = vld [vmem:[%s7072_s13 + $0x30] sm:$0xff] }
 0x209   :  { %7215 = vst [vmem:[#allocation64_spill] sm:$0xff] %v5228_v36  ;;  %536 = vmatprep.subr.mxu0 %v492_v54  ;;  %v7222_v7 = vld [vmem:[#allocation22_spill] sm:$0xff] }
 0x20a   :  { %537 = vmatpush1.msra.mxu0 %v491_v33  ;;  %v2043_v54 = vmul.f32 %v4755_v20, %v7222_v7 }
 0x20b   :  { %538 = vmatprep.subr.mxu0 %v490_v60  ;;  %v5266_v19 = vpop.permute.xlu0 %1892  ;;  %v483_v60 = vld [vmem:[%s7072_s13] sm:$0xff] }
 0x20c   :  { %v5254_v0 = vpop.permute.xlu1 %918  ;;  %3615 = vset.pattern.permute.xlu1 %v7168_v13  ;;  %539 = vmatpush1.msra.mxu0 %v489_v12  ;;  %v2044_v12 = vmul.f32 %v4757_v56, %v7222_v7  ;;  %v2092_v51 = vmul.f32 %v4757_v56, %v5266_v19 }
 0x20d   :  { %7220 = vst [vmem:[#allocation69_spill] sm:$0xff] %v5254_v0  ;;  %1018 = vperm.xlu1 %3615, %v5078_v49   ;;  %540 = vmatprep.subr.mxu0 %v488_v32 }
 0x20e   :  { %541 = vmatpush1.msra.mxu0 %v487_v42 }
 0x20f   :  { %542 = vmatprep.subr.mxu0 %v486_v34  ;;  %v1267_v33 = vpop.permute.xlu0 %1266  ;;  %v7224_v34 = vld [vmem:[#allocation24_spill] sm:$0xff] }
 0x210   :  { %v5272_v30 = vpop.permute.xlu1 %1880  ;;  %v1513_v32 = vmul.f32 %v4384_v44, %v1267_v33  ;;  %v1514_v27 = vmul.f32 %v4387_v45, %v1267_v33  ;;  %543 = vmatpush1.msra.mxu0 %v485_v40  ;;  %v1114_v0 = vmul.f32 %v4381_v41, %v7224_v34  ;;  %v677_v40 = vld [vmem:[%s7152_s22 + $0x1e0] sm:$0xff]  ;;  %v7225_v33 = vld [vmem:[#allocation25_spill] sm:$0xff] }
 0x211   :  { %7221 = vst [vmem:[#allocation70_spill] sm:$0xff] %v5272_v30  ;;  %3616 = vset.pattern.permute.xlu1 %v7174_v31  ;;  %544 = vmatprep.subr.mxu0 %v484_v1  ;;  %v1113_v30 = vmul.f32 %v4378_v38, %v7224_v34  ;;  %v2045_v52 = vmul.f32 %v4755_v20, %v7225_v33  ;;  %v678_v34 = vld [vmem:[%s7152_s22 + $0x1e8] sm:$0xff] }
 0x212   :  { %1960 = vperm.xlu1 %3616, %v5078_v49   ;;  %v1641_v36 = vadd.f32 %v1513_v32, %v1111_v3  ;;  %v1642_v7 = vadd.f32 %v1514_v27, %v1112_v23  ;;  %545 = vmatpush1.msra.mxu0 %v483_v60  ;;  %v2046_v1 = vmul.f32 %v4757_v56, %v7225_v33 }
 0x213   :  { %v1271_v49 = vpop.permute.xlu0 %1270 }
 0x214   :  { %v5297_v42 = vpop.permute.xlu1 %1354  ;;  %v5316_v3 = vadd.f32 %v2043_v54, %v1641_v36  ;;  %v5318_v23 = vadd.f32 %v2044_v12, %v1642_v7  ;;  %v1515_v32 = vmul.f32 %v4384_v44, %v1271_v49  ;;  %v1516_v27 = vmul.f32 %v4387_v45, %v1271_v49 }
 0x215   :  { %7223 = vst [vmem:[#allocation22_spill] sm:$0xff] %v5297_v42  ;;  %v3652_v42 = vld [vmem:[%s7151_s4 + $0xe0] sm:$0xff] }
 0x216   :  { %v5314_v25 = vadd.f32 %v3652_v42, %v677_v40  ;;  %7226 = vst [vmem:[#allocation24_spill] sm:$0xff] %v5316_v3  ;;  %7227 = vst [vmem:[#allocation25_spill] sm:$0xff] %v5318_v23  ;;  %3617 = vset.pattern.permute.xlu1 %v7170_v35  ;;  %v7229_v42 = vld [vmem:[#allocation29_spill] sm:$0xff]  ;;  %v1643_v12 = vadd.f32 %v1515_v32, %v1113_v30  ;;  %v1644_v7 = vadd.f32 %v1516_v27, %v1114_v0  ;;  %v7230_v40 = vld [vmem:[#allocation31_spill] sm:$0xff] }
 0x217   :  { %v1121_v36 = vmul.f32 %v4378_v38, %v7229_v42  ;;  %v1122_v54 = vmul.f32 %v4381_v41, %v7229_v42  ;;  %1434 = vperm.xlu1 %3617, %v5164_v28   ;;  %v2053_v33 = vmul.f32 %v4755_v20, %v7230_v40  ;;  %v2054_v49 = vmul.f32 %v4757_v56, %v7230_v40  ;;  %v3653_v3 = vld [vmem:[%s7151_s4 + $0xe8] sm:$0xff] }
 0x218   :  { %v5320_v60 = vpop.permute.xlu1 %1884  ;;  %1048 = vperm.xlu0 %3626, %v5314_v25   ;;  %v5341_v23 = vadd.f32 %v3653_v3, %v678_v34  ;;  %v5345_v42 = vadd.f32 %v2045_v52, %v1643_v12  ;;  %v5347_v62 = vadd.f32 %v2046_v1, %v1644_v7  ;;  %v7233_v32 = vld [vmem:[#allocation32_spill] sm:$0xff]  ;;  %v7234_v52 = vld [vmem:[#allocation33_spill] sm:$0xff] }
 0x219   :  { %7228 = vst [vmem:[#allocation71_spill] sm:$0xff] %v5320_v60  ;;  %v1287_v60 = vpop.permute.xlu0 %1286  ;;  %v1123_v27 = vmul.f32 %v4378_v38, %v7233_v32  ;;  %v1124_v40 = vmul.f32 %v4381_v41, %v7233_v32  ;;  %v2055_v1 = vmul.f32 %v4755_v20, %v7234_v52  ;;  %v2056_v12 = vmul.f32 %v4757_v56, %v7234_v52 }
 0x21a   :  { %7231 = vst [vmem:[#allocation29_spill] sm:$0xff] %v5345_v42  ;;  %7232 = vst [vmem:[#allocation31_spill] sm:$0xff] %v5347_v62  ;;  %v1523_v0 = vmul.f32 %v4384_v44, %v1287_v60  ;;  %v1524_v30 = vmul.f32 %v4387_v45, %v1287_v60 }
 0x21b   :  { %3618 = vset.pattern.permute.xlu1 %v7174_v31 }
 0x21c   :  { %v5343_v9 = vpop.permute.xlu1 %1358  ;;  %1053 = vperm.xlu0 %3626, %v5341_v23   ;;  %v1651_v3 = vadd.f32 %v1523_v0, %v1121_v36  ;;  %v1652_v34 = vadd.f32 %v1524_v30, %v1122_v54  ;;  %1964 = vperm.xlu1 %3618, %v5164_v28   ;;  %v679_v36 = vld [vmem:[%s7152_s22 + $0x1f0] sm:$0xff]  ;;  %v1131_v54 = vmul.f32 %v4378_v38, %v4847_v46 }
 0x21d   :  { %v1291_v60 = vpop.permute.xlu0 %1290  ;;  %v1132_v28 = vmul.f32 %v4381_v41, %v4847_v46  ;;  %v2064_v30 = vmul.f32 %v4757_v56, %v4862_v55  ;;  %v3654_v46 = vld [vmem:[%s7151_s4 + $0xf0] sm:$0xff] }
 0x21e   :  { %v5362_v42 = vadd.f32 %v2053_v33, %v1651_v3  ;;  %v5364_v62 = vadd.f32 %v2054_v49, %v1652_v34  ;;  %v1525_v32 = vmul.f32 %v4384_v44, %v1291_v60  ;;  %v1526_v39 = vmul.f32 %v4387_v45, %v1291_v60 }
 0x21f   :  { %v2063_v33 = vmul.f32 %v4755_v20, %v4862_v55  ;;  %v5387_v60 = vadd.f32 %v3654_v46, %v679_v36 }
 0x220   :  { %v934_v7 = vpop.permute.xlu1 %933  ;;  %3631 = vset.pattern.permute.xlu0 %v7174_v31  ;;  %v1653_v49 = vadd.f32 %v1525_v32, %v1123_v27  ;;  %v1654_v0 = vadd.f32 %v1526_v39, %v1124_v40  ;;  %3619 = vset.pattern.permute.xlu1 %v7170_v35  ;;  %v2091_v32 = vmul.f32 %v4755_v20, %v5266_v19 }
 0x221   :  { %1988 = vperm.xlu0 %3631, %v5341_v23   ;;  %v1159_v3 = vmul.f32 %v4378_v38, %v934_v7  ;;  %v1160_v34 = vmul.f32 %v4381_v41, %v934_v7  ;;  %v1307_v52 = vpop.permute.xlu0 %1306  ;;  %1438 = vperm.xlu1 %3619, %v4961_v59   ;;  %v1133_v59 = vmul.f32 %v4378_v38, %v4869_v16 }
 0x222   :  { %v5390_v27 = vadd.f32 %v2055_v1, %v1653_v49  ;;  %v5392_v40 = vadd.f32 %v2056_v12, %v1654_v0  ;;  %v1533_v55 = vmul.f32 %v4384_v44, %v1307_v52  ;;  %v1534_v7 = vmul.f32 %v4387_v45, %v1307_v52  ;;  %v680_v0 = vld [vmem:[%s7152_s22 + $0x1f8] sm:$0xff]  ;;  %v7235_v52 = vld [vmem:[#allocation40_spill] sm:$0xff] }
 0x223   :  { %v1134_v1 = vmul.f32 %v4381_v41, %v4869_v16  ;;  %v2065_v19 = vmul.f32 %v4755_v20, %v7235_v52 }
 0x224   :  { %v1363_v39 = vpop.permute.xlu1 %1362  ;;  %v1661_v12 = vadd.f32 %v1533_v55, %v1131_v54  ;;  %v1662_v49 = vadd.f32 %v1534_v7, %v1132_v28 }
 0x225   :  { %v1561_v36 = vmul.f32 %v4384_v44, %v1363_v39  ;;  %v1562_v46 = vmul.f32 %v4387_v45, %v1363_v39  ;;  %1992 = vperm.xlu0 %3631, %v5387_v60   ;;  %v2066_v39 = vmul.f32 %v4757_v56, %v7235_v52  ;;  %v1311_v29 = vpop.permute.xlu0 %1310  ;;  %3620 = vset.pattern.permute.xlu1 %v7168_v13 }
 0x226   :  { %v5417_v54 = vadd.f32 %v2063_v33, %v1661_v12  ;;  %v5419_v28 = vadd.f32 %v2064_v30, %v1662_v49  ;;  %v1535_v55 = vmul.f32 %v4384_v44, %v1311_v29  ;;  %v1536_v7 = vmul.f32 %v4387_v45, %v1311_v29  ;;  %1033 = vperm.xlu1 %3620, %v4988_v63   ;;  %v3655_v33 = vld [vmem:[%s7151_s4 + $0xf8] sm:$0xff]  ;;  %v2604_v29 = vld [vmem:[%s7074_s15 + $0xf0] sm:$0xff] }
 0x227   :  { %v1689_v21 = vadd.f32 %v1561_v36, %v1159_v3  ;;  %v1690_v8 = vadd.f32 %v1562_v46, %v1160_v34  ;;  %v5433_v34 = vadd.f32 %v3655_v33, %v680_v0  ;;  %v2605_v30 = vld [vmem:[%s7074_s15 + $0xf8] sm:$0xff]  ;;  %v2602_v36 = vld [vmem:[%s7074_s15 + $0xe0] sm:$0xff]  ;;  %v2073_v46 = vmul.f32 %v4755_v20, %v5011_v2 }
 0x228   :  { %v5415_v16 = vpop.permute.xlu1 %938  ;;  %2650 = vmatprep.subr.mxu1 %v2605_v30  ;;  %v2074_v12 = vmul.f32 %v4757_v56, %v5011_v2  ;;  %v2601_v2 = vld [vmem:[%s7074_s15 + $0xd8] sm:$0xff] }
 0x229   :  { %v5425_v50 = vadd.f32 %v2091_v32, %v1689_v21  ;;  %v5427_v3 = vadd.f32 %v2092_v51, %v1690_v8  ;;  %v2603_v21 = vld [vmem:[%s7074_s15 + $0xe8] sm:$0xff]  ;;  %v1142_v8 = vmul.f32 %v4381_v41, %v4999_v10  ;;  %v1663_v51 = vadd.f32 %v1535_v55, %v1133_v59  ;;  %3635 = vset.pattern.permute.xlu0 %v7170_v35  ;;  %v1327_v49 = vpop.permute.xlu0 %1326 }
 0x22a   :  { %v1664_v32 = vadd.f32 %v1536_v7, %v1134_v1  ;;  %1466 = vperm.xlu0 %3635, %v5433_v34   ;;  %2651 = vmatpush1.msra.mxu1 %v2604_v29  ;;  %v1543_v0 = vmul.f32 %v4384_v44, %v1327_v49  ;;  %v1544_v52 = vmul.f32 %v4387_v45, %v1327_v49  ;;  %v2598_v29 = vld [vmem:[%s7074_s15 + $0xc0] sm:$0xff]  ;;  %v2597_v49 = vld [vmem:[%s7074_s15 + $0xb8] sm:$0xff] }
 0x22b   :  { %7236 = vst [vmem:[#allocation32_spill] sm:$0xff] %v5425_v50  ;;  %7237 = vst [vmem:[#allocation33_spill] sm:$0xff] %v5427_v3  ;;  %v5457_v59 = vadd.f32 %v2065_v19, %v1663_v51  ;;  %2652 = vmatprep.subr.mxu1 %v2603_v21  ;;  %v1143_v55 = vmul.f32 %v4378_v38, %v5029_v48  ;;  %3621 = vset.pattern.permute.xlu1 %v7170_v35  ;;  %v2600_v19 = vld [vmem:[%s7074_s15 + $0xd0] sm:$0xff] }
 0x22c   :  { %v5455_v10 = vpop.permute.xlu1 %1896  ;;  %v5459_v1 = vadd.f32 %v2066_v39, %v1664_v32  ;;  %2653 = vmatpush1.msra.mxu1 %v2602_v36  ;;  %v2599_v39 = vld [vmem:[%s7074_s15 + $0xc8] sm:$0xff]  ;;  %v1144_v7 = vmul.f32 %v4381_v41, %v5029_v48  ;;  %1442 = vperm.xlu1 %3621, %v4988_v63   ;;  %v1671_v33 = vadd.f32 %v1543_v0, %v1141_v18 }
 0x22d   :  { %v1672_v30 = vadd.f32 %v1544_v52, %v1142_v8  ;;  %2654 = vmatprep.subr.mxu1 %v2601_v2  ;;  %v2075_v21 = vmul.f32 %v4755_v20, %v5047_v47  ;;  %v2076_v51 = vmul.f32 %v4757_v56, %v5047_v47  ;;  %v1331_v32 = vpop.permute.xlu0 %1330  ;;  %v2596_v47 = vld [vmem:[%s7074_s15 + $0xb0] sm:$0xff]  ;;  %v2594_v52 = vld [vmem:[%s7074_s15 + $0xa0] sm:$0xff] }
 0x22e   :  { %2655 = vmatpush1.msra.mxu1 %v2600_v19  ;;  %3638 = vset.pattern.permute.xlu0 %v7168_v13  ;;  %v5486_v36 = vadd.f32 %v2073_v46, %v1671_v33  ;;  %v1545_v18 = vmul.f32 %v4384_v44, %v1331_v32  ;;  %v1546_v8 = vmul.f32 %v4387_v45, %v1331_v32  ;;  %v2595_v46 = vld [vmem:[%s7074_s15 + $0xa8] sm:$0xff] }
 0x22f   :  { %v5488_v63 = vadd.f32 %v2074_v12, %v1672_v30  ;;  %2656 = vmatprep.subr.mxu1 %v2599_v39  ;;  %v7242_v30 = vld [vmem:[#allocation26_spill] sm:$0xff] }
 0x230   :  { %v944_v48 = vpop.permute.xlu1 %943  ;;  %7238 = vst [vmem:[#allocation40_spill] sm:$0xff] %v5486_v36  ;;  %2657 = vmatpush1.msra.mxu1 %v2598_v29  ;;  %3623 = vset.pattern.permute.xlu1 %v7168_v13  ;;  %v1673_v12 = vadd.f32 %v1545_v18, %v1143_v55  ;;  %v1674_v0 = vadd.f32 %v1546_v8, %v1144_v7  ;;  %v7243_v7 = vld [vmem:[#allocation30_spill] sm:$0xff]  ;;  %v7245_v8 = vld [vmem:[#allocation28_spill] sm:$0xff] }
 0x231   :  { %2658 = vmatprep.subr.mxu1 %v2597_v49  ;;  %1038 = vperm.xlu1 %3623, %v5103_v11   ;;  %v5506_v2 = vpop.permute.xlu0 %1346  ;;  %v1518_v55 = vmul.f32 %v4387_v45, %v7242_v30  ;;  %v1116_v29 = vmul.f32 %v4381_v41, %v7243_v7  ;;  %v1517_v32 = vmul.f32 %v4384_v44, %v7242_v30 }
 0x232   :  { %7239 = vst [vmem:[#allocation72_spill] sm:$0xff] %v5506_v2  ;;  %2659 = vmatpush1.msra.mxu1 %v2596_v47  ;;  %v5508_v39 = vadd.f32 %v2075_v21, %v1673_v12  ;;  %v5510_v33 = vadd.f32 %v2076_v51, %v1674_v0  ;;  %v1115_v18 = vmul.f32 %v4378_v38, %v7243_v7  ;;  %v2592_v12 = vld [vmem:[%s7074_s15 + $0x90] sm:$0xff] }
 0x233   :  { %2660 = vmatprep.subr.mxu1 %v2595_v46  ;;  %v2048_v49 = vmul.f32 %v4757_v56, %v7245_v8  ;;  %v1646_v47 = vadd.f32 %v1518_v55, %v1116_v29  ;;  %v2593_v46 = vld [vmem:[%s7074_s15 + $0x98] sm:$0xff]  ;;  %v1161_v0 = vmul.f32 %v4378_v38, %v5415_v16  ;;  %v2047_v30 = vmul.f32 %v4755_v20, %v7245_v8  ;;  %v2590_v29 = vld [vmem:[%s7074_s15 + $0x80] sm:$0xff]  ;;  %v2588_v8 = vld [vmem:[%s7074_s15 + $0x70] sm:$0xff] }
 0x234   :  { %v1901_v19 = vpop.permute.xlu1 %1900  ;;  %7240 = vst [vmem:[#allocation73_spill] sm:$0xff] %v5508_v39  ;;  %7241 = vst [vmem:[#allocation74_spill] sm:$0xff] %v5510_v33  ;;  %2661 = vmatpush1.msra.mxu1 %v2594_v52  ;;  %v2591_v52 = vld [vmem:[%s7074_s15 + $0x88] sm:$0xff]  ;;  %v1645_v55 = vadd.f32 %v1517_v32, %v1115_v18  ;;  %v2589_v18 = vld [vmem:[%s7074_s15 + $0x78] sm:$0xff]  ;;  %v1164_v50 = vmul.f32 %v4381_v41, %v944_v48 }
 0x235   :  { %3624 = vset.pattern.permute.xlu1 %v7174_v31  ;;  %v5521_v21 = vpop.permute.xlu0 %1350  ;;  %2662 = vmatprep.subr.mxu1 %v2593_v46  ;;  %v2095_v33 = vmul.f32 %v4755_v20, %v1901_v19 }
 0x236   :  { %7244 = vst [vmem:[#allocation26_spill] sm:$0xff] %v5521_v21  ;;  %1976 = vperm.xlu1 %3624, %v5103_v11   ;;  %v1162_v11 = vmul.f32 %v4381_v41, %v5415_v16  ;;  %2663 = vmatpush1.msra.mxu1 %v2592_v12  ;;  %v2093_v21 = vmul.f32 %v4755_v20, %v5455_v10 }
 0x237   :  { %v2094_v16 = vmul.f32 %v4757_v56, %v5455_v10  ;;  %2664 = vmatprep.subr.mxu1 %v2591_v52  ;;  %v5562_v10 = vadd.f32 %v2048_v49, %v1646_v47  ;;  %v1163_v12 = vmul.f32 %v4378_v38, %v944_v48  ;;  %v2096_v52 = vmul.f32 %v4757_v56, %v1901_v19  ;;  %v2586_v49 = vld [vmem:[%s7074_s15 + $0x60] sm:$0xff]  ;;  %v2585_v19 = vld [vmem:[%s7074_s15 + $0x58] sm:$0xff] }
 0x238   :  { %v5524_v51 = vpop.permute.xlu1 %1374  ;;  %2665 = vmatpush1.msra.mxu1 %v2590_v29  ;;  %v5574_v47 = vadd.f32 %v2047_v30, %v1645_v55  ;;  %v2584_v30 = vld [vmem:[%s7074_s15 + $0x50] sm:$0xff]  ;;  %v2582_v55 = vld [vmem:[%s7074_s15 + $0x40] sm:$0xff] }
 0x239   :  { %v1367_v7 = vpop.permute.xlu0 %1366  ;;  %7246 = vst [vmem:[#allocation30_spill] sm:$0xff] %v5562_v10  ;;  %2666 = vmatprep.subr.mxu1 %v2589_v18 }
 0x23a   :  { %3625 = vset.pattern.permute.xlu1 %v7168_v13  ;;  %v1563_v2 = vmul.f32 %v4384_v44, %v1367_v7  ;;  %v1564_v32 = vmul.f32 %v4387_v45, %v1367_v7  ;;  %v2587_v7 = vld [vmem:[%s7074_s15 + $0x68] sm:$0xff]  ;;  %7247 = vst [vmem:[#allocation28_spill] sm:$0xff] %v5574_v47  ;;  %2667 = vmatpush1.msra.mxu1 %v2588_v8 }
 0x23b   :  { %1043 = vperm.xlu1 %3625, %v5133_v4   ;;  %2668 = vmatprep.subr.mxu1 %v2587_v7 }
 0x23c   :  { %v5551_v46 = vpop.permute.xlu1 %1904  ;;  %v1691_v3 = vadd.f32 %v1563_v2, %v1161_v0  ;;  %v1692_v39 = vadd.f32 %v1564_v32, %v1162_v11  ;;  %2669 = vmatpush1.msra.mxu1 %v2586_v49 }
 0x23d   :  { %v1371_v36 = vpop.permute.xlu0 %1370  ;;  %2670 = vmatprep.subr.mxu1 %v2585_v19 }
 0x23e   :  { %v5578_v2 = vadd.f32 %v2093_v21, %v1691_v3  ;;  %v5580_v0 = vadd.f32 %v2094_v16, %v1692_v39  ;;  %v1565_v11 = vmul.f32 %v4384_v44, %v1371_v36  ;;  %v1566_v29 = vmul.f32 %v4387_v45, %v1371_v36  ;;  %v2583_v36 = vld [vmem:[%s7074_s15 + $0x48] sm:$0xff]  ;;  %2671 = vmatpush1.msra.mxu1 %v2584_v30  ;;  %v2576_v30 = vld [vmem:[%s7074_s15 + $0x10] sm:$0xff] }
 0x23f   :  { %3627 = vset.pattern.permute.xlu1 %v7174_v31  ;;  %2672 = vmatprep.subr.mxu1 %v2583_v36  ;;  %v2077_v36 = vmul.f32 %v4755_v20, %v5107_v22 }
 0x240   :  { %v5576_v48 = vpop.permute.xlu1 %1378  ;;  %1980 = vperm.xlu1 %3627, %v5133_v4   ;;  %v1693_v3 = vadd.f32 %v1565_v11, %v1163_v12  ;;  %v1694_v39 = vadd.f32 %v1566_v29, %v1164_v50  ;;  %v2581_v4 = vld [vmem:[%s7074_s15 + $0x38] sm:$0xff]  ;;  %v2580_v50 = vld [vmem:[%s7074_s15 + $0x30] sm:$0xff]  ;;  %2673 = vmatpush1.msra.mxu1 %v2582_v55 }
 0x241   :  { %v1387_v21 = vpop.permute.xlu0 %1386  ;;  %2674 = vmatprep.subr.mxu1 %v2581_v4  ;;  %v2577_v11 = vld [vmem:[%s7074_s15 + $0x18] sm:$0xff] }
 0x242   :  { %v5598_v32 = vadd.f32 %v2095_v33, %v1693_v3  ;;  %v5600_v18 = vadd.f32 %v2096_v52, %v1694_v39  ;;  %v2579_v33 = vld [vmem:[%s7074_s15 + $0x28] sm:$0xff]  ;;  %v2578_v52 = vld [vmem:[%s7074_s15 + $0x20] sm:$0xff]  ;;  %2675 = vmatpush1.msra.mxu1 %v2580_v50  ;;  %v1547_v3 = vmul.f32 %v4384_v44, %v5082_v58  ;;  %v1548_v39 = vmul.f32 %v4387_v45, %v5082_v58 }
 0x243   :  { %2676 = vmatprep.subr.mxu1 %v2579_v33  ;;  %v1573_v55 = vmul.f32 %v4384_v44, %v1387_v21  ;;  %v1574_v33 = vmul.f32 %v4387_v45, %v1387_v21  ;;  %v2574_v58 = vld [vmem:[%s7074_s15] sm:$0xff]  ;;  %v2637_v21 = vld [vmem:[%s7074_s15 + $0x1f8] sm:$0xff] }
 0x244   :  { %v959_v16 = vpop.permute.xlu1 %958  ;;  %7248 = vst [vmem:[#allocation75_spill] sm:$0xff] %v5598_v32  ;;  %7249 = vst [vmem:[#allocation76_spill] sm:$0xff] %v5600_v18  ;;  %3628 = vset.pattern.permute.xlu1 %v7170_v35  ;;  %2677 = vmatpush1.msra.mxu1 %v2578_v52  ;;  %v2078_v52 = vmul.f32 %v4757_v56, %v5107_v22  ;;  %v1549_v22 = vmul.f32 %v4384_v44, %v5138_v61 }
 0x245   :  { %v1169_v8 = vmul.f32 %v4378_v38, %v959_v16  ;;  %v1170_v12 = vmul.f32 %v4381_v41, %v959_v16  ;;  %1454 = vperm.xlu1 %3628, %v5314_v25   ;;  %v5615_v7 = vpop.permute.xlu0 %1390  ;;  %v2575_v16 = vld [vmem:[%s7074_s15 + $0x8] sm:$0xff]  ;;  %2678 = vmatprep.subr.mxu1 %v2577_v11 }
 0x246   :  { %7250 = vst [vmem:[#allocation77_spill] sm:$0xff] %v5615_v7  ;;  %2679 = vmatpush1.msra.mxu1 %v2576_v30  ;;  %v2636_v30 = vld [vmem:[%s7074_s15 + $0x1f0] sm:$0xff] }
 0x247   :  { %2680 = vmatprep.subr.mxu1 %v2575_v16 }
 0x248   :  { %v1383_v49 = vpop.permute.xlu1 %1382  ;;  %2681 = vmatpush1.msra.mxu1 %v2574_v58 }
 0x249   :  { %v1571_v29 = vmul.f32 %v4384_v44, %v1383_v49  ;;  %v1572_v19 = vmul.f32 %v4387_v45, %v1383_v49  ;;  %3629 = vset.pattern.permute.xlu1 %v7174_v31  ;;  %v899_v49 = vpop.permute.xlu0 %898  ;;  %2682 = vmatprep.subr.mxu1 %v2637_v21 }
 0x24a   :  { %1984 = vperm.xlu1 %3629, %v5314_v25   ;;  %v1550_v25 = vmul.f32 %v4387_v45, %v5138_v61  ;;  %v2635_v61 = vld [vmem:[%s7074_s15 + $0x1e8] sm:$0xff]  ;;  %2683 = vmatpush2.msra.mxu1 %v2636_v30  ;;  %v2628_v30 = vld [vmem:[%s7074_s15 + $0x1b0] sm:$0xff] }
 0x24b   :  { %v5638_v4 = vadd.f32 %v1571_v29, %v1169_v8  ;;  %v5640_v50 = vadd.f32 %v1572_v19, %v1170_v12  ;;  %v1145_v8 = vmul.f32 %v4378_v38, %v899_v49  ;;  %v1146_v12 = vmul.f32 %v4381_v41, %v899_v49  ;;  %2684 = vmatprep.subr.mxu1 %v2635_v61 }
 0x24c   :  { %v964_v47 = vpop.permute.xlu1 %963  ;;  %v2079_v49 = vmul.f32 %v4755_v20, %v5192_v53 }
 0x24d   :  { %v1171_v11 = vmul.f32 %v4378_v38, %v964_v47  ;;  %v1172_v29 = vmul.f32 %v4381_v41, %v964_v47  ;;  %v1675_v19 = vadd.f32 %v1547_v3, %v1145_v8  ;;  %v1676_v10 = vadd.f32 %v1548_v39, %v1146_v12  ;;  %v904_v18 = vpop.permute.xlu0 %903 }
 0x24e   :  { %v2080_v47 = vmul.f32 %v4757_v56, %v5192_v53  ;;  %3630 = vset.pattern.permute.xlu1 %v7170_v35  ;;  %v1147_v8 = vmul.f32 %v4378_v38, %v904_v18  ;;  %v1148_v12 = vmul.f32 %v4381_v41, %v904_v18  ;;  %v2634_v53 = vld [vmem:[%s7074_s15 + $0x1e0] sm:$0xff]  ;;  %v2632_v18 = vld [vmem:[%s7074_s15 + $0x1d0] sm:$0xff] }
 0x24f   :  { %v1701_v16 = vadd.f32 %v1573_v55, %v1171_v11  ;;  %v1702_v32 = vadd.f32 %v1574_v33, %v1172_v29  ;;  %v5672_v39 = vadd.f32 %v2077_v36, %v1675_v19  ;;  %v5674_v58 = vadd.f32 %v2078_v52, %v1676_v10  ;;  %1458 = vperm.xlu1 %3630, %v5341_v23   ;;  %v2633_v10 = vld [vmem:[%s7074_s15 + $0x1d8] sm:$0xff]  ;;  %v2631_v23 = vld [vmem:[%s7074_s15 + $0x1c8] sm:$0xff] }
 0x250   :  { %v1917_v3 = vpop.permute.xlu1 %1916  ;;  %v1677_v36 = vadd.f32 %v1549_v22, %v1147_v8  ;;  %v1678_v52 = vadd.f32 %v1550_v25, %v1148_v12  ;;  %2685 = vmatpush2.msra.mxu1 %v2634_v53  ;;  %v2630_v25 = vld [vmem:[%s7074_s15 + $0x1c0] sm:$0xff]  ;;  %v1567_v8 = vmul.f32 %v4384_v44, %v5524_v51  ;;  %v2624_v12 = vld [vmem:[%s7074_s15 + $0x190] sm:$0xff] }
 0x251   :  { %v2103_v55 = vmul.f32 %v4755_v20, %v1917_v3  ;;  %v2104_v33 = vmul.f32 %v4757_v56, %v1917_v3  ;;  %v5694_v29 = vpop.permute.xlu0 %923  ;;  %2686 = vmatprep.subr.mxu1 %v2633_v10  ;;  %v2625_v3 = vld [vmem:[%s7074_s15 + $0x198] sm:$0xff]  ;;  %v3424_v53 = vld [vmem:[%s7068_s9] ss:$0 sm:$0xff]  ;;  %s3706_s9 = smov [#allocation2]  }
 0x252   :  { %7253 = vst [vmem:[#allocation80_spill] sm:$0xff] %v5694_v29  ;;  %v5699_v19 = vadd.f32 %v2079_v49, %v1677_v36  ;;  %v5701_v22 = vadd.f32 %v2080_v47, %v1678_v52  ;;  %2687 = vmatpush2.msra.mxu1 %v2632_v18  ;;  %v2627_v47 = vld [vmem:[%s7074_s15 + $0x1a8] sm:$0xff]  ;;  %v2098_v18 = vmul.f32 %v4757_v56, %v5551_v46  ;;  %s3397_s25 = sshll.u32 %s3706_s9, 4  ;;  %s3398_s25 = int_to_ptr.vmem [resolvable:$true] %s3397_s25 }
 0x253   :  { %v5690_v21 = vadd.f32 %v2103_v55, %v1701_v16  ;;  %v5692_v11 = vadd.f32 %v2104_v33, %v1702_v32  ;;  %3632 = vset.pattern.permute.xlu1 %v7168_v13  ;;  %v2629_v32 = vld [vmem:[%s7074_s15 + $0x1b8] sm:$0xff]  ;;  %2688 = vmatprep.subr.mxu1 %v2631_v23  ;;  %v2626_v16 = vld [vmem:[%s7074_s15 + $0x1a0] sm:$0xff]  ;;  %v1568_v33 = vmul.f32 %v4387_v45, %v5524_v51  ;;  %p3661_p1 = scmp.lt.s32.totalorder %s3398_s25, %s3398_s25 }
 0x254   :  { %1058 = vperm.xlu1 %3632, %v5387_v60   ;;  %2689 = vmatpush2.msra.mxu1 %v2630_v25 }
 0x255   :  { %7251 = vst [vmem:[#allocation78_spill] sm:$0xff] %v5690_v21  ;;  %7252 = vst [vmem:[#allocation79_spill] sm:$0xff] %v5692_v11  ;;  %v5714_v49 = vpop.permute.xlu0 %928  ;;  %2690 = vmatprep.subr.mxu1 %v2629_v32  ;;  %v2020_v21 = vmul.f32 %v4757_v56, %v4911_v17 }
 0x256   :  { %2691 = vmatpush2.msra.mxu1 %v2628_v30 }
 0x257   :  { %2692 = vmatprep.subr.mxu1 %v2627_v47  ;;  %v3425_v47 = vld [vmem:[%s7070_s11] ss:$0 sm:$0xff] }
 0x258   :  { %3633 = vset.pattern.permute.xlu1 %v7170_v35  ;;  %2693 = vmatpush2.msra.mxu1 %v2626_v16  ;;  %v2097_v35 = vmul.f32 %v4755_v20, %v5551_v46 }
 0x259   :  { %1462 = vperm.xlu1 %3633, %v5387_v60   ;;  %v949_v10 = vpop.permute.xlu0 %948  ;;  %2694 = vmatprep.subr.mxu1 %v2625_v3 }
 0x25a   :  { %v1165_v52 = vmul.f32 %v4378_v38, %v949_v10  ;;  %v1166_v23 = vmul.f32 %v4381_v41, %v949_v10  ;;  %2695 = vmatpush2.msra.mxu1 %v2624_v12  ;;  %v2621_v10 = vld [vmem:[%s7074_s15 + $0x178] sm:$0xff] }
 0x25c   :  { %v3461_v61 = vpop.f32.mrf.mxu0  ;;  %v1695_v51 = vadd.f32 %v1567_v8, %v1165_v52  ;;  %v1696_v60 = vadd.f32 %v1568_v33, %v1166_v23  ;;  %v2622_v33 = vld [vmem:[%s7074_s15 + $0x180] sm:$0xff]  ;;  %v2616_v23 = vld [vmem:[%s7074_s15 + $0x150] sm:$0xff] }
 0x25d   :  { %3634 = vset.pattern.permute.xlu1 %v7168_v13  ;;  %v2618_v52 = vld [vmem:[%s7074_s15 + $0x160] sm:$0xff] }
 0x25e   :  { %v3462_v55 = vpop.f32.mrf.mxu0  ;;  %1063 = vperm.xlu1 %3634, %v5433_v34   ;;  %v5745_v32 = vadd.f32 %v2097_v35, %v1695_v51  ;;  %v5748_v30 = vadd.f32 %v2098_v18, %v1696_v60  ;;  %v2619_v35 = vld [vmem:[%s7074_s15 + $0x168] sm:$0xff]  ;;  %v2617_v18 = vld [vmem:[%s7074_s15 + $0x158] sm:$0xff]  ;;  %v2614_v51 = vld [vmem:[%s7074_s15 + $0x140] sm:$0xff] }
 0x25f   :  { %v3463_v36 = vadd.f32 %v3462_v55, %v3461_v61  ;;  %v2623_v55 = vld [vmem:[%s7074_s15 + $0x188] sm:$0xff]  ;;  %v2613_v60 = vld [vmem:[%s7074_s15 + $0x138] sm:$0xff] }
 0x260   :  { %7254 = vst [vmem:[#allocation81_spill] sm:$0xff] %v5745_v32  ;;  %2696 = vmatprep.subr.mxu1 %v2623_v55 }
 0x261   :  { %v362_v25 = vadd.f32 %v3463_v36, %v3424_v53  ;;  %2697 = vmatpush2.msra.mxu1 %v2622_v33  ;;  %v2620_v36 = vld [vmem:[%s7074_s15 + $0x170] sm:$0xff]  ;;  %v7257_v33 = vld [vmem:[#allocation11_spill] sm:$0xff] }
 0x262   :  { %3636 = vset.pattern.permute.xlu1 %v7174_v31  ;;  %v477_v31 = vld [vmem:[%s7255_s3] sm:$0x3]  ;;  %2698 = vmatprep.subr.mxu1 %v2621_v10  ;;  %s3656_s3 = scalar_lea.vmem %s3398_s25, 32 }
 0x263   :  { %475 = vst.msk [vmem:[#allocation2] sm:$0x3] %vm474_vm3, %v362_v25  ;;  %1996 = vperm.xlu1 %3636, %v5433_v34   ;;  %2699 = vmatpush2.msra.mxu1 %v2620_v36  ;;  %p3657_p0 = scmp.ne.s32.totalorder %s3398_s25, %s3656_s3  ;;  %p3662_p2 = scmp.lt.s32.totalorder %s3656_s3, %s3656_s3 }
 0x264   :  { %2700 = vmatprep.subr.mxu1 %v2619_v35 }
 0x265   :  { %2701 = vmatpush2.msra.mxu1 %v2618_v52  ;;  %v7258_v52 = vld [vmem:[#allocation21_spill] sm:$0xff]  ;;  %p3663_p3 = por %p3662_p2, %p3661_p1 }
 0x266   :  { %2702 = vmatprep.subr.mxu1 %v2617_v18  ;;  %v1487_v18 = vmul.f32 %v4384_v44, %v7258_v52 }
 0x267   :  { %3637 = vset.pattern.permute.xlu1 %v7168_v13  ;;  %2703 = vmatpush2.msra.mxu1 %v2616_v23  ;;  %v1488_v23 = vmul.f32 %v4387_v45, %v7258_v52  ;;  %p3664_p4 = pnand %p3663_p3, %p3657_p0 }
 0x27c   :  { %v3496_v46 = vpop.f32.mrf.mxu0 }
 0x27e   :  { %v3497_v16 = vpop.f32.mrf.mxu0 }
 0x27f   :  { %v3498_v61 = vadd.f32 %v3497_v16, %v3496_v46  ;;  %v2612_v46 = vld [vmem:[%s7074_s15 + $0x130] sm:$0xff]  ;;  %v2610_v16 = vld [vmem:[%s7074_s15 + $0x120] sm:$0xff] }
 0x281   :  { %v471_v3 = vadd.f32 %v3498_v61, %v3425_v47  ;;  %v2611_v47 = vld [vmem:[%s7074_s15 + $0x128] sm:$0xff]  ;;  %v2609_v61 = vld [vmem:[%s7074_s15 + $0x118] sm:$0xff] }
 0x283   :  { %v478_v8 = vmul.f32 0.5, %v471_v3  ;;  %476 = vst.msk [vmem:[#allocation4] sm:$0x3] %vm474_vm3, %v471_v3  ;;  %v2608_v3 = vld [vmem:[%s7074_s15 + $0x110] sm:$0xff] }
 0x285   :  { %v479_v12 = vmul.f32 1.442695, %v478_v8  ;;  %v2607_v8 = vld [vmem:[%s7074_s15 + $0x108] sm:$0xff] }
 0x287   :  { %3640 = vpow2.f32 %v479_v12  ;;  %v2606_v12 = vld [vmem:[%s7074_s15 + $0x100] sm:$0xff] }
 0x294   :  { %v3641_v34 = vpop.eup %3640 }
 0x295   :  { %v481_v53 = vmul.f32 %v3641_v34, %v477_v31  ;;  %v3705_v31 = vmov 1966171168  }
 0x296   :  { %v2277_v34 = vunpack.c.l.s4 %v3705_v31 }
 0x297   :  { %v482_v13 = vadd.f32 %v481_v53, %v362_v25  ;;  %v2615_v25 = vld [vmem:[%s7074_s15 + $0x148] sm:$0xff]  ;;  %v499_v53 = vld [vmem:[%s7073_s14] sm:$0x3] }
 0x298   :  { %2704 = vmatprep.subr.mxu1 %v2615_v25  ;;  %v508_v10 = vrot.slane %v499_v53, %v7257_v33  ;;  %v2278_v36 = vunpack.c.0.s8 %v2277_v34  ;;  %v7259_v25 = vld [vmem:[#allocation23_spill] sm:$0xff] }
 0x299   :  { %3426 = vmatmul.mubr.msk.f32.vlgmr.msra.gmra.mxu0 %vm179_vm2, %v482_v13  ;;  %2705 = vmatpush2.msra.mxu1 %v2614_v51  ;;  %v7256_v13 = vld [vmem:[#allocation10_spill] sm:$0xff]  ;;  %v1085_v51 = vmul.f32 %v4378_v38, %v7259_v25 }
 0x29a   :  { %2706 = vmatprep.subr.mxu1 %v2613_v60  ;;  %v504_v55 = vrot.slane %v499_v53, %v7256_v13 }
 0x29b   :  { %2707 = vmatpush2.msra.mxu1 %v2612_v46  ;;  %v1086_v46 = vmul.f32 %v4381_v41, %v7259_v25  ;;  %v1615_v34 = vadd.f32 %v1487_v18, %v1085_v51  ;;  %v7262_v51 = vld [vmem:[#allocation17_spill] sm:$0xff] }
 0x29c   :  { %2708 = vmatprep.subr.mxu1 %v2611_v47 }
 0x29d   :  { %2709 = vmatpush2.msra.mxu1 %v2610_v16  ;;  %v1616_v52 = vadd.f32 %v1488_v23, %v1086_v46  ;;  %v2019_v23 = vmul.f32 %v4755_v20, %v4911_v17 }
 0x29e   :  { %2710 = vmatprep.subr.mxu1 %v2609_v61  ;;  %v7260_v61 = vld [vmem:[#allocation8_spill] sm:$0xff] }
 0x29f   :  { %2711 = vmatpush2.msra.mxu1 %v2608_v3  ;;  %v2281_v3 = vsub.s32 %v2278_v36, %v7260_v61 }
 0x2a0   :  { %2712 = vmatprep.subr.mxu1 %v2607_v8 }
 0x2a1   :  { %2713 = vmatpush2.msra.mxu1 %v2606_v12  ;;  %v7261_v12 = vld [vmem:[#allocation9_spill] sm:$0xff] }
 0x2a2   :  { %v2017_v31 = vmul.f32 %v4755_v20, %v7261_v12  ;;  %v2018_v53 = vmul.f32 %v4757_v56, %v7261_v12 }
 0x2a4   :  { %v2145_v25 = vadd.f32 %v2017_v31, %v1615_v34  ;;  %v2146_v18 = vadd.f32 %v2018_v53, %v1616_v52  ;;  %v7266_v52 = vld [vmem:[#allocation18_spill] sm:$0xff] }
 0x359   :  { %v580_v35 = vpop.f32.mrf.mxu0 }
 0x35a   :  { %v581_v47 = vadd.f32 %v580_v35, %v504_v55  ;;  %v5835_v55 = vpop.permute.xlu0 %953 }
 0x35b   :  { %v582_v60 = vpop.f32.mrf.mxu0 }
 0x35c   :  { %v583_v16 = vadd.f32 %v582_v60, %v508_v10  ;;  %v2148_v60 = vadd.f32 %v2020_v21, %v7262_v51  ;;  %v7268_v51 = vld [vmem:[#allocation27_spill] sm:$0xff] }
 0x35e   :  { %v2275_v8 = vcombine.low %v581_v47, %v583_v16  ;;  %v7263_v16 = vld [vmem:[#allocation16_spill] sm:$0xff] }
 0x35f   :  { %v2147_v61 = vadd.f32 %v2019_v23, %v7263_v16 }
 0x360   :  { %v2282_v29 = vrot.slane %v2275_v8, %v2281_v3  ;;  %v7265_v8 = vld [vmem:[#allocation19_spill] sm:$0xff] }
 0x362   :  { %v2283_v11 = vcombine.high %v2282_v29, %v2282_v29  ;;  %v2290_v32 = vrot.slane %v2282_v29, %v2281_v3  ;;  %v2022_v29 = vmul.f32 %v4757_v56, %v4936_v5 }
 0x364   :  { %v5837_v10 = vrot.slane %v2283_v11, %v2281_v3  ;;  %v5840_v36 = vrot.slane %v2290_v32, %v7256_v13  ;;  %v5843_v35 = vrot.slane %v2290_v32, %v7257_v33  ;;  %v2021_v32 = vmul.f32 %v4755_v20, %v4936_v5  ;;  %v5856_v3 = vpop.permute.xlu0 %973 }
 0x365   :  { %7264 = vst [vmem:[#allocation21_spill] sm:$0xff] %v5856_v3  ;;  %v2150_v17 = vadd.f32 %v2022_v29, %v7265_v8  ;;  %v1097_v5 = vmul.f32 %v4378_v38, %v7268_v51  ;;  %v1098_v29 = vmul.f32 %v4381_v41, %v7268_v51  ;;  %v7282_v3 = vld [vmem:[#allocation48_spill] sm:$0xff] }
 0x366   :  { %v2319_v46 = vadd.f32 %v5843_v35, %v2146_v18  ;;  %v2318_v11 = vadd.f32 %v5840_v36, %v2145_v25  ;;  %v2321_v47 = vadd.f32 %v5843_v35, %v2148_v60  ;;  %v2320_v31 = vadd.f32 %v5840_v36, %v2147_v61  ;;  %v7267_v18 = vld [vmem:[#allocation20_spill] sm:$0xff]  ;;  %v7270_v61 = vld [vmem:[#allocation38_spill] sm:$0xff] }
 0x367   :  { %v2323_v53 = vadd.f32 %v5843_v35, %v2150_v17  ;;  %v2149_v25 = vadd.f32 %v2021_v32, %v7266_v52  ;;  %v1499_v23 = vmul.f32 %v4384_v44, %v7267_v18  ;;  %v1500_v60 = vmul.f32 %v4387_v45, %v7267_v18  ;;  %v7271_v52 = vld [vmem:[#allocation39_spill] sm:$0xff] }
 0x368   :  { %v2447_v12 = vmax.f32 %v2319_v46, 0.0  ;;  %v2446_v21 = vmax.f32 %v2318_v11, 0.0  ;;  %v2449_v34 = vmax.f32 %v2321_v47, 0.0  ;;  %v5870_v46 = vpop.permute.xlu0 %978  ;;  %v2448_v11 = vmax.f32 %v2320_v31, 0.0 }
 0x369   :  { %7269 = vst [vmem:[#allocation23_spill] sm:$0xff] %v5870_v46  ;;  %v2322_v47 = vadd.f32 %v5840_v36, %v2149_v25  ;;  %v2451_v16 = vmax.f32 %v2323_v53, 0.0  ;;  %v2325_v32 = vadd.f32 %v5843_v35, %v7270_v61  ;;  %v1627_v8 = vadd.f32 %v1499_v23, %v1097_v5  ;;  %v7272_v25 = vld [vmem:[#allocation41_spill] sm:$0xff] }
 0x36a   :  { %2714 = vmatprep.mubr.f32.mxu1 %v2447_v12  ;;  %v2029_v17 = vmul.f32 %v4755_v20, %v4955_v6  ;;  %v1628_v12 = vadd.f32 %v1500_v60, %v1098_v29  ;;  %v2324_v31 = vadd.f32 %v5840_v36, %v7271_v52  ;;  %v2327_v53 = vadd.f32 %v5843_v35, %v7272_v25  ;;  %v7278_v25 = vld [vmem:[#allocation46_spill] sm:$0xff] }
 0x36b   :  { %2715 = vmatmul.mubr.f32.vlgmr.msra.gmra.mxu1 %v2446_v21  ;;  %v2030_v21 = vmul.f32 %v4757_v56, %v4955_v6  ;;  %v2453_v18 = vmax.f32 %v2325_v32, 0.0  ;;  %v5887_v60 = vmul.f32 %v4755_v20, %v5245_v15  ;;  %v7274_v6 = vld [vmem:[#allocation42_spill] sm:$0xff]  ;;  %v7275_v32 = vld [vmem:[#allocation45_spill] sm:$0xff]  ;;  %v5913_v52 = vadd.f32 %v5843_v35, %v5091_v24 }
 0x36c   :  { %2720 = vmatprep.mubr.f32.mxu1 %v2449_v34  ;;  %v2450_v34 = vmax.f32 %v2322_v47, 0.0  ;;  %v5883_v51 = vpop.permute.xlu0 %998  ;;  %v2157_v23 = vadd.f32 %v2029_v17, %v1627_v8  ;;  %v2452_v29 = vmax.f32 %v2324_v31, 0.0  ;;  %v5893_v47 = vmul.f32 %v4757_v56, %v5245_v15 }
 0x36d   :  { %7273 = vst [vmem:[#allocation8_spill] sm:$0xff] %v5883_v51  ;;  %v2158_v5 = vadd.f32 %v2030_v21, %v1628_v12  ;;  %v2455_v61 = vmax.f32 %v2327_v53, 0.0  ;;  %v2329_v8 = vadd.f32 %v5843_v35, %v7275_v32  ;;  %v1560_v17 = vmul.f32 %v4387_v45, %v5343_v9  ;;  %v7279_v32 = vld [vmem:[#allocation37_spill] sm:$0xff] }
 0x36e   :  { %v1569_v12 = vmul.f32 %v4384_v44, %v5576_v48  ;;  %v1570_v21 = vmul.f32 %v4387_v45, %v5576_v48  ;;  %v5907_v15 = vadd.f32 %v5840_v36, %v5061_v14  ;;  %v5921_v31 = vadd.f32 %v5843_v35, %v5364_v62 }
 0x36f   :  { %2721 = vmatmul.mubr.f32.gmra.mxu1 %v2448_v11  ;;  %v2326_v11 = vadd.f32 %v5840_v36, %v7274_v6  ;;  %v5925_v48 = vadd.f32 %v5840_v36, %v5362_v42  ;;  %v5933_v24 = vmul.f32 %v4384_v44, %v5615_v7  ;;  %v2328_v53 = vadd.f32 %v5840_v36, %v7278_v25 }
 0x370   :  { %2726 = vmatprep.mubr.f32.mxu1 %v2451_v16  ;;  %v1559_v16 = vmul.f32 %v4384_v44, %v5343_v9  ;;  %v5917_v9 = vadd.f32 %v5840_v36, %v5088_v37  ;;  %v1157_v62 = vmul.f32 %v4378_v38, %v5714_v49  ;;  %v1158_v42 = vmul.f32 %v4381_v41, %v5714_v49  ;;  %v7288_v44 = vld [vmem:[#allocation54_spill] sm:$0xff] }
 0x371   :  { %v2454_v37 = vmax.f32 %v2326_v11, 0.0  ;;  %v2331_v6 = vadd.f32 %v5843_v35, %v2158_v5  ;;  %v5950_v11 = vadd.f32 %v5840_v36, %v5390_v27  ;;  %v5954_v25 = vadd.f32 %v5843_v35, %v7279_v32  ;;  %v7281_v5 = vld [vmem:[#allocation56_spill] sm:$0xff] }
 0x372   :  { %v5962_v49 = vadd.f32 %v5843_v35, %v5122_v57  ;;  %v5970_v27 = vadd.f32 %v5843_v35, %v5155_v43  ;;  %v2456_v57 = vmax.f32 %v2328_v53, 0.0  ;;  %v1687_v32 = vadd.f32 %v1559_v16, %v1157_v62  ;;  %v7285_v53 = vld [vmem:[#allocation58_spill] sm:$0xff]  ;;  %v7286_v62 = vld [vmem:[#allocation57_spill] sm:$0xff] }
 0x373   :  { %2727 = vmatmul.mubr.f32.gmra.mxu1 %v2450_v34  ;;  %v5909_v34 = vpop.permute.xlu1 %968  ;;  %v2459_v46 = vmax.f32 %v2331_v6, 0.0  ;;  %v2333_v43 = vadd.f32 %v5843_v35, %v7282_v3  ;;  %v7283_v3 = vld [vmem:[#allocation44_spill] sm:$0xff] }
 0x374   :  { %2732 = vmatprep.mubr.f32.mxu1 %v2453_v18  ;;  %7276 = vst [vmem:[#allocation9_spill] sm:$0xff] %v5909_v34  ;;  %v5929_v14 = vmul.f32 %v4378_v38, %v5909_v34  ;;  %v5935_v18 = vpop.permute.xlu0 %1003  ;;  %v5989_v34 = vadd.f32 %v5840_v36, %v5417_v54  ;;  %v6001_v16 = vadd.f32 %v5843_v35, %v7283_v3 }
 0x375   :  { %7277 = vst [vmem:[#allocation17_spill] sm:$0xff] %v5935_v18  ;;  %v7280_v18 = vld [vmem:[#allocation36_spill] sm:$0xff]  ;;  %v6009_v54 = vadd.f32 %v5843_v35, %v7285_v53  ;;  %v6019_v3 = vrot.slane %v5837_v10, %v7256_v13  ;;  %v2461_v53 = vmax.f32 %v2333_v43, 0.0  ;;  %v7292_v43 = vld [vmem:[#allocation74_spill] sm:$0xff] }
 0x376   :  { %v5958_v51 = vadd.f32 %v5840_v36, %v7280_v18  ;;  %v1167_v18 = vmul.f32 %v4378_v38, %v5835_v55  ;;  %v2335_v38 = vadd.f32 %v5843_v35, %v7288_v44  ;;  %v6045_v44 = vadd.f32 %v5843_v35, %v7292_v43  ;;  %v7297_v43 = vld [vmem:[#allocation55_spill] sm:$0xff] }
 0x377   :  { %2733 = vmatmul.mubr.f32.gmra.mxu1 %v2452_v29  ;;  %v2457_v29 = vmax.f32 %v2329_v8, 0.0  ;;  %v5974_v8 = vadd.f32 %v5840_v36, %v7281_v5  ;;  %v5985_v5 = vadd.f32 %v5843_v35, %v5419_v28  ;;  %v2334_v13 = vadd.f32 %v5840_v36, %v7297_v43 }
 0x378   :  { %2738 = vmatprep.mubr.f32.mxu1 %v2455_v61  ;;  %v5946_v61 = vadd.f32 %v5843_v35, %v5392_v40  ;;  %v5966_v40 = vadd.f32 %v5840_v36, %v5120_v26  ;;  %v1688_v26 = vadd.f32 %v1560_v17, %v1158_v42  ;;  %v1909_v7 = vpop.permute.xlu0 %1908  ;;  %v7284_v17 = vld [vmem:[#allocation43_spill] sm:$0xff]  ;;  %v1697_v42 = vadd.f32 %v1569_v12, %v1167_v18 }
 0x379   :  { %v6005_v28 = vadd.f32 %v5840_v36, %v7284_v17  ;;  %v6023_v17 = vrot.slane %v5837_v10, %v7257_v33  ;;  %v2463_v45 = vmax.f32 %v2335_v38, 0.0 }
 0x37b   :  { %2739 = vmatmul.mubr.f32.gmra.mxu1 %v2454_v37  ;;  %v1168_v37 = vmul.f32 %v4381_v41, %v5835_v55  ;;  %v5993_v55 = vadd.f32 %v5843_v35, %v5459_v1  ;;  %v6013_v1 = vadd.f32 %v5840_v36, %v7286_v62  ;;  %v7289_v62 = vld [vmem:[#allocation63_spill] sm:$0xff]  ;;  %v6067_v41 = vpop.permute.xlu1 %1920 }
 0x37c   :  { %2744 = vmatprep.mubr.f32.mxu1 %v2457_v29  ;;  %v2330_v29 = vadd.f32 %v5840_v36, %v2157_v23  ;;  %v5997_v23 = vadd.f32 %v5840_v36, %v5457_v59  ;;  %v6029_v12 = vadd.f32 %v5843_v35, %v7289_v62  ;;  %v6053_v62 = vadd.f32 %v5843_v35, %v5674_v58  ;;  %v7298_v58 = vld [vmem:[#allocation59_spill] sm:$0xff] }
 0x37d   :  { %v1698_v59 = vadd.f32 %v1570_v21, %v1168_v37  ;;  %v7290_v21 = vld [vmem:[#allocation62_spill] sm:$0xff]  ;;  %v6037_v37 = vadd.f32 %v5843_v35, %v5488_v63  ;;  %v6057_v63 = vadd.f32 %v5840_v36, %v5672_v39  ;;  %7299 = vst [vmem:[#allocation20_spill] sm:$0xff] %v6067_v41  ;;  %v6071_v39 = vadd.f32 %v5843_v35, %v5701_v22 }
 0x37e   :  { %v2458_v6 = vmax.f32 %v2330_v29, 0.0  ;;  %v6033_v18 = vadd.f32 %v5840_v36, %v7290_v21  ;;  %v7291_v29 = vld [vmem:[#allocation40_spill] sm:$0xff]  ;;  %7295 = vst [vmem:[#allocation19_spill] sm:$0xff] %v6053_v62  ;;  %v2099_v21 = vmul.f32 %v4755_v20, %v1909_v7  ;;  %v2337_v62 = vadd.f32 %v5843_v35, %v7298_v58 }
 0x37f   :  { %2745 = vmatmul.mubr.f32.gmra.mxu1 %v2456_v57  ;;  %v6041_v10 = vadd.f32 %v5840_v36, %v7291_v29  ;;  %7296 = vst [vmem:[#allocation18_spill] sm:$0xff] %v6057_v63  ;;  %v1913_v29 = vpop.permute.xlu0 %1912  ;;  %7300 = vst [vmem:[#allocation27_spill] sm:$0xff] %v6071_v39  ;;  %v2105_v58 = vmul.f32 %v4755_v20, %v6067_v41  ;;  %v2217_v22 = vadd.f32 %v5887_v60, %v1687_v32  ;;  %v7306_v39 = vld [vmem:[#allocation60_spill] sm:$0xff]  ;;  %v6119_v32 = vpop.permute.xlu1 %1394 }
 0x380   :  { %2750 = vmatprep.mubr.f32.mxu1 %v2459_v46  ;;  %v7287_v46 = vld [vmem:[#allocation47_spill] sm:$0xff] }
 0x381   :  { %v2332_v57 = vadd.f32 %v5840_v36, %v7287_v46  ;;  %v6101_v60 = vadd.f32 %v6019_v3, %v2217_v22 }
 0x383   :  { %2751 = vmatmul.mubr.f32.gmra.mxu1 %v2458_v6  ;;  %v7293_v6 = vld [vmem:[#allocation73_spill] sm:$0xff]  ;;  %v2460_v33 = vmax.f32 %v2332_v57, 0.0  ;;  %v7302_v57 = vld [vmem:[#allocation66_spill] sm:$0xff] }
 0x384   :  { %2756 = vmatprep.mubr.f32.mxu1 %v2461_v53  ;;  %v6049_v46 = vadd.f32 %v5840_v36, %v7293_v6  ;;  %v2100_v53 = vmul.f32 %v4757_v56, %v1909_v7  ;;  %v2101_v6 = vmul.f32 %v4755_v20, %v1913_v29  ;;  %v6075_v7 = vadd.f32 %v5840_v36, %v5699_v19 }
 0x385   :  { %v6079_v43 = vadd.f32 %v6023_v17, %v7302_v57  ;;  %v2218_v19 = vadd.f32 %v5893_v47, %v1688_v26  ;;  %v2336_v57 = vadd.f32 %v5840_v36, %v7306_v39  ;;  %v6135_v39 = vadd.f32 %v6023_v17, %v5748_v30  ;;  %v7315_v30 = vld [vmem:[#allocation49_spill] sm:$0xff] }
 0x386   :  { %7294 = vst [vmem:[#allocation16_spill] sm:$0xff] %v6049_v46  ;;  %v2102_v46 = vmul.f32 %v4757_v56, %v1913_v29  ;;  %7301 = vst [vmem:[#allocation38_spill] sm:$0xff] %v6075_v7  ;;  %v7304_v29 = vld [vmem:[#allocation65_spill] sm:$0xff]  ;;  %v2462_v7 = vmax.f32 %v2334_v13, 0.0  ;;  %v2228_v63 = vadd.f32 %v2100_v53, %v1698_v59  ;;  %v2465_v56 = vmax.f32 %v2337_v62, 0.0  ;;  %v7311_v62 = vld [vmem:[#allocation50_spill] sm:$0xff] }
 0x387   :  { %2757 = vmatmul.mubr.f32.gmra.mxu1 %v2460_v33  ;;  %7303 = vst [vmem:[#allocation39_spill] sm:$0xff] %v6079_v43  ;;  %v6083_v38 = vadd.f32 %v6019_v3, %v7304_v29  ;;  %v1703_v33 = vadd.f32 %v5933_v24, %v5929_v14  ;;  %v2227_v43 = vadd.f32 %v2099_v21, %v1697_v42  ;;  %v7307_v29 = vld [vmem:[#allocation67_spill] sm:$0xff]  ;;  %v7308_v13 = vld [vmem:[#allocation33_spill] sm:$0xff]  ;;  %v7309_v14 = vld [vmem:[#allocation32_spill] sm:$0xff]  ;;  %v2464_v26 = vmax.f32 %v2336_v57, 0.0 }
 0x388   :  { %2762 = vmatprep.mubr.f32.mxu1 %v2463_v45  ;;  %v2229_v41 = vadd.f32 %v2101_v6, %v5638_v4  ;;  %v2230_v20 = vadd.f32 %v2102_v46, %v5640_v50  ;;  %v6098_v45 = vadd.f32 %v6023_v17, %v2218_v19  ;;  %v6105_v47 = vadd.f32 %v6023_v17, %v7308_v13  ;;  %v7312_v53 = vld [vmem:[#allocation76_spill] sm:$0xff]  ;;  %v7313_v6 = vld [vmem:[#allocation75_spill] sm:$0xff] }
 0x389   :  { %7305 = vst [vmem:[#allocation41_spill] sm:$0xff] %v6083_v38  ;;  %v2339_v38 = vadd.f32 %v5843_v35, %v7307_v29  ;;  %v6109_v24 = vadd.f32 %v6019_v3, %v7309_v14  ;;  %v6113_v4 = vadd.f32 %v6023_v17, %v5580_v0  ;;  %v6117_v50 = vadd.f32 %v6019_v3, %v5578_v2  ;;  %v7316_v14 = vld [vmem:[#allocation52_spill] sm:$0xff] }
 0x38a   :  { %v2233_v59 = vadd.f32 %v2105_v58, %v1703_v33  ;;  %v2341_v21 = vadd.f32 %v5843_v35, %v7311_v62  ;;  %v6127_v0 = vadd.f32 %v6023_v17, %v7312_v53  ;;  %v6131_v2 = vadd.f32 %v6019_v3, %v7313_v6  ;;  %v7321_v62 = vld [vmem:[#allocation51_spill] sm:$0xff]  ;;  %v7322_v6 = vld [vmem:[#allocation25_spill] sm:$0xff] }
 0x38b   :  { %2763 = vmatmul.mubr.f32.gmra.mxu1 %v2462_v7  ;;  %v2467_v46 = vmax.f32 %v2339_v38, 0.0  ;;  %v7314_v7 = vld [vmem:[#allocation81_spill] sm:$0xff]  ;;  %v6142_v38 = vadd.f32 %v6023_v17, %v2228_v63  ;;  %v6145_v33 = vadd.f32 %v6019_v3, %v2227_v43  ;;  %v6148_v22 = vadd.f32 %v6023_v17, %v2230_v20  ;;  %v7317_v63 = vld [vmem:[#allocation79_spill] sm:$0xff]  ;;  %v7318_v20 = vld [vmem:[#allocation78_spill] sm:$0xff] }
 0x38c   :  { %2768 = vmatprep.mubr.f32.mxu1 %v2465_v56  ;;  %v7310_v56 = vld [vmem:[#allocation68_spill] sm:$0xff]  ;;  %v6139_v58 = vadd.f32 %v6019_v3, %v7314_v7  ;;  %v6151_v19 = vadd.f32 %v6019_v3, %v2229_v41  ;;  %v2340_v29 = vadd.f32 %v5840_v36, %v7315_v30  ;;  %v2469_v13 = vmax.f32 %v2341_v21, 0.0 }
 0x38d   :  { %v2338_v42 = vadd.f32 %v5840_v36, %v7310_v56  ;;  %v6157_v56 = vpop.permute.xlu1 %1924  ;;  %v6161_v43 = vadd.f32 %v6023_v17, %v7317_v63  ;;  %v6168_v41 = vadd.f32 %v6019_v3, %v2233_v59  ;;  %v2342_v21 = vadd.f32 %v5840_v36, %v7321_v62  ;;  %v7324_v59 = vld [vmem:[#allocation31_spill] sm:$0xff]  ;;  %v7325_v62 = vld [vmem:[#allocation29_spill] sm:$0xff] }
 0x38e   :  { %v2345_v7 = vadd.f32 %v5843_v35, %v7322_v6  ;;  %v7326_v6 = vld [vmem:[#allocation30_spill] sm:$0xff] }
 0x38f   :  { %2769 = vmatmul.mubr.f32.gmra.mxu1 %v2464_v26  ;;  %v2466_v57 = vmax.f32 %v2338_v42, 0.0  ;;  %v2343_v26 = vadd.f32 %v5843_v35, %v7316_v14  ;;  %7320 = vst [vmem:[#allocation45_spill] sm:$0xff] %v6168_v41  ;;  %v2468_v42 = vmax.f32 %v2340_v29, 0.0  ;;  %v2470_v30 = vmax.f32 %v2342_v21, 0.0  ;;  %v7323_v14 = vld [vmem:[#allocation24_spill] sm:$0xff] }
 0x390   :  { %2774 = vmatprep.mubr.f32.mxu1 %v2467_v46  ;;  %v6165_v46 = vadd.f32 %v6019_v3, %v7318_v20  ;;  %v2344_v63 = vadd.f32 %v5840_v36, %v7323_v14  ;;  %v2473_v20 = vmax.f32 %v2345_v7, 0.0  ;;  %v7327_v14 = vld [vmem:[#allocation28_spill] sm:$0xff] }
 0x391   :  { %v2471_v53 = vmax.f32 %v2343_v26, 0.0  ;;  %v2346_v26 = vadd.f32 %v5840_v36, %v7325_v62  ;;  %v2348_v7 = vadd.f32 %v5840_v36, %v7327_v14  ;;  %v2478_v62 = vmax.f32 %v5907_v15, 0.0 }
 0x392   :  { %7319 = vst [vmem:[#allocation42_spill] sm:$0xff] %v6165_v46  ;;  %v2472_v29 = vmax.f32 %v2344_v63, 0.0  ;;  %v2480_v36 = vmax.f32 %v5917_v9, 0.0  ;;  %v2484_v15 = vmax.f32 %v5950_v11, 0.0  ;;  %v2486_v9 = vmax.f32 %v5958_v51, 0.0 }
 0x393   :  { %2775 = vmatmul.mubr.f32.gmra.mxu1 %v2466_v57  ;;  %v6174_v57 = vpop.permute.xlu1 %1398  ;;  %v2474_v21 = vmax.f32 %v2346_v26, 0.0  ;;  %v2482_v26 = vmax.f32 %v5925_v48, 0.0  ;;  %v2488_v48 = vmax.f32 %v5966_v40, 0.0  ;;  %v2490_v11 = vmax.f32 %v5974_v8, 0.0 }
 0x394   :  { %2780 = vmatprep.mubr.f32.mxu1 %v2469_v13  ;;  %v2347_v13 = vadd.f32 %v5843_v35, %v7324_v59  ;;  %v7328_v59 = vld [vmem:[#allocation53_spill] sm:$0xff]  ;;  %v2492_v51 = vmax.f32 %v5989_v34, 0.0  ;;  %v2494_v40 = vmax.f32 %v5997_v23, 0.0  ;;  %v2496_v8 = vmax.f32 %v6005_v28, 0.0 }
 0x395   :  { %v2498_v34 = vmax.f32 %v6013_v1, 0.0  ;;  %v2500_v23 = vmax.f32 %v6033_v18, 0.0  ;;  %v2502_v28 = vmax.f32 %v6041_v10, 0.0  ;;  %v7329_v1 = vld [vmem:[#allocation61_spill] sm:$0xff]  ;;  %v7336_v10 = vld [vmem:[#allocation14_spill] sm:$0xff] }
 0x396   :  { %v2475_v41 = vmax.f32 %v2347_v13, 0.0 }
 0x397   :  { %2781 = vmatmul.mubr.f32.gmra.mxu1 %v2468_v42  ;;  %v2349_v42 = vadd.f32 %v5843_v35, %v7326_v6  ;;  %v2485_v6 = vmax.f32 %v5946_v61, 0.0  ;;  %v2491_v61 = vmax.f32 %v5970_v27, 0.0  ;;  %v2497_v27 = vmax.f32 %v6001_v16, 0.0 }
 0x398   :  { %2786 = vmatprep.mubr.f32.mxu1 %v2471_v53  ;;  %v6184_v53 = vpop.permute.xlu1 %983  ;;  %v2503_v16 = vmax.f32 %v6037_v37, 0.0 }
 0x399   :  { %v2477_v46 = vmax.f32 %v2349_v42, 0.0 }
 0x39b   :  { %2787 = vmatmul.mubr.f32.gmra.mxu1 %v2470_v30  ;;  %v2351_v30 = vadd.f32 %v5843_v35, %v7328_v59  ;;  %v2483_v35 = vmax.f32 %v5921_v31, 0.0  ;;  %v2489_v31 = vmax.f32 %v5962_v49, 0.0  ;;  %v2495_v49 = vmax.f32 %v5993_v55, 0.0 }
 0x39c   :  { %2792 = vmatprep.mubr.f32.mxu1 %v2473_v20  ;;  %v6190_v63 = vpop.permute.xlu1 %1402  ;;  %v2476_v20 = vmax.f32 %v2348_v7, 0.0  ;;  %v2501_v55 = vmax.f32 %v6029_v12, 0.0 }
 0x39d   :  { %v2479_v13 = vmax.f32 %v2351_v30, 0.0 }
 0x39f   :  { %2793 = vmatmul.mubr.f32.gmra.mxu1 %v2472_v29 }
 0x3a0   :  { %2798 = vmatprep.mubr.f32.mxu1 %v2475_v41  ;;  %v2481_v41 = vmax.f32 %v5913_v52, 0.0  ;;  %v6194_v29 = vpop.permute.xlu1 %988  ;;  %v2487_v52 = vmax.f32 %v5954_v25, 0.0  ;;  %v2493_v25 = vmax.f32 %v5985_v5, 0.0  ;;  %v2499_v5 = vmax.f32 %v6009_v54, 0.0 }
 0x3a1   :  { %v2505_v54 = vmax.f32 %v6045_v44, 0.0 }
 0x3a3   :  { %2799 = vmatmul.mubr.f32.gmra.mxu1 %v2474_v21 }
 0x3a4   :  { %2804 = vmatprep.mubr.f32.mxu1 %v2477_v46  ;;  %v6198_v46 = vpop.permute.xlu1 %1936 }
 0x3a7   :  { %2805 = vmatmul.mubr.f32.gmra.mxu1 %v2476_v20 }
 0x3a8   :  { %2810 = vmatprep.mubr.f32.mxu1 %v2479_v13  ;;  %v6204_v42 = vpop.permute.xlu1 %993  ;;  %v7330_v13 = vld [vmem:[#allocation13_spill] sm:$0xff] }
 0x3a9   :  { %v1152_v12 = vmul.f32 %v7330_v13, %v7329_v1 }
 0x3ab   :  { %2811 = vmatmul.mubr.f32.gmra.mxu1 %v2478_v62  ;;  %v7331_v62 = vld [vmem:[#allocation72_spill] sm:$0xff] }
 0x3ac   :  { %2816 = vmatprep.mubr.f32.mxu1 %v2481_v41  ;;  %v6208_v21 = vpop.permute.xlu1 %1940  ;;  %v7332_v41 = vld [vmem:[#allocation15_spill] sm:$0xff]  ;;  %v1553_v44 = vmul.f32 %v7336_v10, %v7331_v62 }
 0x3af   :  { %2817 = vmatmul.mubr.f32.gmra.mxu1 %v2480_v36  ;;  %v1554_v36 = vmul.f32 %v7332_v41, %v7331_v62  ;;  %v7346_v62 = vld [vmem:[#allocation22_spill] sm:$0xff] }
 0x3b0   :  { %2822 = vmatprep.mubr.f32.mxu1 %v2483_v35  ;;  %v6214_v14 = vpop.permute.xlu1 %1414  ;;  %v7333_v35 = vld [vmem:[#allocation16_spill] sm:$0xff] }
 0x3b1   :  { %v2504_v18 = vmax.f32 %v7333_v35, 0.0 }
 0x3b3   :  { %2823 = vmatmul.mubr.f32.gmra.mxu1 %v2482_v26  ;;  %v7334_v26 = vld [vmem:[#allocation19_spill] sm:$0xff] }
 0x3b4   :  { %2828 = vmatprep.mubr.f32.mxu1 %v2485_v6  ;;  %v6218_v7 = vpop.permute.xlu1 %1944  ;;  %v2507_v37 = vmax.f32 %v7334_v26, 0.0  ;;  %v7335_v6 = vld [vmem:[#allocation12_spill] sm:$0xff] }
 0x3b5   :  { %v7347_v26 = vld [vmem:[#allocation80_spill] sm:$0xff] }
 0x3b7   :  { %2829 = vmatmul.mubr.f32.gmra.mxu1 %v2484_v15  ;;  %v1151_v15 = vmul.f32 %v7335_v6, %v7329_v1 }
 0x3b8   :  { %2834 = vmatprep.mubr.f32.mxu1 %v2487_v52  ;;  %v6224_v59 = vpop.permute.xlu1 %1418  ;;  %v7337_v52 = vld [vmem:[#allocation64_spill] sm:$0xff] }
 0x3b9   :  { %v1681_v1 = vadd.f32 %v1553_v44, %v1151_v15 }
 0x3bb   :  { %2835 = vmatmul.mubr.f32.gmra.mxu1 %v2486_v9  ;;  %v7338_v9 = vld [vmem:[#allocation35_spill] sm:$0xff] }
 0x3bc   :  { %2840 = vmatprep.mubr.f32.mxu1 %v2489_v31  ;;  %v6228_v30 = vpop.permute.xlu1 %1008  ;;  %v2084_v31 = vmul.f32 %v7338_v9, %v7337_v52 }
 0x3bf   :  { %2841 = vmatmul.mubr.f32.gmra.mxu1 %v2488_v48  ;;  %v7339_v48 = vld [vmem:[#allocation69_spill] sm:$0xff] }
 0x3c0   :  { %2846 = vmatprep.mubr.f32.mxu1 %v2491_v61  ;;  %v6234_v20 = vpop.permute.xlu1 %1422  ;;  %v1154_v61 = vmul.f32 %v7330_v13, %v7339_v48 }
 0x3c3   :  { %2847 = vmatmul.mubr.f32.gmra.mxu1 %v2490_v11  ;;  %v1682_v11 = vadd.f32 %v1554_v36, %v1152_v12  ;;  %v1558_v36 = vmul.f32 %v7332_v41, %v7346_v62 }
 0x3c4   :  { %2852 = vmatprep.mubr.f32.mxu1 %v2493_v25  ;;  %v7340_v25 = vld [vmem:[#allocation26_spill] sm:$0xff] }
 0x3c5   :  { %v1555_v12 = vmul.f32 %v7336_v10, %v7340_v25  ;;  %v2212_v35 = vadd.f32 %v2084_v31, %v1682_v11  ;;  %v1155_v31 = vmul.f32 %v7335_v6, %v7347_v26  ;;  %v7350_v11 = vld [vmem:[#allocation71_spill] sm:$0xff] }
 0x3c7   :  { %2853 = vmatmul.mubr.f32.gmra.mxu1 %v2492_v51  ;;  %v1556_v51 = vmul.f32 %v7332_v41, %v7340_v25  ;;  %v2385_v44 = vadd.f32 %v6023_v17, %v2212_v35  ;;  %v1557_v25 = vmul.f32 %v7336_v10, %v7346_v62  ;;  %v7351_v35 = vld [vmem:[#allocation41_spill] sm:$0xff] }
 0x3c8   :  { %2858 = vmatprep.mubr.f32.mxu1 %v2495_v49  ;;  %v6252_v49 = vpop.permute.xlu1 %1013 }
 0x3c9   :  { %7341 = vst [vmem:[#allocation46_spill] sm:$0xff] %v6252_v49 }
 0x3cb   :  { %2859 = vmatmul.mubr.f32.gmra.mxu1 %v2494_v40  ;;  %v7342_v40 = vld [vmem:[#allocation18_spill] sm:$0xff] }
 0x3cc   :  { %2864 = vmatprep.mubr.f32.mxu1 %v2497_v27  ;;  %v2506_v27 = vmax.f32 %v7342_v40, 0.0 }
 0x3cf   :  { %2865 = vmatmul.mubr.f32.gmra.mxu1 %v2496_v8  ;;  %v7343_v8 = vld [vmem:[#allocation34_spill] sm:$0xff] }
 0x3d0   :  { %2870 = vmatprep.mubr.f32.mxu1 %v2499_v5  ;;  %v2083_v5 = vmul.f32 %v7343_v8, %v7337_v52  ;;  %v7348_v52 = vld [vmem:[#allocation38_spill] sm:$0xff] }
 0x3d1   :  { %v2508_v40 = vmax.f32 %v7348_v52, 0.0 }
 0x3d3   :  { %2871 = vmatmul.mubr.f32.gmra.mxu1 %v2498_v34  ;;  %v6257_v34 = vpop.permute.xlu0 %1928 }
 0x3d4   :  { %2876 = vmatprep.mubr.f32.mxu1 %v2501_v55  ;;  %v7344_v55 = vld [vmem:[#allocation27_spill] sm:$0xff] }
 0x3d7   :  { %2877 = vmatmul.mubr.f32.gmra.mxu1 %v2500_v23  ;;  %v2509_v23 = vmax.f32 %v7344_v55, 0.0  ;;  %v7349_v55 = vld [vmem:[#allocation39_spill] sm:$0xff]  ;;  %v6283_v52 = vpop.permute.xlu0 %1932 }
 0x3d8   :  { %2882 = vmatprep.mubr.f32.mxu1 %v2503_v16  ;;  %v1153_v16 = vmul.f32 %v7335_v6, %v7339_v48  ;;  %v2511_v15 = vmax.f32 %v7349_v55, 0.0  ;;  %v2510_v55 = vmax.f32 %v7351_v35, 0.0  ;;  %v2518_v35 = vmax.f32 %v6101_v60, 0.0 }
 0x3d9   :  { %v2525_v60 = vmax.f32 %v6127_v0, 0.0  ;;  %v7354_v0 = vld [vmem:[#allocation21_spill] sm:$0xff] }
 0x3da   :  { %v1683_v49 = vadd.f32 %v1555_v12, %v1153_v16 }
 0x3db   :  { %2883 = vmatmul.mubr.f32.gmra.mxu1 %v2502_v28  ;;  %v7345_v28 = vld [vmem:[#allocation70_spill] sm:$0xff] }
 0x3dc   :  { %2888 = vmatprep.mubr.f32.mxu1 %v2505_v54  ;;  %v2086_v54 = vmul.f32 %v7338_v9, %v7345_v28  ;;  %v2085_v48 = vmul.f32 %v7343_v8, %v7345_v28 }
 0x3de   :  { %v2213_v12 = vadd.f32 %v2085_v48, %v1683_v49 }
 0x3df   :  { %2889 = vmatmul.mubr.f32.gmra.mxu1 %v2504_v18  ;;  %v1684_v18 = vadd.f32 %v1556_v51, %v1154_v61  ;;  %v6279_v61 = vpop.permute.xlu1 %1956  ;;  %v2088_v51 = vmul.f32 %v7338_v9, %v7350_v11 }
 0x3e0   :  { %2894 = vmatprep.mubr.f32.mxu1 %v2507_v37  ;;  %v1156_v37 = vmul.f32 %v7330_v13, %v7347_v26  ;;  %v1685_v26 = vadd.f32 %v1557_v25, %v1155_v31 }
 0x3e2   :  { %v1686_v28 = vadd.f32 %v1558_v36, %v1156_v37  ;;  %v6293_v37 = vpop.permute.xlu0 %1948 }
 0x3e3   :  { %2895 = vmatmul.mubr.f32.gmra.mxu1 %v2506_v27  ;;  %v2211_v27 = vadd.f32 %v2083_v5, %v1681_v1  ;;  %v2513_v5 = vmax.f32 %v2385_v44, 0.0  ;;  %v2087_v1 = vmul.f32 %v7343_v8, %v7350_v11 }
 0x3e4   :  { %2900 = vmatprep.mubr.f32.mxu1 %v2509_v23  ;;  %v2214_v23 = vadd.f32 %v2086_v54, %v1684_v18  ;;  %v6290_v54 = vpop.permute.xlu1 %1018  ;;  %v2386_v18 = vadd.f32 %v6019_v3, %v2213_v12  ;;  %v2522_v12 = vmax.f32 %v6117_v50, 0.0  ;;  %v1578_v50 = vmul.f32 %v7332_v41, %v6119_v32 }
 0x3e5   :  { %v2384_v62 = vadd.f32 %v6019_v3, %v2211_v27  ;;  %v2215_v27 = vadd.f32 %v2087_v1, %v1685_v26 }
 0x3e6   :  { %v2387_v16 = vadd.f32 %v6023_v17, %v2214_v23  ;;  %v2514_v23 = vmax.f32 %v2386_v18, 0.0  ;;  %v6299_v31 = vpop.permute.xlu0 %1952 }
 0x3e7   :  { %2901 = vmatmul.mubr.f32.gmra.mxu1 %v2508_v40  ;;  %v2216_v40 = vadd.f32 %v2088_v51, %v1686_v28  ;;  %v2512_v36 = vmax.f32 %v2384_v62, 0.0  ;;  %v2388_v49 = vadd.f32 %v6019_v3, %v2215_v27  ;;  %v2519_v51 = vmax.f32 %v6098_v45, 0.0  ;;  %v7355_v27 = vld [vmem:[#allocation20_spill] sm:$0xff] }
 0x3e8   :  { %2906 = vmatprep.mubr.f32.mxu1 %v2511_v15  ;;  %v2515_v15 = vmax.f32 %v2387_v16, 0.0  ;;  %v6297_v25 = vpop.permute.xlu1 %1960  ;;  %v2521_v62 = vmax.f32 %v6105_v47, 0.0  ;;  %v2523_v16 = vmax.f32 %v6113_v4, 0.0  ;;  %v2524_v47 = vmax.f32 %v6131_v2, 0.0  ;;  %v7353_v4 = vld [vmem:[#allocation77_spill] sm:$0xff] }
 0x3e9   :  { %v2389_v44 = vadd.f32 %v6023_v17, %v2216_v40  ;;  %v2516_v11 = vmax.f32 %v2388_v49, 0.0  ;;  %v7352_v40 = vld [vmem:[#allocation9_spill] sm:$0xff]  ;;  %v2526_v2 = vmax.f32 %v6139_v58, 0.0  ;;  %v2108_v58 = vmul.f32 %v7338_v9, %v6157_v56 }
 0x3eb   :  { %2907 = vmatmul.mubr.f32.gmra.mxu1 %v2510_v55  ;;  %v2517_v48 = vmax.f32 %v2389_v44, 0.0  ;;  %v6305_v55 = vpop.permute.xlu0 %1968  ;;  %v1176_v44 = vmul.f32 %v7330_v13, %v7354_v0 }
 0x3ec   :  { %2912 = vmatprep.mubr.f32.mxu1 %v2513_v5  ;;  %v6302_v28 = vpop.permute.xlu1 %1434  ;;  %v2520_v5 = vmax.f32 %v6109_v24, 0.0  ;;  %v1174_v24 = vmul.f32 %v7330_v13, %v7352_v40  ;;  %v1579_v40 = vmul.f32 %v7336_v10, %v6174_v57 }
 0x3ef   :  { %2913 = vmatmul.mubr.f32.gmra.mxu1 %v2512_v36  ;;  %v6312_v45 = vpop.permute.xlu0 %1972  ;;  %v1576_v36 = vmul.f32 %v7332_v41, %v7353_v4  ;;  %v1180_v4 = vmul.f32 %v7330_v13, %v6184_v53 }
 0x3f0   :  { %2918 = vmatprep.mubr.f32.mxu1 %v2515_v15  ;;  %v6310_v1 = vpop.permute.xlu1 %1964  ;;  %v2527_v15 = vmax.f32 %v6135_v39, 0.0  ;;  %v1577_v39 = vmul.f32 %v7336_v10, %v6119_v32  ;;  %v2531_v32 = vmax.f32 %v6148_v22, 0.0 }
 0x3f1   :  { %v1704_v49 = vadd.f32 %v1576_v36, %v1174_v24  ;;  %v1582_v36 = vmul.f32 %v7332_v41, %v6190_v63 }
 0x3f3   :  { %2919 = vmatmul.mubr.f32.gmra.mxu1 %v2514_v23  ;;  %v6323_v18 = vpop.permute.xlu0 %1406  ;;  %v2106_v23 = vmul.f32 %v7338_v9, %v7355_v27  ;;  %v1179_v27 = vmul.f32 %v7335_v6, %v6184_v53 }
 0x3f4   :  { %2924 = vmatprep.mubr.f32.mxu1 %v2517_v48  ;;  %v6316_v26 = vpop.permute.xlu1 %1438  ;;  %v2529_v48 = vmax.f32 %v6142_v38, 0.0  ;;  %v1580_v38 = vmul.f32 %v7332_v41, %v6174_v57  ;;  %v2110_v57 = vmul.f32 %v7338_v9, %v6257_v34 }
 0x3f7   :  { %2925 = vmatmul.mubr.f32.gmra.mxu1 %v2516_v11 }
 0x3f8   :  { %2930 = vmatprep.mubr.f32.mxu1 %v2519_v51  ;;  %v6334_v11 = vpop.permute.xlu1 %1033  ;;  %v1175_v51 = vmul.f32 %v7335_v6, %v7354_v0 }
 0x3fa   :  { %v1705_v24 = vadd.f32 %v1577_v39, %v1175_v51  ;;  %v1710_v39 = vadd.f32 %v1582_v36, %v1180_v4  ;;  %v1182_v51 = vmul.f32 %v7330_v13, %v6194_v29  ;;  %v7358_v4 = vld [vmem:[#allocation45_spill] sm:$0xff] }
 0x3fb   :  { %2931 = vmatmul.mubr.f32.gmra.mxu1 %v2518_v35  ;;  %v6340_v35 = vpop.permute.xlu0 %1410  ;;  %v2534_v36 = vmax.f32 %v7358_v4, 0.0 }
 0x3fc   :  { %2936 = vmatprep.mubr.f32.mxu1 %v2521_v62  ;;  %v1706_v62 = vadd.f32 %v1578_v50, %v1176_v44  ;;  %v6360_v22 = vpop.permute.xlu1 %1442  ;;  %v2530_v50 = vmax.f32 %v6151_v19, 0.0  ;;  %v2533_v44 = vmax.f32 %v6161_v43, 0.0  ;;  %v2109_v19 = vmul.f32 %v7343_v8, %v6257_v34 }
 0x3fd   :  { %v2112_v43 = vmul.f32 %v7338_v9, %v6283_v52  ;;  %v1181_v34 = vmul.f32 %v7335_v6, %v6194_v29  ;;  %v1583_v29 = vmul.f32 %v7336_v10, %v6323_v18 }
 0x3ff   :  { %2937 = vmatmul.mubr.f32.gmra.mxu1 %v2520_v5  ;;  %v2528_v5 = vmax.f32 %v6145_v33, 0.0  ;;  %v6365_v0 = vpop.permute.xlu0 %1426 }
 0x400   :  { %2942 = vmatprep.mubr.f32.mxu1 %v2523_v16  ;;  %v2234_v16 = vadd.f32 %v2106_v23, %v1704_v49  ;;  %v1581_v23 = vmul.f32 %v7336_v10, %v6190_v63  ;;  %v1584_v63 = vmul.f32 %v7332_v41, %v6323_v18  ;;  %v1183_v18 = vmul.f32 %v7335_v6, %v6204_v42 }
 0x403   :  { %2943 = vmatmul.mubr.f32.gmra.mxu1 %v2522_v12  ;;  %v7356_v12 = vld [vmem:[#allocation23_spill] sm:$0xff] }
 0x404   :  { %2948 = vmatprep.mubr.f32.mxu1 %v2525_v60  ;;  %v1178_v60 = vmul.f32 %v7330_v13, %v7356_v12  ;;  %v1177_v33 = vmul.f32 %v7335_v6, %v7356_v12  ;;  %v6385_v12 = vpop.permute.xlu1 %1038 }
 0x407   :  { %2949 = vmatmul.mubr.f32.gmra.mxu1 %v2524_v47  ;;  %v2107_v47 = vmul.f32 %v7343_v8, %v6157_v56  ;;  %v1708_v56 = vadd.f32 %v1580_v38, %v1178_v60  ;;  %v1709_v38 = vadd.f32 %v1581_v23, %v1179_v27  ;;  %v2114_v60 = vmul.f32 %v7338_v9, %v6198_v46 }
 0x408   :  { %2954 = vmatprep.mubr.f32.mxu1 %v2527_v15  ;;  %v2236_v15 = vadd.f32 %v2108_v58, %v1706_v62  ;;  %v7357_v58 = vld [vmem:[#allocation42_spill] sm:$0xff]  ;;  %v2116_v23 = vmul.f32 %v7338_v9, %v6208_v21 }
 0x409   :  { %v2235_v49 = vadd.f32 %v2107_v47, %v1705_v24  ;;  %v2532_v62 = vmax.f32 %v7357_v58, 0.0  ;;  %v2238_v53 = vadd.f32 %v2110_v57, %v1708_v56  ;;  %v6393_v24 = vpop.permute.xlu0 %1430  ;;  %v1586_v56 = vmul.f32 %v7332_v41, %v6340_v35 }
 0x40b   :  { %2955 = vmatmul.mubr.f32.gmra.mxu1 %v2526_v2  ;;  %v2407_v2 = vadd.f32 %v6023_v17, %v2234_v16  ;;  %v2409_v16 = vadd.f32 %v6023_v17, %v2236_v15  ;;  %v2408_v15 = vadd.f32 %v6019_v3, %v2235_v49  ;;  %v1588_v49 = vmul.f32 %v7332_v41, %v6214_v14 }
 0x40c   :  { %2960 = vmatprep.mubr.f32.mxu1 %v2529_v48  ;;  %v1707_v48 = vadd.f32 %v1579_v40, %v1177_v33  ;;  %v2111_v40 = vmul.f32 %v7343_v8, %v6283_v52  ;;  %v2240_v33 = vadd.f32 %v2112_v43, %v1710_v39  ;;  %v2113_v52 = vmul.f32 %v7343_v8, %v6198_v46  ;;  %v6414_v46 = vpop.permute.xlu1 %1976 }
 0x40d   :  { %v2537_v57 = vmax.f32 %v2409_v16, 0.0  ;;  %v1585_v39 = vmul.f32 %v7336_v10, %v6340_v35  ;;  %v2115_v35 = vmul.f32 %v7343_v8, %v6208_v21 }
 0x40e   :  { %v2237_v47 = vadd.f32 %v2109_v19, %v1707_v48  ;;  %v2239_v48 = vadd.f32 %v2111_v40, %v1709_v38  ;;  %v1711_v19 = vadd.f32 %v1583_v29, %v1181_v34  ;;  %v1590_v34 = vmul.f32 %v7332_v41, %v6224_v59 }
 0x40f   :  { %2961 = vmatmul.mubr.f32.gmra.mxu1 %v2528_v5  ;;  %v2535_v5 = vmax.f32 %v2407_v2, 0.0  ;;  %v7359_v2 = vld [vmem:[#allocation8_spill] sm:$0xff]  ;;  %v1713_v40 = vadd.f32 %v1585_v39, %v1183_v18  ;;  %v2118_v29 = vmul.f32 %v7338_v9, %v6218_v7 }
 0x410   :  { %2966 = vmatprep.mubr.f32.mxu1 %v2531_v32  ;;  %v1184_v32 = vmul.f32 %v7330_v13, %v6204_v42  ;;  %v1186_v27 = vmul.f32 %v7330_v13, %v7359_v2  ;;  %v2410_v43 = vadd.f32 %v6019_v3, %v2237_v47  ;;  %v6417_v42 = vpop.permute.xlu0 %1446  ;;  %v1185_v16 = vmul.f32 %v7335_v6, %v7359_v2 }
 0x411   :  { %v2241_v47 = vadd.f32 %v2113_v52, %v1711_v19  ;;  %v1589_v52 = vmul.f32 %v7336_v10, %v6224_v59  ;;  %v1189_v59 = vmul.f32 %v7335_v6, %v6228_v30 }
 0x412   :  { %v1716_v38 = vadd.f32 %v1588_v49, %v1186_v27  ;;  %v1190_v27 = vmul.f32 %v7330_v13, %v6228_v30  ;;  %v2243_v49 = vadd.f32 %v2115_v35, %v1713_v40 }
 0x413   :  { %2967 = vmatmul.mubr.f32.gmra.mxu1 %v2530_v50  ;;  %v1712_v50 = vadd.f32 %v1584_v63, %v1182_v51  ;;  %v2536_v51 = vmax.f32 %v2408_v15, 0.0  ;;  %v2413_v63 = vadd.f32 %v6023_v17, %v2240_v33  ;;  %v2538_v33 = vmax.f32 %v2410_v43, 0.0 }
 0x414   :  { %2972 = vmatprep.mubr.f32.mxu1 %v2533_v44  ;;  %v2411_v44 = vadd.f32 %v6023_v17, %v2238_v53  ;;  %v6446_v18 = vpop.permute.xlu0 %1450  ;;  %v2414_v19 = vadd.f32 %v6019_v3, %v2241_v47  ;;  %v2246_v39 = vadd.f32 %v2118_v29, %v1716_v38  ;;  %v1591_v43 = vmul.f32 %v7336_v10, %v6234_v20 }
 0x415   :  { %v2242_v58 = vadd.f32 %v2114_v60, %v1712_v50  ;;  %v7360_v60 = vld [vmem:[#allocation17_spill] sm:$0xff]  ;;  %v2416_v30 = vadd.f32 %v6019_v3, %v2243_v49 }
 0x416   :  { %v2539_v53 = vmax.f32 %v2411_v44, 0.0  ;;  %v1187_v50 = vmul.f32 %v7335_v6, %v7360_v60  ;;  %v2117_v44 = vmul.f32 %v7343_v8, %v6218_v7  ;;  %v2542_v38 = vmax.f32 %v2414_v19, 0.0 }
 0x417   :  { %2973 = vmatmul.mubr.f32.gmra.mxu1 %v2532_v62  ;;  %v1714_v62 = vadd.f32 %v1586_v56, %v1184_v32  ;;  %v1188_v32 = vmul.f32 %v7330_v13, %v7360_v60  ;;  %v2415_v21 = vadd.f32 %v6023_v17, %v2242_v58  ;;  %v2120_v56 = vmul.f32 %v7338_v9, %v6293_v37 }
 0x418   :  { %2978 = vmatprep.mubr.f32.mxu1 %v2535_v5  ;;  %v1587_v5 = vmul.f32 %v7336_v10, %v6214_v14  ;;  %v2412_v14 = vadd.f32 %v6019_v3, %v2239_v48  ;;  %v1594_v60 = vmul.f32 %v7332_v41, %v6365_v0  ;;  %v1719_v40 = vadd.f32 %v1591_v43, %v1189_v59 }
 0x419   :  { %v2244_v4 = vadd.f32 %v2116_v23, %v1714_v62  ;;  %v1718_v2 = vadd.f32 %v1590_v34, %v1188_v32  ;;  %v1592_v23 = vmul.f32 %v7332_v41, %v6234_v20  ;;  %v1717_v62 = vadd.f32 %v1589_v52, %v1187_v50  ;;  %v7361_v34 = vld [vmem:[#allocation46_spill] sm:$0xff]  ;;  %v1024_v32 = vpop.permute.xlu0 %1023 }
 0x41a   :  { %v1715_v15 = vadd.f32 %v1587_v5, %v1185_v16  ;;  %v2540_v48 = vmax.f32 %v2412_v14, 0.0  ;;  %v1192_v20 = vmul.f32 %v7330_v13, %v7361_v34  ;;  %v1191_v29 = vmul.f32 %v7335_v6, %v7361_v34 }
 0x41b   :  { %2979 = vmatmul.mubr.f32.gmra.mxu1 %v2534_v36  ;;  %v2541_v36 = vmax.f32 %v2413_v63, 0.0  ;;  %v2417_v7 = vadd.f32 %v6023_v17, %v2244_v4  ;;  %v2122_v63 = vmul.f32 %v7338_v9, %v6299_v31  ;;  %v1720_v5 = vadd.f32 %v1592_v23, %v1190_v27 }
 0x41c   :  { %2984 = vmatprep.mubr.f32.mxu1 %v2537_v57  ;;  %v6438_v57 = vpop.permute.xlu1 %1043  ;;  %v2245_v58 = vadd.f32 %v2117_v44, %v1715_v15  ;;  %v2248_v16 = vadd.f32 %v2120_v56, %v1718_v2  ;;  %v1194_v4 = vmul.f32 %v7330_v13, %v6290_v54  ;;  %v2124_v52 = vmul.f32 %v7338_v9, %v6279_v61 }
 0x41d   :  { %v2545_v47 = vmax.f32 %v2417_v7, 0.0  ;;  %v2250_v50 = vadd.f32 %v2122_v63, %v1720_v5  ;;  %v1722_v2 = vadd.f32 %v1594_v60, %v1192_v20  ;;  %v2126_v7 = vmul.f32 %v7338_v9, %v6297_v25 }
 0x41e   :  { %v2418_v44 = vadd.f32 %v6019_v3, %v2245_v58  ;;  %v2421_v23 = vadd.f32 %v6023_v17, %v2248_v16  ;;  %v1029_v58 = vpop.permute.xlu0 %1028  ;;  %v1597_v20 = vmul.f32 %v7336_v10, %v6302_v28 }
 0x41f   :  { %2985 = vmatmul.mubr.f32.gmra.mxu1 %v2536_v51  ;;  %v2543_v51 = vmax.f32 %v2415_v21, 0.0  ;;  %v1596_v21 = vmul.f32 %v7332_v41, %v6393_v24  ;;  %v2252_v5 = vadd.f32 %v2124_v52, %v1722_v2  ;;  %v2127_v2 = vmul.f32 %v7343_v8, %v6310_v1 }
 0x420   :  { %2990 = vmatprep.mubr.f32.mxu1 %v2539_v53  ;;  %v2119_v53 = vmul.f32 %v7343_v8, %v6293_v37  ;;  %v6460_v35 = vpop.permute.xlu1 %1980  ;;  %v2419_v37 = vadd.f32 %v6023_v17, %v2246_v39  ;;  %v2549_v16 = vmax.f32 %v2421_v23, 0.0 }
 0x421   :  { %v1724_v43 = vadd.f32 %v1596_v21, %v1194_v4  ;;  %v1600_v21 = vmul.f32 %v7332_v41, %v6316_v26 }
 0x422   :  { %v2247_v15 = vadd.f32 %v2119_v53, %v1717_v62  ;;  %v2547_v27 = vmax.f32 %v2419_v37, 0.0  ;;  %v2546_v53 = vmax.f32 %v2418_v44, 0.0  ;;  %v1195_v37 = vmul.f32 %v7335_v6, %v1024_v32 }
 0x423   :  { %2991 = vmatmul.mubr.f32.gmra.mxu1 %v2538_v33  ;;  %v2121_v33 = vmul.f32 %v7343_v8, %v6299_v31  ;;  %v2544_v31 = vmax.f32 %v2416_v30, 0.0 }
 0x424   :  { %2996 = vmatprep.mubr.f32.mxu1 %v2541_v36  ;;  %v1593_v36 = vmul.f32 %v7336_v10, %v6365_v0  ;;  %v1193_v0 = vmul.f32 %v7335_v6, %v6290_v54  ;;  %v6490_v19 = vpop.permute.xlu1 %1454  ;;  %v1598_v54 = vmul.f32 %v7332_v41, %v6302_v28  ;;  %v2420_v63 = vadd.f32 %v6019_v3, %v2247_v15  ;;  %v6522_v15 = vpop.permute.xlu0 %1048 }
 0x425   :  { %v2249_v49 = vadd.f32 %v2121_v33, %v1719_v40  ;;  %v2128_v40 = vmul.f32 %v7338_v9, %v6310_v1  ;;  %v1198_v28 = vmul.f32 %v7330_v13, %v1029_v58  ;;  %v1725_v23 = vadd.f32 %v1597_v20, %v1195_v37 }
 0x426   :  { %v1721_v59 = vadd.f32 %v1593_v36, %v1191_v29 }
 0x427   :  { %2997 = vmatmul.mubr.f32.gmra.mxu1 %v2540_v48  ;;  %v1595_v48 = vmul.f32 %v7336_v10, %v6393_v24  ;;  %v1196_v24 = vmul.f32 %v7330_v13, %v1024_v32  ;;  %v2422_v36 = vadd.f32 %v6019_v3, %v2249_v49  ;;  %v1200_v49 = vmul.f32 %v7330_v13, %v6334_v11 }
 0x428   :  { %3002 = vmatprep.mubr.f32.mxu1 %v2543_v51  ;;  %v2123_v51 = vmul.f32 %v7343_v8, %v6279_v61  ;;  %v2423_v61 = vadd.f32 %v6023_v17, %v2250_v50  ;;  %v6514_v29 = vpop.permute.xlu1 %1984  ;;  %v2425_v50 = vadd.f32 %v6023_v17, %v2252_v5  ;;  %v1728_v1 = vadd.f32 %v1600_v21, %v1198_v28 }
 0x429   :  { %v1723_v30 = vadd.f32 %v1595_v48, %v1193_v0  ;;  %v1726_v33 = vadd.f32 %v1598_v54, %v1196_v24  ;;  %v1197_v0 = vmul.f32 %v7335_v6, %v1029_v58  ;;  %v2129_v58 = vmul.f32 %v7343_v8, %v6305_v55 }
 0x42a   :  { %v2251_v60 = vadd.f32 %v2123_v51, %v1721_v59  ;;  %v2551_v32 = vmax.f32 %v2423_v61, 0.0  ;;  %v2553_v54 = vmax.f32 %v2425_v50, 0.0  ;;  %v2132_v24 = vmul.f32 %v7338_v9, %v6312_v45 }
 0x42b   :  { %v6470_v14 = vpop.f32.mrf.mxu1  ;;  %3003 = vmatmul.mubr.f32.gmra.mxu1 %v2542_v38  ;;  %v2125_v38 = vmul.f32 %v7343_v8, %v6297_v25  ;;  %v2548_v25 = vmax.f32 %v2420_v63, 0.0  ;;  %v2256_v48 = vadd.f32 %v2128_v40, %v1726_v33  ;;  %v1199_v5 = vmul.f32 %v7335_v6, %v6334_v11 }
 0x42c   :  { %3008 = vmatprep.mubr.f32.mxu1 %v2545_v47  ;;  %v2254_v47 = vadd.f32 %v2126_v7, %v1724_v43  ;;  %v2550_v7 = vmax.f32 %v2422_v36, 0.0  ;;  %v2424_v59 = vadd.f32 %v6019_v3, %v2251_v60  ;;  %v1602_v43 = vmul.f32 %v7332_v41, %v6360_v22 }
 0x42d   :  { %v6480_v56 = vpop.f32.mrf.mxu1  ;;  %v2253_v44 = vadd.f32 %v2125_v38, %v1723_v30  ;;  %v1604_v61 = vmul.f32 %v7332_v41, %v6417_v42  ;;  %v6556_v30 = vpop.permute.xlu0 %1053  ;;  %v2255_v20 = vadd.f32 %v2127_v2, %v1725_v23  ;;  %v1603_v36 = vmul.f32 %v7336_v10, %v6417_v42 }
 0x42e   :  { %v2552_v37 = vmax.f32 %v2424_v59, 0.0  ;;  %v1730_v11 = vadd.f32 %v1602_v43, %v1200_v49  ;;  %v1606_v50 = vmul.f32 %v7332_v41, %v6446_v18  ;;  %v1605_v59 = vmul.f32 %v7336_v10, %v6446_v18 }
 0x42f   :  { %v6492_v39 = vpop.f32.mrf.mxu1  ;;  %3009 = vmatmul.mubr.f32.gmra.mxu1 %v2544_v31  ;;  %v2130_v31 = vmul.f32 %v7338_v9, %v6305_v55  ;;  %v1202_v55 = vmul.f32 %v7330_v13, %v6385_v12  ;;  %v2426_v60 = vadd.f32 %v6019_v3, %v2253_v44  ;;  %v2134_v44 = vmul.f32 %v7338_v9, %v6414_v46 }
 0x430   :  { %3014 = vmatprep.mubr.f32.mxu1 %v2547_v27  ;;  %v1599_v27 = vmul.f32 %v7336_v10, %v6316_v26  ;;  %v2427_v26 = vadd.f32 %v6023_v17, %v2254_v47  ;;  %v2428_v42 = vadd.f32 %v6019_v3, %v2255_v20  ;;  %v1206_v43 = vmul.f32 %v7330_v13, %v6522_v15 }
 0x431   :  { %v6501_v62 = vpop.f32.mrf.mxu1  ;;  %v2258_v40 = vadd.f32 %v2130_v31, %v1728_v1  ;;  %v1732_v2 = vadd.f32 %v1604_v61, %v1202_v55  ;;  %v2554_v23 = vmax.f32 %v2426_v60, 0.0  ;;  %v1989_v49 = vpop.permute.xlu0 %1988  ;;  %v2136_v20 = vmul.f32 %v7338_v9, %v6460_v35 }
 0x432   :  { %v1727_v38 = vadd.f32 %v1599_v27, %v1197_v0  ;;  %v2555_v33 = vmax.f32 %v2427_v26, 0.0  ;;  %v2260_v0 = vadd.f32 %v2132_v24, %v1730_v11  ;;  %v2133_v26 = vmul.f32 %v7343_v8, %v6414_v46 }
 0x433   :  { %v6507_v34 = vpop.f32.mrf.mxu1  ;;  %3015 = vmatmul.mubr.f32.gmra.mxu1 %v2546_v53  ;;  %v6546_v53 = vpop.permute.xlu1 %1458  ;;  %v1203_v24 = vmul.f32 %v7335_v6, %v6438_v57  ;;  %v1208_v11 = vmul.f32 %v7330_v13, %v6556_v30 }
 0x434   :  { %3020 = vmatprep.mubr.f32.mxu1 %v2549_v16  ;;  %v1601_v16 = vmul.f32 %v7336_v10, %v6360_v22  ;;  %v2429_v22 = vadd.f32 %v6023_v17, %v2256_v48  ;;  %v2257_v31 = vadd.f32 %v2129_v58, %v1727_v38  ;;  %v2556_v38 = vmax.f32 %v2428_v42, 0.0 }
 0x435   :  { %v6516_v4 = vpop.f32.mrf.mxu1  ;;  %v2433_v46 = vadd.f32 %v6023_v17, %v2260_v0 }
 0x436   :  { %v1729_v28 = vadd.f32 %v1601_v16, %v1199_v5  ;;  %v2557_v48 = vmax.f32 %v2429_v22, 0.0  ;;  %v2262_v5 = vadd.f32 %v2134_v44, %v1732_v2  ;;  %v1608_v16 = vmul.f32 %v7332_v41, %v6490_v19 }
 0x437   :  { %v6527_v52 = vpop.f32.mrf.mxu1  ;;  %3021 = vmatmul.mubr.f32.gmra.mxu1 %v2548_v25  ;;  %v2131_v25 = vmul.f32 %v7343_v8, %v6312_v45  ;;  %v6576_v45 = vpop.permute.xlu1 %1058  ;;  %v2430_v18 = vadd.f32 %v6019_v3, %v2257_v31  ;;  %v2561_v42 = vmax.f32 %v2433_v46, 0.0 }
 0x438   :  { %3026 = vmatprep.mubr.f32.mxu1 %v2551_v32  ;;  %v1201_v32 = vmul.f32 %v7335_v6, %v6385_v12  ;;  %v1204_v12 = vmul.f32 %v7330_v13, %v6438_v57  ;;  %v1607_v57 = vmul.f32 %v7336_v10, %v6490_v19  ;;  %v2138_v19 = vmul.f32 %v7338_v9, %v6514_v29 }
 0x439   :  { %v6536_v51 = vpop.f32.mrf.mxu1  ;;  %v2558_v44 = vmax.f32 %v2430_v18, 0.0 }
 0x43a   :  { %v1731_v58 = vadd.f32 %v1603_v36, %v1201_v32  ;;  %v1734_v55 = vadd.f32 %v1606_v50, %v1204_v12  ;;  %v2135_v36 = vmul.f32 %v7343_v8, %v6460_v35  ;;  %v1993_v32 = vpop.permute.xlu0 %1992  ;;  %v2137_v35 = vmul.f32 %v7343_v8, %v6514_v29 }
 0x43b   :  { %v6548_v63 = vpop.f32.mrf.mxu1  ;;  %3027 = vmatmul.mubr.f32.gmra.mxu1 %v2550_v7  ;;  %v2431_v7 = vadd.f32 %v6023_v17, %v2258_v40  ;;  %v1463_v40 = vpop.permute.xlu1 %1462 }
 0x43c   :  { %3032 = vmatprep.mubr.f32.mxu1 %v2553_v54  ;;  %v2259_v54 = vadd.f32 %v2131_v25, %v1729_v28  ;;  %v2261_v22 = vadd.f32 %v2133_v26, %v1731_v58  ;;  %v1733_v25 = vadd.f32 %v1605_v59, %v1203_v24  ;;  %v1610_v28 = vmul.f32 %v7332_v41, %v6546_v53 }
 0x43d   :  { %v6561_v47 = vpop.f32.mrf.mxu1  ;;  %v2559_v60 = vmax.f32 %v2431_v7, 0.0  ;;  %v2264_v2 = vadd.f32 %v2136_v20, %v1734_v55  ;;  %v1207_v7 = vmul.f32 %v7335_v6, %v6556_v30  ;;  %v2139_v20 = vmul.f32 %v7343_v8, %v1989_v49 }
 0x43e   :  { %v2432_v50 = vadd.f32 %v6019_v3, %v2259_v54  ;;  %v1738_v59 = vadd.f32 %v1610_v28, %v1208_v11  ;;  %v2263_v54 = vadd.f32 %v2135_v36, %v1733_v25  ;;  %v2434_v58 = vadd.f32 %v6019_v3, %v2261_v22  ;;  %v1467_v18 = vpop.permute.xlu0 %1466 }
 0x43f   :  { %v6568_v21 = vpop.f32.mrf.mxu1  ;;  %3033 = vmatmul.mubr.f32.gmra.mxu1 %v2552_v37  ;;  %v1205_v37 = vmul.f32 %v7335_v6, %v6522_v15  ;;  %v1736_v15 = vadd.f32 %v1608_v16, %v1206_v43  ;;  %v2140_v43 = vmul.f32 %v7338_v9, %v1989_v49  ;;  %v1064_v24 = vpop.permute.xlu1 %1063  ;;  %v1210_v16 = vmul.f32 %v7330_v13, %v6576_v45 }
 0x440   :  { %3038 = vmatprep.mubr.f32.mxu1 %v2555_v33  ;;  %v2437_v30 = vadd.f32 %v6023_v17, %v2264_v2  ;;  %v1611_v11 = vmul.f32 %v7336_v10, %v1463_v40  ;;  %v2436_v22 = vadd.f32 %v6019_v3, %v2263_v54  ;;  %v1212_v25 = vmul.f32 %v7330_v13, %v1064_v24 }
 0x441   :  { %v6579_v27 = vpop.f32.mrf.mxu1  ;;  %v1735_v0 = vadd.f32 %v1607_v57, %v1205_v37  ;;  %v2266_v26 = vadd.f32 %v2138_v19, %v1736_v15  ;;  %v1209_v57 = vmul.f32 %v7335_v6, %v6576_v45  ;;  %v2268_v37 = vadd.f32 %v2140_v43, %v1738_v59 }
 0x442   :  { %v1614_v36 = vmul.f32 %v7332_v41, %v1467_v18  ;;  %v2562_v49 = vmax.f32 %v2434_v58, 0.0  ;;  %v2142_v15 = vmul.f32 %v7338_v9, %v1993_v32  ;;  %v1613_v13 = vmul.f32 %v7336_v10, %v1467_v18 }
 0x443   :  { %v6588_v1 = vpop.f32.mrf.mxu1  ;;  %3039 = vmatmul.mubr.f32.gmra.mxu1 %v2554_v23  ;;  %v2435_v23 = vadd.f32 %v6023_v17, %v2262_v5  ;;  %v2560_v5 = vmax.f32 %v2432_v50, 0.0  ;;  %v2265_v55 = vadd.f32 %v2137_v35, %v1735_v0  ;;  %v2565_v50 = vmax.f32 %v2437_v30, 0.0  ;;  %v1997_v45 = vpop.permute.xlu1 %1996 }
 0x444   :  { %3044 = vmatprep.mubr.f32.mxu1 %v2557_v48  ;;  %v1609_v48 = vmul.f32 %v7336_v10, %v6546_v53  ;;  %v1612_v53 = vmul.f32 %v7332_v41, %v1463_v40  ;;  %v2564_v35 = vmax.f32 %v2436_v22, 0.0  ;;  %v2141_v0 = vmul.f32 %v7343_v8, %v1993_v32 }
 0x445   :  { %v6597_v61 = vpop.f32.mrf.mxu1  ;;  %v2438_v41 = vadd.f32 %v6019_v3, %v2265_v55  ;;  %v2144_v43 = vmul.f32 %v7338_v9, %v1997_v45 }
 0x446   :  { %v1737_v46 = vadd.f32 %v1609_v48, %v1207_v7  ;;  %v1740_v19 = vadd.f32 %v1612_v53, %v1210_v16  ;;  %v1742_v48 = vadd.f32 %v1614_v36, %v1212_v25 }
 0x447   :  { %v6608_v33 = vpop.f32.mrf.mxu1  ;;  %3045 = vmatmul.mubr.f32.gmra.mxu1 %v2556_v38  ;;  %v2563_v38 = vmax.f32 %v2435_v23, 0.0  ;;  %v1211_v23 = vmul.f32 %v7335_v6, %v1064_v24  ;;  %v2566_v16 = vmax.f32 %v2438_v41, 0.0 }
 0x448   :  { %3050 = vmatprep.mubr.f32.mxu1 %v2559_v60  ;;  %v2267_v40 = vadd.f32 %v2139_v20, %v1737_v46  ;;  %v2270_v59 = vadd.f32 %v2142_v15, %v1740_v19  ;;  %v2272_v53 = vadd.f32 %v2144_v43, %v1742_v48  ;;  %v2638_v19 = vld [vmem:[%s7075_s16] sm:$0x3] }
 0x449   :  { %v6617_v31 = vpop.f32.mrf.mxu1  ;;  %v1741_v6 = vadd.f32 %v1613_v13, %v1211_v23 }
 0x44a   :  { %v2440_v10 = vadd.f32 %v6019_v3, %v2267_v40  ;;  %v7363_v40 = vld [vmem:[#allocation11_spill] sm:$0xff] }
 0x44b   :  { %v6622_v12 = vpop.f32.mrf.mxu1  ;;  %3051 = vmatmul.mubr.f32.gmra.mxu1 %v2558_v44  ;;  %v2439_v44 = vadd.f32 %v6023_v17, %v2266_v26  ;;  %v2441_v26 = vadd.f32 %v6023_v17, %v2268_v37  ;;  %v2445_v37 = vadd.f32 %v6023_v17, %v2272_v53 }
 0x44c   :  { %3056 = vmatprep.mubr.f32.mxu1 %v2561_v42  ;;  %v1739_v42 = vadd.f32 %v1611_v11, %v1209_v57  ;;  %v2568_v30 = vmax.f32 %v2440_v10, 0.0  ;;  %v6690_v10 = vld [vmem:[%s7076_s17] sm:$0x77] }
 0x44d   :  { %v6630_v29 = vpop.f32.mrf.mxu1  ;;  %v2567_v54 = vmax.f32 %v2439_v44, 0.0  ;;  %v2569_v18 = vmax.f32 %v2441_v26, 0.0  ;;  %v2573_v36 = vmax.f32 %v2445_v37, 0.0  ;;  %v7362_v44 = vld [vmem:[#allocation10_spill] sm:$0xff]  ;;  %v6697_v53 = vcombine.high %v6690_v10, %v6690_v10 }
 0x44e   :  { %v2269_v24 = vadd.f32 %v2141_v0, %v1739_v42  ;;  %v6674_v42 = vrot.slane %v2638_v19, %v7363_v40 }
 0x44f   :  { %v6637_v60 = vpop.f32.mrf.mxu1  ;;  %3057 = vmatmul.mubr.f32.gmra.mxu1 %v2560_v5  ;;  %v2143_v5 = vmul.f32 %v7343_v8, %v1997_v45  ;;  %v6671_v45 = vrot.slane %v2638_v19, %v7362_v44  ;;  %3301 = vmatprep.mubr.f32.mxu0 %v6697_v53 }
 0x450   :  { %3062 = vmatprep.mubr.f32.mxu1 %v2563_v38  ;;  %v2443_v38 = vadd.f32 %v6023_v17, %v2270_v59  ;;  %v2442_v55 = vadd.f32 %v6019_v3, %v2269_v24 }
 0x451   :  { %v6645_v28 = vpop.f32.mrf.mxu1  ;;  %v2271_v20 = vadd.f32 %v2143_v5, %v1741_v6 }
 0x452   :  { %v2571_v57 = vmax.f32 %v2443_v38, 0.0  ;;  %v2570_v8 = vmax.f32 %v2442_v55, 0.0 }
 0x453   :  { %v6649_v2 = vpop.f32.mrf.mxu1  ;;  %3063 = vmatmul.mubr.f32.gmra.mxu1 %v2562_v49  ;;  %v2444_v22 = vadd.f32 %v6019_v3, %v2271_v20 }
 0x454   :  { %3068 = vmatprep.mubr.f32.mxu1 %v2565_v50 }
 0x455   :  { %v6655_v7 = vpop.f32.mrf.mxu1  ;;  %v2572_v15 = vmax.f32 %v2444_v22, 0.0 }
 0x457   :  { %v6659_v58 = vpop.f32.mrf.mxu1  ;;  %3069 = vmatmul.mubr.f32.gmra.mxu1 %v2564_v35 }
 0x458   :  { %3074 = vmatprep.mubr.f32.mxu1 %v2567_v54 }
 0x459   :  { %v2784_v32 = vpop.f32.mrf.mxu1 }
 0x45a   :  { %v2785_v37 = vadd.f32 %v2784_v32, %v6674_v42  ;;  %v2777_v32 = vadd.f32 %v6649_v2, %v6671_v45  ;;  %v2767_v2 = vadd.f32 %v6630_v29, %v6674_v42  ;;  %v2759_v29 = vadd.f32 %v6608_v33, %v6671_v45 }
 0x45b   :  { %v2788_v9 = vpop.f32.mrf.mxu1  ;;  %3075 = vmatmul.mubr.f32.gmra.mxu1 %v2566_v16  ;;  %v2749_v33 = vadd.f32 %v6579_v27, %v6674_v42  ;;  %v2741_v27 = vadd.f32 %v6548_v63, %v6671_v45 }
 0x45c   :  { %3080 = vmatprep.mubr.f32.mxu1 %v2569_v18  ;;  %v2789_v55 = vadd.f32 %v2788_v9, %v6671_v45  ;;  %v3122_v9 = vmax.f32 %v2785_v37, 0.0 }
 0x45d   :  { %v2790_v46 = vpop.f32.mrf.mxu1 }
 0x45e   :  { %v2791_v18 = vadd.f32 %v2790_v46, %v6674_v42  ;;  %v2783_v46 = vadd.f32 %v6659_v58, %v6671_v45  ;;  %v3123_v22 = vmax.f32 %v2789_v55, 0.0  ;;  %v2773_v58 = vadd.f32 %v6645_v28, %v6674_v42 }
 0x45f   :  { %v2794_v11 = vpop.f32.mrf.mxu1  ;;  %3081 = vmatmul.mubr.f32.gmra.mxu1 %v2568_v30  ;;  %v2765_v28 = vadd.f32 %v6622_v12, %v6671_v45  ;;  %v2755_v12 = vadd.f32 %v6597_v61, %v6674_v42  ;;  %v2747_v61 = vadd.f32 %v6568_v21, %v6671_v45  ;;  %v2737_v21 = vadd.f32 %v6536_v51, %v6674_v42 }
 0x460   :  { %3086 = vmatprep.mubr.f32.mxu1 %v2571_v57  ;;  %v2795_v24 = vadd.f32 %v2794_v11, %v6671_v45  ;;  %v3124_v11 = vmax.f32 %v2791_v18, 0.0  ;;  %v3121_v19 = vmax.f32 %v2783_v46, 0.0  ;;  %v2729_v51 = vadd.f32 %v6507_v34, %v6671_v45 }
 0x461   :  { %v2796_v25 = vpop.f32.mrf.mxu1  ;;  %v3106_v63 = vmax.f32 %v2737_v21, 0.0  ;;  %v2717_v34 = vadd.f32 %v6470_v14, %v6671_v45 }
 0x462   :  { %v2797_v54 = vadd.f32 %v2796_v25, %v6674_v42  ;;  %v3125_v20 = vmax.f32 %v2795_v24, 0.0 }
 0x463   :  { %v2800_v49 = vpop.f32.mrf.mxu1  ;;  %3087 = vmatmul.mubr.f32.gmra.mxu1 %v2570_v8 }
 0x464   :  { %3092 = vmatprep.mubr.f32.mxu1 %v2573_v36  ;;  %v2801_v48 = vadd.f32 %v2800_v49, %v6671_v45  ;;  %v3126_v38 = vmax.f32 %v2797_v54, 0.0  ;;  %v2779_v36 = vadd.f32 %v6655_v7, %v6674_v42  ;;  %v2771_v7 = vadd.f32 %v6637_v60, %v6671_v45 }
 0x465   :  { %v2802_v50 = vpop.f32.mrf.mxu1  ;;  %v2761_v60 = vadd.f32 %v6617_v31, %v6674_v42  ;;  %v2753_v31 = vadd.f32 %v6588_v1, %v6671_v45  ;;  %v2743_v1 = vadd.f32 %v6561_v47, %v6674_v42  ;;  %v2735_v47 = vadd.f32 %v6527_v52, %v6671_v45 }
 0x466   :  { %v2803_v13 = vadd.f32 %v2802_v50, %v6674_v42  ;;  %v3127_v5 = vmax.f32 %v2801_v48, 0.0  ;;  %v3120_v50 = vmax.f32 %v2779_v36, 0.0  ;;  %v2723_v52 = vadd.f32 %v6492_v39, %v6671_v45 }
 0x467   :  { %v2806_v17 = vpop.f32.mrf.mxu1  ;;  %3093 = vmatmul.mubr.f32.gmra.mxu1 %v2572_v15 }
 0x468   :  { %v2807_v3 = vadd.f32 %v2806_v17, %v6671_v45  ;;  %v3128_v26 = vmax.f32 %v2803_v13, 0.0  ;;  %v3119_v17 = vmax.f32 %v2777_v32, 0.0  ;;  %v3117_v13 = vmax.f32 %v2771_v7, 0.0 }
 0x469   :  { %v2808_v23 = vpop.f32.mrf.mxu1 }
 0x46a   :  { %v2809_v41 = vadd.f32 %v2808_v23, %v6674_v42  ;;  %v3129_v59 = vmax.f32 %v2807_v3, 0.0  ;;  %v3118_v3 = vmax.f32 %v2773_v58, 0.0 }
 0x46b   :  { %v6679_v35 = vpop.f32.mrf.mxu1 }
 0x46c   :  { %v3130_v0 = vmax.f32 %v2809_v41, 0.0 }
 0x46d   :  { %v6682_v43 = vpop.f32.mrf.mxu1 }
 0x46e   :  { %3237 = vmatprep.subr.mxu0 %v3130_v0  ;;  %v3116_v0 = vmax.f32 %v2767_v2, 0.0 }
 0x46f   :  { %v6685_v6 = vpop.f32.mrf.mxu1  ;;  %3238 = vmatpush1.xpose.msra.mxu0 %v3129_v59  ;;  %v3115_v59 = vmax.f32 %v2765_v28, 0.0 }
 0x470   :  { %3239 = vmatprep.subr.mxu0 %v3128_v26  ;;  %v3114_v26 = vmax.f32 %v2761_v60, 0.0 }
 0x471   :  { %v6693_v16 = vpop.f32.mrf.mxu1 }
 0x473   :  { %v6700_v30 = vpop.f32.mrf.mxu1  ;;  %3240 = vmatpush1.xpose.msra.mxu0 %v3127_v5  ;;  %v3113_v5 = vmax.f32 %v2759_v29, 0.0 }
 0x474   :  { %3241 = vmatprep.subr.mxu0 %v3126_v38  ;;  %v3112_v38 = vmax.f32 %v2755_v12, 0.0 }
 0x475   :  { %v6704_v57 = vpop.f32.mrf.mxu1 }
 0x477   :  { %v6707_v8 = vpop.f32.mrf.mxu1  ;;  %3242 = vmatpush1.xpose.msra.mxu0 %v3125_v20  ;;  %v3111_v20 = vmax.f32 %v2753_v31, 0.0 }
 0x478   :  { %3243 = vmatprep.subr.mxu0 %v3124_v11  ;;  %v3110_v11 = vmax.f32 %v2749_v33, 0.0 }
 0x479   :  { %v6711_v25 = vpop.f32.mrf.mxu1 }
 0x47b   :  { %v6715_v49 = vpop.f32.mrf.mxu1  ;;  %3244 = vmatpush1.xpose.msra.mxu0 %v3123_v22  ;;  %v3109_v22 = vmax.f32 %v2747_v61, 0.0 }
 0x47c   :  { %3245 = vmatprep.subr.mxu0 %v3122_v9  ;;  %v3108_v9 = vmax.f32 %v2743_v1, 0.0 }
 0x47d   :  { %v6719_v15 = vpop.f32.mrf.mxu1 }
 0x47f   :  { %v6723_v44 = vpop.f32.mrf.mxu1  ;;  %3246 = vmatpush1.xpose.msra.mxu0 %v3121_v19  ;;  %v3107_v19 = vmax.f32 %v2741_v27, 0.0 }
 0x480   :  { %3247 = vmatprep.subr.mxu0 %v3120_v50  ;;  %v2731_v50 = vadd.f32 %v6516_v4, %v6674_v42  ;;  %v3103_v4 = vmax.f32 %v2729_v51, 0.0 }
 0x481   :  { %v6727_v40 = vpop.f32.mrf.mxu1 }
 0x482   :  { %v3104_v28 = vmax.f32 %v2731_v50, 0.0 }
 0x483   :  { %v6731_v23 = vpop.f32.mrf.mxu1  ;;  %3248 = vmatpush1.xpose.msra.mxu0 %v3119_v17  ;;  %v3105_v17 = vmax.f32 %v2735_v47, 0.0 }
 0x484   :  { %3249 = vmatprep.subr.mxu0 %v3118_v3  ;;  %v2725_v3 = vadd.f32 %v6501_v62, %v6674_v42  ;;  %v3101_v62 = vmax.f32 %v2723_v52, 0.0 }
 0x485   :  { %v6735_v41 = vpop.f32.mrf.mxu1 }
 0x486   :  { %v3102_v29 = vmax.f32 %v2725_v3, 0.0 }
 0x487   :  { %v6739_v48 = vpop.f32.mrf.mxu1  ;;  %3250 = vmatpush1.xpose.msra.mxu0 %v3117_v13 }
 0x488   :  { %3251 = vmatprep.subr.mxu0 %v3116_v0  ;;  %v2719_v0 = vadd.f32 %v6480_v56, %v6674_v42 }
 0x489   :  { %v6743_v54 = vpop.f32.mrf.mxu1 }
 0x48b   :  { %v6747_v24 = vpop.f32.mrf.mxu1  ;;  %3252 = vmatpush1.xpose.msra.mxu0 %v3115_v59 }
 0x48c   :  { %3253 = vmatprep.subr.mxu0 %v3114_v26  ;;  %v3100_v26 = vmax.f32 %v2719_v0, 0.0 }
 0x48d   :  { %v6751_v18 = vpop.f32.mrf.mxu1 }
 0x48f   :  { %v6755_v55 = vpop.f32.mrf.mxu1  ;;  %3254 = vmatpush1.xpose.msra.mxu0 %v3113_v5  ;;  %v3099_v5 = vmax.f32 %v2717_v34, 0.0 }
 0x490   :  { %3255 = vmatprep.subr.mxu0 %v3112_v38 }
 0x491   :  { %v6759_v37 = vpop.f32.mrf.mxu1 }
 0x493   :  { %v6763_v46 = vpop.f32.mrf.mxu1  ;;  %3256 = vmatpush1.xpose.msra.mxu0 %v3111_v20 }
 0x494   :  { %3257 = vmatprep.subr.mxu0 %v3110_v11 }
 0x495   :  { %v6767_v36 = vpop.f32.mrf.mxu1 }
 0x497   :  { %v6771_v32 = vpop.f32.mrf.mxu1  ;;  %3258 = vmatpush1.xpose.msra.mxu0 %v3109_v22 }
 0x498   :  { %3259 = vmatprep.subr.mxu0 %v3108_v9 }
 0x499   :  { %v2880_v58 = vpop.f32.mrf.mxu1 }
 0x49b   :  { %v2884_v7 = vpop.f32.mrf.mxu1  ;;  %3260 = vmatpush1.xpose.msra.mxu0 %v3107_v19 }
 0x49c   :  { %3261 = vmatprep.subr.mxu0 %v3106_v63  ;;  %v2885_v3 = vadd.f32 %v2884_v7, %v6671_v45 }
 0x49d   :  { %v2886_v2 = vpop.f32.mrf.mxu1 }
 0x49e   :  { %v2887_v50 = vadd.f32 %v2886_v2, %v6674_v42  ;;  %v2879_v2 = vadd.f32 %v6771_v32, %v6671_v45  ;;  %v3155_v0 = vmax.f32 %v2885_v3, 0.0  ;;  %v2869_v32 = vadd.f32 %v6759_v37, %v6674_v42 }
 0x49f   :  { %v2890_v13 = vpop.f32.mrf.mxu1  ;;  %3262 = vmatpush1.xpose.msra.mxu0 %v3105_v17  ;;  %v3228_v17 = vld [vmem:[%s7077_s18] sm:$0x7]  ;;  %v2861_v37 = vadd.f32 %v6747_v24, %v6671_v45  ;;  %v2851_v24 = vadd.f32 %v6735_v41, %v6674_v42  ;;  %v2843_v41 = vadd.f32 %v6723_v44, %v6671_v45  ;;  %v2833_v44 = vadd.f32 %v6711_v25, %v6674_v42 }
 0x4a0   :  { %3263 = vmatprep.subr.mxu0 %v3104_v28  ;;  %v2891_v9 = vadd.f32 %v2890_v13, %v6671_v45  ;;  %3231 = vperm.xlu1 %3637, %v3228_v17   ;;  %v2881_v13 = vadd.f32 %v2880_v58, %v6674_v42  ;;  %v2873_v58 = vadd.f32 %v6763_v46, %v6671_v45 }
 0x4a1   :  { %v2892_v60 = vpop.f32.mrf.mxu1  ;;  %v2863_v46 = vadd.f32 %v6751_v18, %v6674_v42  ;;  %v2855_v18 = vadd.f32 %v6739_v48, %v6671_v45  ;;  %v2845_v48 = vadd.f32 %v6727_v40, %v6674_v42  ;;  %v3144_v17 = vmax.f32 %v2851_v24, 0.0 }
 0x4a2   :  { %v2893_v27 = vadd.f32 %v2892_v60, %v6674_v42  ;;  %v3157_v28 = vmax.f32 %v2891_v9, 0.0  ;;  %v3154_v7 = vmax.f32 %v2881_v13, 0.0  ;;  %v2837_v40 = vadd.f32 %v6715_v49, %v6671_v45 }
 0x4a3   :  { %v2896_v59 = vpop.f32.mrf.mxu1  ;;  %3264 = vmatpush1.xpose.msra.mxu0 %v3103_v4  ;;  %v3156_v4 = vmax.f32 %v2887_v50, 0.0  ;;  %v3145_v50 = vmax.f32 %v2855_v18, 0.0  ;;  %v3138_v49 = vmax.f32 %v2833_v44, 0.0  ;;  %v2825_v25 = vadd.f32 %v6700_v30, %v6671_v45 }
 0x4a4   :  { %3265 = vmatprep.subr.mxu0 %v3102_v29  ;;  %v2897_v14 = vadd.f32 %v2896_v59, %v6671_v45  ;;  %v3158_v63 = vmax.f32 %v2893_v27, 0.0  ;;  %v2875_v59 = vadd.f32 %v6767_v36, %v6674_v42  ;;  %v2867_v36 = vadd.f32 %v6755_v55, %v6671_v45 }
 0x4a5   :  { %v2898_v12 = vpop.f32.mrf.mxu1  ;;  %v2857_v55 = vadd.f32 %v6743_v54, %v6674_v42  ;;  %v3147_v27 = vmax.f32 %v2861_v37, 0.0  ;;  %v2849_v54 = vadd.f32 %v6731_v23, %v6671_v45  ;;  %v2839_v23 = vadd.f32 %v6719_v15, %v6674_v42 }
 0x4a6   :  { %v2899_v38 = vadd.f32 %v2898_v12, %v6674_v42  ;;  %v3159_v47 = vmax.f32 %v2897_v14, 0.0  ;;  %v3148_v14 = vmax.f32 %v2863_v46, 0.0  ;;  %v2831_v15 = vadd.f32 %v6707_v8, %v6671_v45 }
 0x4a7   :  { %v2902_v31 = vpop.f32.mrf.mxu1  ;;  %3266 = vmatpush1.xpose.msra.mxu0 %v3101_v62  ;;  %v3153_v62 = vmax.f32 %v2879_v2, 0.0  ;;  %v3146_v9 = vmax.f32 %v2857_v55, 0.0  ;;  %v2819_v8 = vadd.f32 %v6685_v6, %v6671_v45  ;;  %v2813_v30 = vadd.f32 %v6679_v35, %v6671_v45 }
 0x4a8   :  { %3267 = vmatprep.subr.mxu0 %v3100_v26  ;;  %v2903_v39 = vadd.f32 %v2902_v31, %v6671_v45  ;;  %v3160_v22 = vmax.f32 %v2899_v38, 0.0  ;;  %v3152_v26 = vmax.f32 %v2875_v59, 0.0 }
 0x4a9   :  { %v2904_v33 = vpop.f32.mrf.mxu1 }
 0x4aa   :  { %v2905_v56 = vadd.f32 %v2904_v33, %v6674_v42  ;;  %v3161_v1 = vmax.f32 %v2903_v39, 0.0  ;;  %v3150_v33 = vmax.f32 %v2869_v32, 0.0 }
 0x4ab   :  { %v6790_v61 = vpop.f32.mrf.mxu1  ;;  %3268 = vmatpush1.xpose.msra.mxu0 %v3099_v5  ;;  %v3151_v5 = vmax.f32 %v2873_v58, 0.0 }
 0x4ac   :  { %v3162_v20 = vmax.f32 %v2905_v56, 0.0  ;;  %v3149_v56 = vmax.f32 %v2867_v36, 0.0 }
 0x4ad   :  { %v6793_v11 = vpop.f32.mrf.mxu1 }
 0x4ae   :  { %3269 = vmatprep.subr.mxu0 %v3162_v20 }
 0x4af   :  { %v6796_v21 = vpop.f32.mrf.mxu1  ;;  %3270 = vmatpush2.xpose.msra.mxu0 %v3161_v1 }
 0x4b0   :  { %3271 = vmatprep.subr.mxu0 %v3160_v22 }
 0x4b1   :  { %v6799_v19 = vpop.f32.mrf.mxu1 }
 0x4b3   :  { %v6802_v51 = vpop.f32.mrf.mxu1  ;;  %3272 = vmatpush2.xpose.msra.mxu0 %v3159_v47 }
 0x4b4   :  { %3273 = vmatprep.subr.mxu0 %v3158_v63 }
 0x4b5   :  { %v6808_v52 = vpop.f32.mrf.mxu1 }
 0x4b7   :  { %v6811_v60 = vpop.f32.mrf.mxu1  ;;  %3274 = vmatpush2.xpose.msra.mxu0 %v3157_v28  ;;  %v3143_v28 = vmax.f32 %v2849_v54, 0.0 }
 0x4b8   :  { %3275 = vmatprep.subr.mxu0 %v3156_v4  ;;  %v3142_v4 = vmax.f32 %v2845_v48, 0.0 }
 0x4b9   :  { %v6815_v29 = vpop.f32.mrf.mxu1 }
 0x4bb   :  { %v6819_v34 = vpop.f32.mrf.mxu1  ;;  %3276 = vmatpush2.xpose.msra.mxu0 %v3155_v0  ;;  %v3141_v0 = vmax.f32 %v2843_v41, 0.0 }
 0x4bc   :  { %3277 = vmatprep.subr.mxu0 %v3154_v7  ;;  %v3140_v7 = vmax.f32 %v2839_v23, 0.0 }
 0x4bd   :  { %v6823_v12 = vpop.f32.mrf.mxu1 }
 0x4bf   :  { %v6827_v31 = vpop.f32.mrf.mxu1  ;;  %3278 = vmatpush2.xpose.msra.mxu0 %v3153_v62  ;;  %v3139_v62 = vmax.f32 %v2837_v40, 0.0 }
 0x4c0   :  { %3279 = vmatprep.subr.mxu0 %v3152_v26  ;;  %v2827_v26 = vadd.f32 %v6704_v57, %v6674_v42  ;;  %v3135_v57 = vmax.f32 %v2825_v25, 0.0 }
 0x4c1   :  { %v6831_v39 = vpop.f32.mrf.mxu1 }
 0x4c2   :  { %v3136_v37 = vmax.f32 %v2827_v26, 0.0 }
 0x4c3   :  { %v6835_v38 = vpop.f32.mrf.mxu1  ;;  %3280 = vmatpush2.xpose.msra.mxu0 %v3151_v5  ;;  %v3137_v5 = vmax.f32 %v2831_v15, 0.0 }
 0x4c4   :  { %3281 = vmatprep.subr.mxu0 %v3150_v33  ;;  %v2821_v33 = vadd.f32 %v6693_v16, %v6674_v42  ;;  %v3133_v16 = vmax.f32 %v2819_v8, 0.0 }
 0x4c5   :  { %v6839_v20 = vpop.f32.mrf.mxu1 }
 0x4c6   :  { %v3134_v18 = vmax.f32 %v2821_v33, 0.0 }
 0x4c7   :  { %v6843_v1 = vpop.f32.mrf.mxu1  ;;  %3282 = vmatpush2.xpose.msra.mxu0 %v3149_v56 }
 0x4c8   :  { %3283 = vmatprep.subr.mxu0 %v3148_v14  ;;  %v2815_v14 = vadd.f32 %v6682_v43, %v6674_v42 }
 0x4c9   :  { %v6847_v22 = vpop.f32.mrf.mxu1 }
 0x4cb   :  { %v6851_v47 = vpop.f32.mrf.mxu1  ;;  %3284 = vmatpush2.xpose.msra.mxu0 %v3147_v27 }
 0x4cc   :  { %3285 = vmatprep.subr.mxu0 %v3146_v9  ;;  %v3132_v9 = vmax.f32 %v2815_v14, 0.0 }
 0x4cd   :  { %v6855_v63 = vpop.f32.mrf.mxu1 }
 0x4cf   :  { %v6859_v3 = vpop.f32.mrf.mxu1  ;;  %3286 = vmatpush2.xpose.msra.mxu0 %v3145_v50  ;;  %v3131_v50 = vmax.f32 %v2813_v30, 0.0 }
 0x4d0   :  { %3287 = vmatprep.subr.mxu0 %v3144_v17 }
 0x4d1   :  { %v6863_v13 = vpop.f32.mrf.mxu1 }
 0x4d3   :  { %v6867_v2 = vpop.f32.mrf.mxu1  ;;  %3288 = vmatpush2.xpose.msra.mxu0 %v3143_v28 }
 0x4d4   :  { %3289 = vmatprep.subr.mxu0 %v3142_v4 }
 0x4d5   :  { %v6871_v59 = vpop.f32.mrf.mxu1 }
 0x4d6   :  { %v2971_v14 = vadd.f32 %v6871_v59, %v6674_v42  ;;  %v2963_v59 = vadd.f32 %v6859_v3, %v6671_v45  ;;  %v2953_v3 = vadd.f32 %v6847_v22, %v6674_v42  ;;  %v2945_v22 = vadd.f32 %v6835_v38, %v6671_v45 }
 0x4d7   :  { %v6875_v58 = vpop.f32.mrf.mxu1  ;;  %3290 = vmatpush2.xpose.msra.mxu0 %v3141_v0  ;;  %v2935_v38 = vadd.f32 %v6823_v12, %v6674_v42  ;;  %v2927_v12 = vadd.f32 %v6811_v60, %v6671_v45  ;;  %v2915_v60 = vadd.f32 %v6796_v21, %v6671_v45 }
 0x4d8   :  { %3291 = vmatprep.subr.mxu0 %v3140_v7 }
 0x4d9   :  { %v2976_v32 = vpop.f32.mrf.mxu1 }
 0x4db   :  { %v2980_v36 = vpop.f32.mrf.mxu1  ;;  %3292 = vmatpush2.xpose.msra.mxu0 %v3139_v62 }
 0x4dc   :  { %3293 = vmatprep.subr.mxu0 %v3138_v49 }
 0x4dd   :  { %v2982_v46 = vpop.f32.mrf.mxu1 }
 0x4de   :  { %v2983_v26 = vadd.f32 %v2982_v46, %v6674_v42  ;;  %v2975_v46 = vadd.f32 %v6875_v58, %v6671_v45  ;;  %v2965_v58 = vadd.f32 %v6863_v13, %v6674_v42  ;;  %v2957_v13 = vadd.f32 %v6851_v47, %v6671_v45 }
 0x4df   :  { %v2986_v56 = vpop.f32.mrf.mxu1  ;;  %3294 = vmatpush2.xpose.msra.mxu0 %v3137_v5  ;;  %v2981_v5 = vadd.f32 %v2980_v36, %v6671_v45  ;;  %v2947_v47 = vadd.f32 %v6839_v20, %v6674_v42  ;;  %v2939_v20 = vadd.f32 %v6827_v31, %v6671_v45  ;;  %v2929_v31 = vadd.f32 %v6815_v29, %v6674_v42 }
 0x4e0   :  { %3295 = vmatprep.subr.mxu0 %v3136_v37  ;;  %v2987_v7 = vadd.f32 %v2986_v56, %v6671_v45  ;;  %v3188_v8 = vmax.f32 %v2983_v26, 0.0  ;;  %v3169_v29 = vmax.f32 %v2927_v12, 0.0 }
 0x4e1   :  { %v2988_v55 = vpop.f32.mrf.mxu1  ;;  %v3187_v56 = vmax.f32 %v2981_v5, 0.0  ;;  %v3176_v26 = vmax.f32 %v2947_v47, 0.0  ;;  %v3175_v5 = vmax.f32 %v2945_v22, 0.0 }
 0x4e2   :  { %v2989_v40 = vadd.f32 %v2988_v55, %v6674_v42  ;;  %v3189_v33 = vmax.f32 %v2987_v7, 0.0 }
 0x4e3   :  { %v2992_v27 = vpop.f32.mrf.mxu1  ;;  %3296 = vmatpush2.xpose.msra.mxu0 %v3135_v57 }
 0x4e4   :  { %3297 = vmatprep.subr.mxu0 %v3134_v18  ;;  %v2993_v35 = vadd.f32 %v2992_v27, %v6671_v45  ;;  %v3190_v49 = vmax.f32 %v2989_v40, 0.0  ;;  %v3185_v27 = vmax.f32 %v2975_v46, 0.0  ;;  %v3178_v40 = vmax.f32 %v2953_v3, 0.0 }
 0x4e5   :  { %v2994_v24 = vpop.f32.mrf.mxu1  ;;  %v3173_v46 = vmax.f32 %v2939_v20, 0.0  ;;  %v2911_v3 = vadd.f32 %v6793_v11, %v6674_v42 }
 0x4e6   :  { %v2995_v17 = vadd.f32 %v2994_v24, %v6674_v42  ;;  %v3191_v15 = vmax.f32 %v2993_v35, 0.0  ;;  %v3179_v35 = vmax.f32 %v2957_v13, 0.0 }
 0x4e7   :  { %v2998_v54 = vpop.f32.mrf.mxu1  ;;  %3298 = vmatpush2.xpose.msra.mxu0 %v3133_v16  ;;  %v3184_v16 = vmax.f32 %v2971_v14, 0.0  ;;  %v3172_v14 = vmax.f32 %v2935_v38, 0.0  ;;  %v3164_v47 = vmax.f32 %v2911_v3, 0.0 }
 0x4e8   :  { %3299 = vmatprep.subr.mxu0 %v3132_v9  ;;  %v2999_v6 = vadd.f32 %v2998_v54, %v6671_v45  ;;  %v3192_v0 = vmax.f32 %v2995_v17, 0.0 }
 0x4e9   :  { %v3000_v48 = vpop.f32.mrf.mxu1 }
 0x4ea   :  { %v3001_v43 = vadd.f32 %v3000_v48, %v6674_v42  ;;  %v3193_v23 = vmax.f32 %v2999_v6, 0.0  ;;  %v3181_v48 = vmax.f32 %v2963_v59, 0.0  ;;  %v2921_v59 = vadd.f32 %v6802_v51, %v6671_v45 }
 0x4eb   :  { %v6894_v41 = vpop.f32.mrf.mxu1  ;;  %3300 = vmatpush2.xpose.msra.mxu0 %v3131_v50  ;;  %v3182_v50 = vmax.f32 %v2965_v58, 0.0  ;;  %v2923_v58 = vadd.f32 %v6808_v52, %v6674_v42  ;;  %v2909_v51 = vadd.f32 %v6790_v61, %v6671_v45 }
 0x4ec   :  { %v3194_v28 = vmax.f32 %v3001_v43, 0.0  ;;  %v3167_v52 = vmax.f32 %v2921_v59, 0.0 }
 0x4ed   :  { %v6897_v4 = vpop.f32.mrf.mxu1  ;;  %v3163_v22 = vmax.f32 %v2909_v51, 0.0 }
 0x4ee   :  { %3302 = vmatmul.mubr.f32.vlgmr.msra.gmra.mxu0 %v6690_v10  ;;  %3308 = vmatprep.subr.mxu0 %v3194_v28 }
 0x4ef   :  { %v6901_v44 = vpop.f32.mrf.mxu1  ;;  %3309 = vmatpush1.xpose.msra.mxu0 %v3193_v23  ;;  %3372 = vmatprep.mubr.f32.mxu0 %v6697_v53  ;;  %v2977_v53 = vadd.f32 %v2976_v32, %v6674_v42  ;;  %v2969_v32 = vadd.f32 %v6867_v2, %v6671_v45  ;;  %v2959_v2 = vadd.f32 %v6855_v63, %v6674_v42 }
 0x4f0   :  { %3310 = vmatprep.subr.mxu0 %v3192_v0  ;;  %v2951_v63 = vadd.f32 %v6843_v1, %v6671_v45  ;;  %v2941_v1 = vadd.f32 %v6831_v39, %v6674_v42  ;;  %v2933_v39 = vadd.f32 %v6819_v34, %v6671_v45 }
 0x4f1   :  { %v6905_v62 = vpop.f32.mrf.mxu1  ;;  %v3186_v36 = vmax.f32 %v2977_v53, 0.0  ;;  %v3183_v9 = vmax.f32 %v2969_v32, 0.0  ;;  %v3180_v43 = vmax.f32 %v2959_v2, 0.0  ;;  %v2917_v2 = vadd.f32 %v6799_v19, %v6674_v42 }
 0x4f2   :  { %v3177_v7 = vmax.f32 %v2951_v63, 0.0  ;;  %v3174_v53 = vmax.f32 %v2941_v1, 0.0  ;;  %v3171_v32 = vmax.f32 %v2933_v39, 0.0  ;;  %v3165_v19 = vmax.f32 %v2915_v60, 0.0 }
 0x4f3   :  { %v6908_v25 = vpop.f32.mrf.mxu1  ;;  %3311 = vmatpush1.xpose.msra.mxu0 %v3191_v15 }
 0x4f4   :  { %3312 = vmatprep.subr.mxu0 %v3190_v49 }
 0x4f5   :  { %v6911_v37 = vpop.f32.mrf.mxu1 }
 0x4f7   :  { %v6914_v57 = vpop.f32.mrf.mxu1  ;;  %3313 = vmatpush1.xpose.msra.mxu0 %v3189_v33 }
 0x4f8   :  { %3314 = vmatprep.subr.mxu0 %v3188_v8 }
 0x4f9   :  { %v6918_v55 = vpop.f32.mrf.mxu1 }
 0x4fb   :  { %v6922_v18 = vpop.f32.mrf.mxu1  ;;  %3315 = vmatpush1.xpose.msra.mxu0 %v3187_v56 }
 0x4fc   :  { %3316 = vmatprep.subr.mxu0 %v3186_v36 }
 0x4fd   :  { %v6926_v30 = vpop.f32.mrf.mxu1 }
 0x4ff   :  { %v6930_v24 = vpop.f32.mrf.mxu1  ;;  %3317 = vmatpush1.xpose.msra.mxu0 %v3185_v27 }
 0x500   :  { %3318 = vmatprep.subr.mxu0 %v3184_v16  ;;  %v3170_v16 = vmax.f32 %v2929_v31, 0.0 }
 0x501   :  { %v6934_v54 = vpop.f32.mrf.mxu1 }
 0x503   :  { %v6938_v6 = vpop.f32.mrf.mxu1  ;;  %3319 = vmatpush1.xpose.msra.mxu0 %v3183_v9 }
 0x504   :  { %3320 = vmatprep.subr.mxu0 %v3182_v50  ;;  %v3168_v50 = vmax.f32 %v2923_v58, 0.0 }
 0x505   :  { %v6942_v17 = vpop.f32.mrf.mxu1 }
 0x507   :  { %v6946_v28 = vpop.f32.mrf.mxu1  ;;  %3321 = vmatpush1.xpose.msra.mxu0 %v3181_v48 }
 0x508   :  { %3322 = vmatprep.subr.mxu0 %v3180_v43  ;;  %v3166_v43 = vmax.f32 %v2917_v2, 0.0 }
 0x509   :  { %v6950_v23 = vpop.f32.mrf.mxu1 }
 0x50b   :  { %v6954_v0 = vpop.f32.mrf.mxu1  ;;  %3323 = vmatpush1.xpose.msra.mxu0 %v3179_v35 }
 0x50c   :  { %3324 = vmatprep.subr.mxu0 %v3178_v40 }
 0x50d   :  { %v6958_v15 = vpop.f32.mrf.mxu1 }
 0x50f   :  { %v6962_v49 = vpop.f32.mrf.mxu1  ;;  %3325 = vmatpush1.xpose.msra.mxu0 %v3177_v7 }
 0x510   :  { %3326 = vmatprep.subr.mxu0 %v3176_v26 }
 0x511   :  { %v6966_v33 = vpop.f32.mrf.mxu1 }
 0x513   :  { %v6970_v8 = vpop.f32.mrf.mxu1  ;;  %3327 = vmatpush1.xpose.msra.mxu0 %v3175_v5 }
 0x514   :  { %3328 = vmatprep.subr.mxu0 %v3174_v53 }
 0x515   :  { %v6974_v56 = vpop.f32.mrf.mxu1 }
 0x517   :  { %v3070_v36 = vpop.f32.mrf.mxu1  ;;  %3329 = vmatpush1.xpose.msra.mxu0 %v3173_v46 }
 0x518   :  { %3330 = vmatprep.subr.mxu0 %v3172_v14 }
 0x519   :  { %v3072_v27 = vpop.f32.mrf.mxu1 }
 0x51b   :  { %v3076_v34 = vpop.f32.mrf.mxu1  ;;  %3331 = vmatpush1.xpose.msra.mxu0 %v3171_v32  ;;  %v3073_v32 = vadd.f32 %v3072_v27, %v6674_v42 }
 0x51c   :  { %3332 = vmatprep.subr.mxu0 %v3170_v16  ;;  %v3077_v14 = vadd.f32 %v3076_v34, %v6671_v45  ;;  %v3071_v16 = vadd.f32 %v3070_v36, %v6671_v45  ;;  %v3061_v34 = vadd.f32 %v6966_v33, %v6674_v42  ;;  %v3059_v36 = vadd.f32 %v6962_v49, %v6671_v45 }
 0x51d   :  { %v3078_v9 = vpop.f32.mrf.mxu1  ;;  %v3218_v2 = vmax.f32 %v3073_v32, 0.0  ;;  %v3049_v33 = vadd.f32 %v6950_v23, %v6674_v42  ;;  %v3047_v49 = vadd.f32 %v6946_v28, %v6671_v45  ;;  %v3037_v23 = vadd.f32 %v6934_v54, %v6674_v42 }
 0x51e   :  { %v3079_v46 = vadd.f32 %v3078_v9, %v6674_v42  ;;  %v3219_v59 = vmax.f32 %v3077_v14, 0.0  ;;  %v3065_v9 = vadd.f32 %v6970_v8, %v6671_v45  ;;  %v3214_v60 = vmax.f32 %v3061_v34, 0.0 }
 0x51f   :  { %v3082_v13 = vpop.f32.mrf.mxu1  ;;  %3333 = vmatpush1.xpose.msra.mxu0 %v3169_v29  ;;  %v3067_v29 = vadd.f32 %v6974_v56, %v6674_v42  ;;  %v3055_v56 = vadd.f32 %v6958_v15, %v6674_v42  ;;  %v3053_v8 = vadd.f32 %v6954_v0, %v6671_v45  ;;  %v3043_v15 = vadd.f32 %v6942_v17, %v6674_v42 }
 0x520   :  { %3334 = vmatprep.subr.mxu0 %v3168_v50  ;;  %v3083_v53 = vadd.f32 %v3082_v13, %v6671_v45  ;;  %v3220_v58 = vmax.f32 %v3079_v46, 0.0  ;;  %v3217_v50 = vmax.f32 %v3071_v16, 0.0  ;;  %v3215_v13 = vmax.f32 %v3065_v9, 0.0 }
 0x521   :  { %v3084_v48 = vpop.f32.mrf.mxu1  ;;  %v3216_v27 = vmax.f32 %v3067_v29, 0.0  ;;  %v3211_v3 = vmax.f32 %v3053_v8, 0.0  ;;  %v3041_v0 = vadd.f32 %v6938_v6, %v6671_v45  ;;  %v3208_v51 = vmax.f32 %v3043_v15, 0.0 }
 0x522   :  { %v3085_v61 = vadd.f32 %v3084_v48, %v6674_v42  ;;  %v3221_v12 = vmax.f32 %v3083_v53, 0.0  ;;  %v3212_v48 = vmax.f32 %v3055_v56, 0.0  ;;  %v3035_v28 = vadd.f32 %v6930_v24, %v6671_v45 }
 0x523   :  { %v3088_v63 = vpop.f32.mrf.mxu1  ;;  %3335 = vmatpush1.xpose.msra.mxu0 %v3167_v52  ;;  %v3213_v52 = vmax.f32 %v3059_v36, 0.0  ;;  %v3031_v17 = vadd.f32 %v6926_v30, %v6674_v42  ;;  %v3029_v6 = vadd.f32 %v6922_v18, %v6671_v45  ;;  %v3025_v54 = vadd.f32 %v6918_v55, %v6674_v42 }
 0x524   :  { %3336 = vmatprep.subr.mxu0 %v3166_v43  ;;  %v3089_v20 = vadd.f32 %v3088_v63, %v6671_v45  ;;  %v3222_v31 = vmax.f32 %v3085_v61, 0.0  ;;  %v3210_v43 = vmax.f32 %v3049_v33, 0.0  ;;  %v3209_v63 = vmax.f32 %v3047_v49, 0.0  ;;  %v3232_v61 = vpop.permute.xlu1 %3231 }
 0x525   :  { %v3090_v35 = vpop.f32.mrf.mxu1  ;;  %v3023_v24 = vadd.f32 %v6914_v57, %v6671_v45  ;;  %v3019_v30 = vadd.f32 %v6911_v37, %v6674_v42  ;;  %v3017_v18 = vadd.f32 %v6908_v25, %v6671_v45  ;;  %v3013_v55 = vadd.f32 %v6905_v62, %v6674_v42 }
 0x526   :  { %v3091_v1 = vadd.f32 %v3090_v35, %v6674_v42  ;;  %v3223_v39 = vmax.f32 %v3089_v20, 0.0  ;;  %v3206_v35 = vmax.f32 %v3037_v23, 0.0  ;;  %v3011_v57 = vadd.f32 %v6901_v44, %v6671_v45 }
 0x527   :  { %v3094_v40 = vpop.f32.mrf.mxu1  ;;  %3337 = vmatpush1.xpose.msra.mxu0 %v3165_v19  ;;  %v3207_v19 = vmax.f32 %v3041_v0, 0.0  ;;  %v3007_v37 = vadd.f32 %v6897_v4, %v6674_v42  ;;  %v3005_v25 = vadd.f32 %v6894_v41, %v6671_v45 }
 0x528   :  { %3338 = vmatprep.subr.mxu0 %v3164_v47  ;;  %v3095_v21 = vadd.f32 %v3094_v40, %v6671_v45  ;;  %v3224_v38 = vmax.f32 %v3091_v1, 0.0  ;;  %v3205_v47 = vmax.f32 %v3035_v28, 0.0  ;;  %v3204_v40 = vmax.f32 %v3031_v17, 0.0 }
 0x529   :  { %v3096_v7 = vpop.f32.mrf.mxu1  ;;  %v3200_v1 = vmax.f32 %v3019_v30, 0.0  ;;  %v3197_v20 = vmax.f32 %v3011_v57, 0.0  ;;  %v3195_v62 = vmax.f32 %v3005_v25, 0.0 }
 0x52a   :  { %v3097_v11 = vadd.f32 %v3096_v7, %v6674_v42  ;;  %v3225_v5 = vmax.f32 %v3095_v21, 0.0  ;;  %v3202_v21 = vmax.f32 %v3025_v54, 0.0  ;;  %v3201_v7 = vmax.f32 %v3023_v24, 0.0 }
 0x52b   :  { %3339 = vmatpush1.xpose.msra.mxu0 %v3163_v22  ;;  %v3203_v22 = vmax.f32 %v3029_v6, 0.0 }
 0x52c   :  { %v3226_v26 = vmax.f32 %v3097_v11, 0.0  ;;  %v3199_v11 = vmax.f32 %v3017_v18, 0.0 }
 0x52e   :  { %3340 = vmatprep.subr.mxu0 %v3226_v26  ;;  %v3198_v26 = vmax.f32 %v3013_v55, 0.0 }
 0x52f   :  { %3341 = vmatpush2.xpose.msra.mxu0 %v3225_v5  ;;  %v3196_v5 = vmax.f32 %v3007_v37, 0.0 }
 0x530   :  { %3342 = vmatprep.subr.mxu0 %v3224_v38 }
 0x533   :  { %3343 = vmatpush2.xpose.msra.mxu0 %v3223_v39 }
 0x534   :  { %3344 = vmatprep.subr.mxu0 %v3222_v31 }
 0x537   :  { %3345 = vmatpush2.xpose.msra.mxu0 %v3221_v12 }
 0x538   :  { %3346 = vmatprep.subr.mxu0 %v3220_v58 }
 0x53b   :  { %3347 = vmatpush2.xpose.msra.mxu0 %v3219_v59 }
 0x53c   :  { %3348 = vmatprep.subr.mxu0 %v3218_v2 }
 0x53f   :  { %3349 = vmatpush2.xpose.msra.mxu0 %v3217_v50 }
 0x540   :  { %3350 = vmatprep.subr.mxu0 %v3216_v27 }
 0x543   :  { %3351 = vmatpush2.xpose.msra.mxu0 %v3215_v13 }
 0x544   :  { %3352 = vmatprep.subr.mxu0 %v3214_v60 }
 0x547   :  { %3353 = vmatpush2.xpose.msra.mxu0 %v3213_v52 }
 0x548   :  { %3354 = vmatprep.subr.mxu0 %v3212_v48 }
 0x54b   :  { %3355 = vmatpush2.xpose.msra.mxu0 %v3211_v3 }
 0x54c   :  { %3356 = vmatprep.subr.mxu0 %v3210_v43 }
 0x54f   :  { %3357 = vmatpush2.xpose.msra.mxu0 %v3209_v63 }
 0x550   :  { %3358 = vmatprep.subr.mxu0 %v3208_v51 }
 0x553   :  { %3359 = vmatpush2.xpose.msra.mxu0 %v3207_v19 }
 0x554   :  { %3360 = vmatprep.subr.mxu0 %v3206_v35 }
 0x557   :  { %3361 = vmatpush2.xpose.msra.mxu0 %v3205_v47 }
 0x558   :  { %3362 = vmatprep.subr.mxu0 %v3204_v40 }
 0x55b   :  { %3363 = vmatpush2.xpose.msra.mxu0 %v3203_v22 }
 0x55c   :  { %3364 = vmatprep.subr.mxu0 %v3202_v21 }
 0x55f   :  { %3365 = vmatpush2.xpose.msra.mxu0 %v3201_v7 }
 0x560   :  { %3366 = vmatprep.subr.mxu0 %v3200_v1 }
 0x563   :  { %3367 = vmatpush2.xpose.msra.mxu0 %v3199_v11 }
 0x564   :  { %3368 = vmatprep.subr.mxu0 %v3198_v26 }
 0x567   :  { %3369 = vmatpush2.xpose.msra.mxu0 %v3197_v20 }
 0x568   :  { %3370 = vmatprep.subr.mxu0 %v3196_v5 }
 0x56b   :  { %3371 = vmatpush2.xpose.msra.mxu0 %v3195_v62 }
 0x56e   :  { %3373 = vmatmul.mubr.f32.vlgmr.msra.gmra.mxu0 %v6690_v10 }
 0x5ae   :  { %v3303_v44 = vpop.f32.mrf.mxu0 }
 0x5af   :  { %v3304_v38 = vadd.f32 %v3303_v44, %v3232_v61 }
 0x5b0   :  { %v3305_v53 = vpop.f32.mrf.mxu0 }
 0x5b1   :  { %v3306_v39 = vadd.f32 %v3305_v53, %v3232_v61 }
 0x5b3   :  { %v3383_v42 = vcombine.low %v3304_v38, %v3306_v39 }
 0x5b5   :  { %3387 = vst [vmem:[%s7078_s19] sm:$0x77] %v3383_v42 }
 0x5b6   :  { %3667 = shalt.err (!%p3664_p4)
}
 0x5b7   :  { %3400 = dma.vmem_to_hbm [thread:$0]  %s3398_s25, 32, %s7079_s20, [#allocation3]  }
 0x5b8   :  { %s3676_s11 = scalar_lea.vmem %s3408_s27, 32  ;;  %p3681_p6 = scmp.lt.s32.totalorder %s3408_s27, %s3408_s27 }
 0x5b9   :  { %p3677_p5 = scmp.ne.s32.totalorder %s3408_s27, %s3676_s11  ;;  %p3682_p7 = scmp.lt.s32.totalorder %s3676_s11, %s3676_s11 }
 0x5bb   :  { %p3683_p8 = por %p3682_p7, %p3681_p6 }
 0x5bd   :  { %p3684_p9 = pnand %p3683_p8, %p3677_p5 }
 0x5bf   :  { %3687 = shalt.err (!%p3684_p9)
}
 0x5c0   :  { %3410 = dma.vmem_to_hbm [thread:$0]  %s3408_s27, 32, %s7080_s21, [#allocation5]  }
 0x62e   :  { %v3374_v45 = vpop.f32.mrf.mxu0 }
 0x62f   :  { %v3375_v41 = vadd.f32 %v3374_v45, %v3232_v61 }
 0x630   :  { %v3376_v10 = vpop.f32.mrf.mxu0 }
 0x631   :  { %v3377_v4 = vadd.f32 %v3376_v10, %v3232_v61 }
 0x633   :  { %v3384_v46 = vcombine.low %v3375_v41, %v3377_v4 }
 0x635   :  { %3388 = vst [vmem:[%s7078_s19 + $0x8] sm:$0x77] %v3384_v46 }
 0x636   :  { %3696 = dma.done.wait [#allocation3], 32  }
 0x637   :  { %3697 = vsyncadd [#allocation3], 4294967264 }
 0x638   :  { %3698 = dma.done.wait [#allocation5], 32  }
 0x639   :  { %3699 = vsyncadd [#allocation5], 4294967264 }
 0x63a   :  { %3419 = vsyncpa [#allocation3], 1 }
 0x63b   :  { %3420 = vsyncpa [#allocation5], 1 }

</bundles_post_ra>
